<compile_context>
chip_gen: v7x
topology: tpu7x:2x2x1
jax: 0.10.0
libtpu: 0.0.40
codegen_flags: <defaults>
</compile_context>

<pallas_src>
import jax
import jax.numpy as jnp
from jax.experimental import pallas as pl
from jax.experimental.pallas import tpu as pltpu


# MXU operand dtype for the three feat->feat convs (accumulation is always
# f32 via preferred_element_type; bias/ReLU/residual adds are always f32, so
# this is safe on v5e which has no bf16 VPU/EUP).  Set to jnp.float32 to match
# the PyTorch f32 reference bit-for-bit-ish.
COMPUTE_DTYPE = jnp.bfloat16


# ----------------------------------------------------------------------------
# Fused whole-network kernel (one batch element per grid step)
# ----------------------------------------------------------------------------
def _make_fused_kernel(H, W, cin, feat, compute_dtype):
    HW = H * W
    # Tap order (dy,dx) matches the HWIO weight flattening: t = (dy+1)*3+(dx+1).
    taps = [(dy, dx) for dy in (-1, 0, 1) for dx in (-1, 0, 1)]

    def kernel(x_ref, masks_ref, wh_ref, bh_ref, wg_ref, bg_ref,
               wr0_ref, br0_ref, wr2_ref, br2_ref,
               o0_ref, o1_ref, o2_ref, patch_ref, hpatch_ref):
        # patch_ref : (9*feat, HW) compute_dtype  im2col patch for feat convs
        # hpatch_ref: (9*cin,  HW) f32            im2col patch for the head conv

        def conv3x3(x_cf, w_ref, b_ref, ci, p_ref, relu):
            """SAME 3x3 conv of a channels-first (ci, HW) f32 map as ONE
            (feat, 9*ci) x (9*ci, HW) MXU matmul.  im2col rows are built with
            XLU lane-rolls over the flattened spatial axis plus constant
            boundary masks (rolls are free-ish XLU work; every patch store is a
            lane-dense, sublane-aligned (ci, HW) chunk)."""
            for t, (dy, dx) in enumerate(taps):
                s = dy * W + dx
                shifted = x_cf if s == 0 else pltpu.roll(
                    x_cf, shift=(-s) % HW, axis=1)
                p_ref[t * ci:(t + 1) * ci, :] = (
                    shifted * masks_ref[t:t + 1, :]).astype(p_ref.dtype)
            acc = jnp.dot(w_ref[...], p_ref[...],
                          preferred_element_type=jnp.float32)
            acc = acc + b_ref[...]                    # (feat, HW) + (feat, 1)
            if relu:
                acc = jnp.maximum(acc, 0.0)
            return acc                                # (feat, HW) f32

        x_in = x_ref[...]                                             # (cin, HW)
        # --- 'head' (top-level else branch) ----------------------------------
        h = conv3x3(x_in, wh_ref, bh_ref, cin, hpatch_ref, relu=False)
        # --- body.'0'.'0'.'0': Conv + ReLU  (grandchild != '5') ---------------
        x2 = conv3x3(h, wg_ref, bg_ref, feat, patch_ref, relu=True)   # residual
        # --- body.'0'.'0'.'5': residual block; outputs[name] = x + x2 ---------
        r0 = conv3x3(x2, wr0_ref, br0_ref, feat, patch_ref, relu=False)  # '0'
        r1 = jnp.maximum(r0, 0.0)                                        # '1'
        r2 = conv3x3(r1, wr2_ref, br2_ref, feat, patch_ref, relu=False)  # '2'
        o0_ref[...] = r0 + x2   # outputs['0']
        o1_ref[...] = r1 + x2   # outputs['1']
        o2_ref[...] = r2 + x2   # outputs['2']
        # Everything after this point in the PyTorch forward (x+x2, x+x1,
        # body.'1', x+x0, 'tail') does not reach the returned dict -> elided.

    return kernel


# ----------------------------------------------------------------------------
# Wrapper: FeatureExtractor.forward equivalent (NCHW in, NCHW outputs dict)
# ----------------------------------------------------------------------------
def feature_extractor_forward(x_nchw, params, extracted_layers=None,
                              compute_dtype=COMPUTE_DTYPE):
    N, cin, H, W = x_nchw.shape
    feat = params['g0_w'].shape[-1]
    HW = H * W

    # NCHW accepted directly; flattening (H, W) -> H*W is a free reshape.
    x_flat = x_nchw.reshape(N, cin, HW)

    def prep_w(w, dtype):                      # HWIO (3,3,ci,co) -> (co, 9*ci)
        kh, kw, ci, co = w.shape
        return jnp.transpose(w.reshape(kh * kw * ci, co)).astype(dtype)

    def prep_b(b):
        return b.reshape(-1, 1).astype(jnp.float32)

    # Head stays f32 (K = 9*cin is tiny and ci=4 bf16 patch writes would be
    # misaligned packed stores); the three big convs use compute_dtype.
    wh = prep_w(params['head_w'], jnp.float32)
    wg = prep_w(params['g0_w'], compute_dtype)
    wr0 = prep_w(params['r0_w'], compute_dtype)
    wr2 = prep_w(params['r2_w'], compute_dtype)
    bh = prep_b(params['head_b'])
    bg = prep_b(params['g0_b'])
    br0 = prep_b(params['r0_b'])
    br2 = prep_b(params['r2_b'])

    # Per-tap SAME-padding validity masks over the flattened spatial axis
    # (also kill the circular wrap of the in-kernel lane rolls).
    hh = jnp.arange(HW, dtype=jnp.int32) // W
    ww = jnp.arange(HW, dtype=jnp.int32) % W
    rows = []
    for dy in (-1, 0, 1):
        for dx in (-1, 0, 1):
            ok = ((hh + dy >= 0) & (hh + dy < H) &
                  (ww + dx >= 0) & (ww + dx < W))
            rows.append(ok.astype(jnp.float32))
    masks = jnp.stack(rows, axis=0)            # (9, HW)

    kernel = _make_fused_kernel(H, W, cin, feat, compute_dtype)

    def full_spec(shape):
        return pl.BlockSpec(shape, lambda n: (0,) * len(shape))

    out_sds = jax.ShapeDtypeStruct((N, feat, HW), jnp.float32)
    ospec = pl.BlockSpec((None, feat, HW), lambda n: (n, 0, 0))

    o0, o1, o2 = pl.pallas_call(
        kernel,
        out_shape=(out_sds, out_sds, out_sds),
        grid=(N,),
        in_specs=[
            pl.BlockSpec((None, cin, HW), lambda n: (n, 0, 0)),   # x (NCHW, flat)
            full_spec((9, HW)),                                   # tap masks
            full_spec((feat, 9 * cin)), full_spec((feat, 1)),     # 'head'
            full_spec((feat, 9 * feat)), full_spec((feat, 1)),    # body.0.0.'0'
            full_spec((feat, 9 * feat)), full_spec((feat, 1)),    # body.0.0.'5'.'0'
            full_spec((feat, 9 * feat)), full_spec((feat, 1)),    # body.0.0.'5'.'2'
        ],
        out_specs=(ospec, ospec, ospec),
        scratch_shapes=[
            pltpu.VMEM((9 * feat, HW), compute_dtype),   # im2col patch (feat convs)
            pltpu.VMEM((9 * cin, HW), jnp.float32),      # im2col patch (head conv)
        ],
        compiler_params=pltpu.CompilerParams(
            # one image per step: both TensorCores busy on v7x megacore parts.
            dimension_semantics=("parallel",)),
    )(x_flat, masks, wh, bh, wg, bg, wr0, br0, wr2, br2)

    outs = {'0': o0, '1': o1, '2': o2}
    # Filter like the module's `extracted_layers`; (N, feat, HW) -> NCHW is a
    # free reshape (no transposes anywhere in the wrapper).
    return {k: v.reshape(N, feat, H, W) for k, v in outs.items()
            if extracted_layers is None or k in extracted_layers}


# ----------------------------------------------------------------------------
# Deterministic parameter init (PyTorch-Conv2d-style uniform fan-in init)
# ----------------------------------------------------------------------------
def init_params(key, cin=4, feat=32, cout=4):
    def conv_init(k, ci, co):
        kw, kb = jax.random.split(k)
        bound = 1.0 / (3 * 3 * ci) ** 0.5
        w = jax.random.uniform(kw, (3, 3, ci, co), jnp.float32, -bound, bound)
        b = jax.random.uniform(kb, (co,), jnp.float32, -bound, bound)
        return w, b

    keys = jax.random.split(key, 6)
    p = {}
    p['head_w'], p['head_b'] = conv_init(keys[0], cin, feat)   # 'head'
    p['g0_w'], p['g0_b'] = conv_init(keys[1], feat, feat)      # body.0.0.'0'
    p['r0_w'], p['r0_b'] = conv_init(keys[2], feat, feat)      # body.0.0.'5'.'0'
    p['r2_w'], p['r2_b'] = conv_init(keys[3], feat, feat)      # body.0.0.'5'.'2'
    # body.'1' and 'tail' exist in the module but never reach `outputs`:
    p['b1_w'], p['b1_b'] = conv_init(keys[4], feat, feat)      # body.'1' (dead)
    p['tail_w'], p['tail_b'] = conv_init(keys[5], feat, cout)  # 'tail'   (dead)
    return p


# ----------------------------------------------------------------------------
# Pure-JAX reference of the same forward (only ops reaching `outputs`)
# ----------------------------------------------------------------------------
def _conv3x3_ref(x, w, b):
    y = jax.lax.conv_general_dilated(
        x, w, window_strides=(1, 1), padding='SAME',
        dimension_numbers=('NHWC', 'HWIO', 'NHWC'),
        precision=jax.lax.Precision.HIGHEST)
    return y + b


def _forward_ref(x_nchw, params):
    x = jnp.transpose(x_nchw, (0, 2, 3, 1))
    x = _conv3x3_ref(x, params['head_w'], params['head_b'])
    x2 = jnp.maximum(_conv3x3_ref(x, params['g0_w'], params['g0_b']), 0.0)
    r0 = _conv3x3_ref(x2, params['r0_w'], params['r0_b'])
    r1 = jnp.maximum(r0, 0.0)
    r2 = _conv3x3_ref(r1, params['r2_w'], params['r2_b'])
    outs = {'0': r0 + x2, '1': r1 + x2, '2': r2 + x2}
    return {k: jnp.transpose(v, (0, 3, 1, 2)) for k, v in outs.items()}


# ----------------------------------------------------------------------------
if __name__ == "__main__":
    key = jax.random.PRNGKey(0)
    kx, kp = jax.random.split(key)

    # Small NCHW input consistent with an image model: batch=2, C=4, 16x16.
    x = jax.random.normal(kx, (2, 4, 16, 16), jnp.float32)
    params = init_params(kp, cin=4, feat=32, cout=4)
    ref = _forward_ref(x, params)

    # 1) Strict structural/numerical check: f32 compute vs f32 HIGHEST reference.
    fwd_f32 = jax.jit(
        lambda xx, pp: feature_extractor_forward(xx, pp,
                                                 compute_dtype=jnp.float32))
    out_f32 = fwd_f32(x, params)
    jax.block_until_ready(out_f32)
    assert set(out_f32.keys()) == {'0', '1', '2'}, out_f32.keys()
    for k in sorted(out_f32):
        assert out_f32[k].shape == (2, 32, 16, 16), (k, out_f32[k].shape)
        assert jnp.allclose(out_f32[k], ref[k], rtol=1e-3, atol=1e-3), \
            f"f32 mismatch vs reference at layer {k!r}"

    # 2) Default mode (bf16 MXU operands, f32 accumulation): looser tolerance
    #    against the full-f32 reference, as documented.
    fwd = jax.jit(lambda xx, pp: feature_extractor_forward(xx, pp))
    outputs = fwd(x, params)
    jax.block_until_ready(outputs)
    for k in sorted(outputs):
        assert outputs[k].shape == (2, 32, 16, 16), (k, outputs[k].shape)
        assert jnp.allclose(outputs[k], ref[k], rtol=3e-2, atol=3e-2), \
            f"bf16 mismatch vs reference at layer {k!r}"

    # 3) `extracted_layers` filtering behaves like the PyTorch module.
    sub = jax.jit(
        lambda xx, pp: feature_extractor_forward(xx, pp,
                                                 extracted_layers=('1',)))(x, params)
    jax.block_until_ready(sub)
    assert set(sub.keys()) == {'1'}, sub.keys()

    print("KERNEL_OK")
</pallas_src>

<mosaic_0001>
module attributes {stable_mosaic.version = 11 : i64} {
  func.func @kernel(%arg0: i32, %arg1: memref<1x4x256xf32, #tpu.memory_space<vmem>>, %arg2: memref<9x256xf32, #tpu.memory_space<vmem>>, %arg3: memref<32x36xf32, #tpu.memory_space<vmem>>, %arg4: memref<32x1xf32, #tpu.memory_space<vmem>>, %arg5: memref<32x288xf32, #tpu.memory_space<vmem>>, %arg6: memref<32x1xf32, #tpu.memory_space<vmem>>, %arg7: memref<32x288xf32, #tpu.memory_space<vmem>>, %arg8: memref<32x1xf32, #tpu.memory_space<vmem>>, %arg9: memref<32x288xf32, #tpu.memory_space<vmem>>, %arg10: memref<32x1xf32, #tpu.memory_space<vmem>>, %arg11: memref<1x32x256xf32, #tpu.memory_space<vmem>>, %arg12: memref<1x32x256xf32, #tpu.memory_space<vmem>>, %arg13: memref<1x32x256xf32, #tpu.memory_space<vmem>>, %arg14: memref<288x256xf32, #tpu.memory_space<vmem>>, %arg15: memref<36x256xf32, #tpu.memory_space<vmem>>) attributes {dimension_semantics = [#tpu.dimension_semantics<parallel>], iteration_bounds = array<i64: 2>, scalar_prefetch = 0 : i64, scratch_operands = 2 : i64, tpu.core_type = #tpu.core_type<tc>, window_params = [{transform_indices = @transform_0, window_bounds = array<i64: 1, 4, 256>}, {pipeline_mode = #tpu.pipeline_mode<synchronous>, transform_indices = @transform_1, window_bounds = array<i64: 9, 256>}, {pipeline_mode = #tpu.pipeline_mode<synchronous>, transform_indices = @transform_2, window_bounds = array<i64: 32, 36>}, {pipeline_mode = #tpu.pipeline_mode<synchronous>, transform_indices = @transform_3, window_bounds = array<i64: 32, 1>}, {pipeline_mode = #tpu.pipeline_mode<synchronous>, transform_indices = @transform_4, window_bounds = array<i64: 32, 288>}, {pipeline_mode = #tpu.pipeline_mode<synchronous>, transform_indices = @transform_5, window_bounds = array<i64: 32, 1>}, {pipeline_mode = #tpu.pipeline_mode<synchronous>, transform_indices = @transform_6, window_bounds = array<i64: 32, 288>}, {pipeline_mode = #tpu.pipeline_mode<synchronous>, transform_indices = @transform_7, window_bounds = array<i64: 32, 1>}, {pipeline_mode = #tpu.pipeline_mode<synchronous>, transform_indices = @transform_8, window_bounds = array<i64: 32, 288>}, {pipeline_mode = #tpu.pipeline_mode<synchronous>, transform_indices = @transform_9, window_bounds = array<i64: 32, 1>}, {transform_indices = @transform_10, window_bounds = array<i64: 1, 32, 256>}, {transform_indices = @transform_11, window_bounds = array<i64: 1, 32, 256>}, {transform_indices = @transform_12, window_bounds = array<i64: 1, 32, 256>}]} {
    %c0 = arith.constant 0 : index
    %c0_0 = arith.constant 0 : index
    %c0_1 = arith.constant 0 : index
    %0 = vector.load %arg1[%c0, %c0_0, %c0_1] : memref<1x4x256xf32, #tpu.memory_space<vmem>>, vector<1x4x256xf32>
    %1 = vector.shape_cast %0 : vector<1x4x256xf32> to vector<4x256xf32>
    %c17_i32 = arith.constant 17 : i32
    %2 = tpu.dynamic_rotate %1 by %c17_i32 dim 1 : vector<4x256xf32>, i32 -> vector<4x256xf32>
    %c0_2 = arith.constant 0 : index
    %c0_3 = arith.constant 0 : index
    %3 = vector.load %arg2[%c0_2, %c0_3] : memref<9x256xf32, #tpu.memory_space<vmem>>, vector<1x256xf32>
    %4 = vector.broadcast %3 : vector<1x256xf32> to vector<4x256xf32>
    %5 = arith.mulf %2, %4 : vector<4x256xf32>
    %c0_4 = arith.constant 0 : index
    %c0_5 = arith.constant 0 : index
    %6 = vector.load %arg15[%c0_4, %c0_5] : memref<36x256xf32, #tpu.memory_space<vmem>>, vector<4x256xf32>
    tpu.vector_store %arg15[%c0_4, %c0_5], %5 {strides = array<i32>} : memref<36x256xf32, #tpu.memory_space<vmem>>, vector<4x256xf32>,
    %c16_i32 = arith.constant 16 : i32
    %7 = tpu.dynamic_rotate %1 by %c16_i32 dim 1 : vector<4x256xf32>, i32 -> vector<4x256xf32>
    %c1 = arith.constant 1 : index
    %c0_6 = arith.constant 0 : index
    %8 = vector.load %arg2[%c1, %c0_6] : memref<9x256xf32, #tpu.memory_space<vmem>>, vector<1x256xf32>
    %9 = vector.broadcast %8 : vector<1x256xf32> to vector<4x256xf32>
    %10 = arith.mulf %7, %9 : vector<4x256xf32>
    %c4 = arith.constant 4 : index
    %c0_7 = arith.constant 0 : index
    %11 = vector.load %arg15[%c4, %c0_7] : memref<36x256xf32, #tpu.memory_space<vmem>>, vector<4x256xf32>
    tpu.vector_store %arg15[%c4, %c0_7], %10 {strides = array<i32>} : memref<36x256xf32, #tpu.memory_space<vmem>>, vector<4x256xf32>,
    %c15_i32 = arith.constant 15 : i32
    %12 = tpu.dynamic_rotate %1 by %c15_i32 dim 1 : vector<4x256xf32>, i32 -> vector<4x256xf32>
    %c2 = arith.constant 2 : index
    %c0_8 = arith.constant 0 : index
    %13 = vector.load %arg2[%c2, %c0_8] : memref<9x256xf32, #tpu.memory_space<vmem>>, vector<1x256xf32>
    %14 = vector.broadcast %13 : vector<1x256xf32> to vector<4x256xf32>
    %15 = arith.mulf %12, %14 : vector<4x256xf32>
    %c8 = arith.constant 8 : index
    %c0_9 = arith.constant 0 : index
    %16 = vector.load %arg15[%c8, %c0_9] : memref<36x256xf32, #tpu.memory_space<vmem>>, vector<4x256xf32>
    tpu.vector_store %arg15[%c8, %c0_9], %15 {strides = array<i32>} : memref<36x256xf32, #tpu.memory_space<vmem>>, vector<4x256xf32>,
    %c1_i32 = arith.constant 1 : i32
    %17 = tpu.dynamic_rotate %1 by %c1_i32 dim 1 : vector<4x256xf32>, i32 -> vector<4x256xf32>
    %c3 = arith.constant 3 : index
    %c0_10 = arith.constant 0 : index
    %18 = vector.load %arg2[%c3, %c0_10] : memref<9x256xf32, #tpu.memory_space<vmem>>, vector<1x256xf32>
    %19 = vector.broadcast %18 : vector<1x256xf32> to vector<4x256xf32>
    %20 = arith.mulf %17, %19 : vector<4x256xf32>
    %c12 = arith.constant 12 : index
    %c0_11 = arith.constant 0 : index
    %21 = vector.load %arg15[%c12, %c0_11] : memref<36x256xf32, #tpu.memory_space<vmem>>, vector<4x256xf32>
    tpu.vector_store %arg15[%c12, %c0_11], %20 {strides = array<i32>} : memref<36x256xf32, #tpu.memory_space<vmem>>, vector<4x256xf32>,
    %c4_12 = arith.constant 4 : index
    %c0_13 = arith.constant 0 : index
    %22 = vector.load %arg2[%c4_12, %c0_13] : memref<9x256xf32, #tpu.memory_space<vmem>>, vector<1x256xf32>
    %23 = vector.broadcast %22 : vector<1x256xf32> to vector<4x256xf32>
    %24 = arith.mulf %1, %23 : vector<4x256xf32>
    %c16 = arith.constant 16 : index
    %c0_14 = arith.constant 0 : index
    %25 = vector.load %arg15[%c16, %c0_14] : memref<36x256xf32, #tpu.memory_space<vmem>>, vector<4x256xf32>
    tpu.vector_store %arg15[%c16, %c0_14], %24 {strides = array<i32>} : memref<36x256xf32, #tpu.memory_space<vmem>>, vector<4x256xf32>,
    %c255_i32 = arith.constant 255 : i32
    %26 = tpu.dynamic_rotate %1 by %c255_i32 dim 1 : vector<4x256xf32>, i32 -> vector<4x256xf32>
    %c5 = arith.constant 5 : index
    %c0_15 = arith.constant 0 : index
    %27 = vector.load %arg2[%c5, %c0_15] : memref<9x256xf32, #tpu.memory_space<vmem>>, vector<1x256xf32>
    %28 = vector.broadcast %27 : vector<1x256xf32> to vector<4x256xf32>
    %29 = arith.mulf %26, %28 : vector<4x256xf32>
    %c20 = arith.constant 20 : index
    %c0_16 = arith.constant 0 : index
    %30 = vector.load %arg15[%c20, %c0_16] : memref<36x256xf32, #tpu.memory_space<vmem>>, vector<4x256xf32>
    tpu.vector_store %arg15[%c20, %c0_16], %29 {strides = array<i32>} : memref<36x256xf32, #tpu.memory_space<vmem>>, vector<4x256xf32>,
    %c241_i32 = arith.constant 241 : i32
    %31 = tpu.dynamic_rotate %1 by %c241_i32 dim 1 : vector<4x256xf32>, i32 -> vector<4x256xf32>
    %c6 = arith.constant 6 : index
    %c0_17 = arith.constant 0 : index
    %32 = vector.load %arg2[%c6, %c0_17] : memref<9x256xf32, #tpu.memory_space<vmem>>, vector<1x256xf32>
    %33 = vector.broadcast %32 : vector<1x256xf32> to vector<4x256xf32>
    %34 = arith.mulf %31, %33 : vector<4x256xf32>
    %c24 = arith.constant 24 : index
    %c0_18 = arith.constant 0 : index
    %35 = vector.load %arg15[%c24, %c0_18] : memref<36x256xf32, #tpu.memory_space<vmem>>, vector<4x256xf32>
    tpu.vector_store %arg15[%c24, %c0_18], %34 {strides = array<i32>} : memref<36x256xf32, #tpu.memory_space<vmem>>, vector<4x256xf32>,
    %c240_i32 = arith.constant 240 : i32
    %36 = tpu.dynamic_rotate %1 by %c240_i32 dim 1 : vector<4x256xf32>, i32 -> vector<4x256xf32>
    %c7 = arith.constant 7 : index
    %c0_19 = arith.constant 0 : index
    %37 = vector.load %arg2[%c7, %c0_19] : memref<9x256xf32, #tpu.memory_space<vmem>>, vector<1x256xf32>
    %38 = vector.broadcast %37 : vector<1x256xf32> to vector<4x256xf32>
    %39 = arith.mulf %36, %38 : vector<4x256xf32>
    %c28 = arith.constant 28 : index
    %c0_20 = arith.constant 0 : index
    %40 = vector.load %arg15[%c28, %c0_20] : memref<36x256xf32, #tpu.memory_space<vmem>>, vector<4x256xf32>
    tpu.vector_store %arg15[%c28, %c0_20], %39 {strides = array<i32>} : memref<36x256xf32, #tpu.memory_space<vmem>>, vector<4x256xf32>,
    %c239_i32 = arith.constant 239 : i32
    %41 = tpu.dynamic_rotate %1 by %c239_i32 dim 1 : vector<4x256xf32>, i32 -> vector<4x256xf32>
    %c8_21 = arith.constant 8 : index
    %c0_22 = arith.constant 0 : index
    %42 = vector.load %arg2[%c8_21, %c0_22] : memref<9x256xf32, #tpu.memory_space<vmem>>, vector<1x256xf32>
    %43 = vector.broadcast %42 : vector<1x256xf32> to vector<4x256xf32>
    %44 = arith.mulf %41, %43 : vector<4x256xf32>
    %c32 = arith.constant 32 : index
    %c0_23 = arith.constant 0 : index
    %45 = vector.load %arg15[%c32, %c0_23] : memref<36x256xf32, #tpu.memory_space<vmem>>, vector<4x256xf32>
    tpu.vector_store %arg15[%c32, %c0_23], %44 {strides = array<i32>} : memref<36x256xf32, #tpu.memory_space<vmem>>, vector<4x256xf32>,
    %c0_24 = arith.constant 0 : index
    %c0_25 = arith.constant 0 : index
    %46 = vector.load %arg3[%c0_24, %c0_25] : memref<32x36xf32, #tpu.memory_space<vmem>>, vector<32x36xf32>
    %c0_26 = arith.constant 0 : index
    %c0_27 = arith.constant 0 : index
    %47 = vector.load %arg15[%c0_26, %c0_27] : memref<36x256xf32, #tpu.memory_space<vmem>>, vector<36x256xf32>
    %cst = arith.constant dense<0.000000e+00> : vector<32x256xf32>
    %48 = tpu.matmul %46, %47, %cst {dimension_numbers = #tpu.dot_dimension_numbers<[1], [0], [0], [1], [0, 0, 1, 1], [], []>} : vector<32x36xf32>, vector<36x256xf32>, vector<32x256xf32> -> vector<32x256xf32>
    %c0_28 = arith.constant 0 : index
    %c0_29 = arith.constant 0 : index
    %49 = vector.load %arg4[%c0_28, %c0_29] : memref<32x1xf32, #tpu.memory_space<vmem>>, vector<32x1xf32>
    %50 = vector.broadcast %49 : vector<32x1xf32> to vector<32x256xf32>
    %51 = arith.addf %48, %50 : vector<32x256xf32>
    %c17_i32_30 = arith.constant 17 : i32
    %52 = tpu.dynamic_rotate %51 by %c17_i32_30 dim 1 : vector<32x256xf32>, i32 -> vector<32x256xf32>
    %c0_31 = arith.constant 0 : index
    %c0_32 = arith.constant 0 : index
    %53 = vector.load %arg2[%c0_31, %c0_32] : memref<9x256xf32, #tpu.memory_space<vmem>>, vector<1x256xf32>
    %54 = vector.broadcast %53 : vector<1x256xf32> to vector<32x256xf32>
    %55 = arith.mulf %52, %54 : vector<32x256xf32>
    %c0_33 = arith.constant 0 : index
    %c0_34 = arith.constant 0 : index
    %56 = vector.load %arg14[%c0_33, %c0_34] : memref<288x256xf32, #tpu.memory_space<vmem>>, vector<32x256xf32>
    tpu.vector_store %arg14[%c0_33, %c0_34], %55 {strides = array<i32>} : memref<288x256xf32, #tpu.memory_space<vmem>>, vector<32x256xf32>,
    %c16_i32_35 = arith.constant 16 : i32
    %57 = tpu.dynamic_rotate %51 by %c16_i32_35 dim 1 : vector<32x256xf32>, i32 -> vector<32x256xf32>
    %c1_36 = arith.constant 1 : index
    %c0_37 = arith.constant 0 : index
    %58 = vector.load %arg2[%c1_36, %c0_37] : memref<9x256xf32, #tpu.memory_space<vmem>>, vector<1x256xf32>
    %59 = vector.broadcast %58 : vector<1x256xf32> to vector<32x256xf32>
    %60 = arith.mulf %57, %59 : vector<32x256xf32>
    %c32_38 = arith.constant 32 : index
    %c0_39 = arith.constant 0 : index
    %61 = vector.load %arg14[%c32_38, %c0_39] : memref<288x256xf32, #tpu.memory_space<vmem>>, vector<32x256xf32>
    tpu.vector_store %arg14[%c32_38, %c0_39], %60 {strides = array<i32>} : memref<288x256xf32, #tpu.memory_space<vmem>>, vector<32x256xf32>,
    %c15_i32_40 = arith.constant 15 : i32
    %62 = tpu.dynamic_rotate %51 by %c15_i32_40 dim 1 : vector<32x256xf32>, i32 -> vector<32x256xf32>
    %c2_41 = arith.constant 2 : index
    %c0_42 = arith.constant 0 : index
    %63 = vector.load %arg2[%c2_41, %c0_42] : memref<9x256xf32, #tpu.memory_space<vmem>>, vector<1x256xf32>
    %64 = vector.broadcast %63 : vector<1x256xf32> to vector<32x256xf32>
    %65 = arith.mulf %62, %64 : vector<32x256xf32>
    %c64 = arith.constant 64 : index
    %c0_43 = arith.constant 0 : index
    %66 = vector.load %arg14[%c64, %c0_43] : memref<288x256xf32, #tpu.memory_space<vmem>>, vector<32x256xf32>
    tpu.vector_store %arg14[%c64, %c0_43], %65 {strides = array<i32>} : memref<288x256xf32, #tpu.memory_space<vmem>>, vector<32x256xf32>,
    %c1_i32_44 = arith.constant 1 : i32
    %67 = tpu.dynamic_rotate %51 by %c1_i32_44 dim 1 : vector<32x256xf32>, i32 -> vector<32x256xf32>
    %c3_45 = arith.constant 3 : index
    %c0_46 = arith.constant 0 : index
    %68 = vector.load %arg2[%c3_45, %c0_46] : memref<9x256xf32, #tpu.memory_space<vmem>>, vector<1x256xf32>
    %69 = vector.broadcast %68 : vector<1x256xf32> to vector<32x256xf32>
    %70 = arith.mulf %67, %69 : vector<32x256xf32>
    %c96 = arith.constant 96 : index
    %c0_47 = arith.constant 0 : index
    %71 = vector.load %arg14[%c96, %c0_47] : memref<288x256xf32, #tpu.memory_space<vmem>>, vector<32x256xf32>
    tpu.vector_store %arg14[%c96, %c0_47], %70 {strides = array<i32>} : memref<288x256xf32, #tpu.memory_space<vmem>>, vector<32x256xf32>,
    %c4_48 = arith.constant 4 : index
    %c0_49 = arith.constant 0 : index
    %72 = vector.load %arg2[%c4_48, %c0_49] : memref<9x256xf32, #tpu.memory_space<vmem>>, vector<1x256xf32>
    %73 = vector.broadcast %72 : vector<1x256xf32> to vector<32x256xf32>
    %74 = arith.mulf %51, %73 : vector<32x256xf32>
    %c128 = arith.constant 128 : index
    %c0_50 = arith.constant 0 : index
    %75 = vector.load %arg14[%c128, %c0_50] : memref<288x256xf32, #tpu.memory_space<vmem>>, vector<32x256xf32>
    tpu.vector_store %arg14[%c128, %c0_50], %74 {strides = array<i32>} : memref<288x256xf32, #tpu.memory_space<vmem>>, vector<32x256xf32>,
    %c255_i32_51 = arith.constant 255 : i32
    %76 = tpu.dynamic_rotate %51 by %c255_i32_51 dim 1 : vector<32x256xf32>, i32 -> vector<32x256xf32>
    %c5_52 = arith.constant 5 : index
    %c0_53 = arith.constant 0 : index
    %77 = vector.load %arg2[%c5_52, %c0_53] : memref<9x256xf32, #tpu.memory_space<vmem>>, vector<1x256xf32>
    %78 = vector.broadcast %77 : vector<1x256xf32> to vector<32x256xf32>
    %79 = arith.mulf %76, %78 : vector<32x256xf32>
    %c160 = arith.constant 160 : index
    %c0_54 = arith.constant 0 : index
    %80 = vector.load %arg14[%c160, %c0_54] : memref<288x256xf32, #tpu.memory_space<vmem>>, vector<32x256xf32>
    tpu.vector_store %arg14[%c160, %c0_54], %79 {strides = array<i32>} : memref<288x256xf32, #tpu.memory_space<vmem>>, vector<32x256xf32>,
    %c241_i32_55 = arith.constant 241 : i32
    %81 = tpu.dynamic_rotate %51 by %c241_i32_55 dim 1 : vector<32x256xf32>, i32 -> vector<32x256xf32>
    %c6_56 = arith.constant 6 : index
    %c0_57 = arith.constant 0 : index
    %82 = vector.load %arg2[%c6_56, %c0_57] : memref<9x256xf32, #tpu.memory_space<vmem>>, vector<1x256xf32>
    %83 = vector.broadcast %82 : vector<1x256xf32> to vector<32x256xf32>
    %84 = arith.mulf %81, %83 : vector<32x256xf32>
    %c192 = arith.constant 192 : index
    %c0_58 = arith.constant 0 : index
    %85 = vector.load %arg14[%c192, %c0_58] : memref<288x256xf32, #tpu.memory_space<vmem>>, vector<32x256xf32>
    tpu.vector_store %arg14[%c192, %c0_58], %84 {strides = array<i32>} : memref<288x256xf32, #tpu.memory_space<vmem>>, vector<32x256xf32>,
    %c240_i32_59 = arith.constant 240 : i32
    %86 = tpu.dynamic_rotate %51 by %c240_i32_59 dim 1 : vector<32x256xf32>, i32 -> vector<32x256xf32>
    %c7_60 = arith.constant 7 : index
    %c0_61 = arith.constant 0 : index
    %87 = vector.load %arg2[%c7_60, %c0_61] : memref<9x256xf32, #tpu.memory_space<vmem>>, vector<1x256xf32>
    %88 = vector.broadcast %87 : vector<1x256xf32> to vector<32x256xf32>
    %89 = arith.mulf %86, %88 : vector<32x256xf32>
    %c224 = arith.constant 224 : index
    %c0_62 = arith.constant 0 : index
    %90 = vector.load %arg14[%c224, %c0_62] : memref<288x256xf32, #tpu.memory_space<vmem>>, vector<32x256xf32>
    tpu.vector_store %arg14[%c224, %c0_62], %89 {strides = array<i32>} : memref<288x256xf32, #tpu.memory_space<vmem>>, vector<32x256xf32>,
    %c239_i32_63 = arith.constant 239 : i32
    %91 = tpu.dynamic_rotate %51 by %c239_i32_63 dim 1 : vector<32x256xf32>, i32 -> vector<32x256xf32>
    %c8_64 = arith.constant 8 : index
    %c0_65 = arith.constant 0 : index
    %92 = vector.load %arg2[%c8_64, %c0_65] : memref<9x256xf32, #tpu.memory_space<vmem>>, vector<1x256xf32>
    %93 = vector.broadcast %92 : vector<1x256xf32> to vector<32x256xf32>
    %94 = arith.mulf %91, %93 : vector<32x256xf32>
    %c256 = arith.constant 256 : index
    %c0_66 = arith.constant 0 : index
    %95 = vector.load %arg14[%c256, %c0_66] : memref<288x256xf32, #tpu.memory_space<vmem>>, vector<32x256xf32>
    tpu.vector_store %arg14[%c256, %c0_66], %94 {strides = array<i32>} : memref<288x256xf32, #tpu.memory_space<vmem>>, vector<32x256xf32>,
    %c0_67 = arith.constant 0 : index
    %c0_68 = arith.constant 0 : index
    %96 = vector.load %arg5[%c0_67, %c0_68] : memref<32x288xf32, #tpu.memory_space<vmem>>, vector<32x288xf32>
    %c0_69 = arith.constant 0 : index
    %c0_70 = arith.constant 0 : index
    %97 = vector.load %arg14[%c0_69, %c0_70] : memref<288x256xf32, #tpu.memory_space<vmem>>, vector<288x256xf32>
    %cst_71 = arith.constant dense<0.000000e+00> : vector<32x256xf32>
    %98 = tpu.matmul %96, %97, %cst_71 {dimension_numbers = #tpu.dot_dimension_numbers<[1], [0], [0], [1], [0, 0, 1, 1], [], []>} : vector<32x288xf32>, vector<288x256xf32>, vector<32x256xf32> -> vector<32x256xf32>
    %c0_72 = arith.constant 0 : index
    %c0_73 = arith.constant 0 : index
    %99 = vector.load %arg6[%c0_72, %c0_73] : memref<32x1xf32, #tpu.memory_space<vmem>>, vector<32x1xf32>
    %100 = vector.broadcast %99 : vector<32x1xf32> to vector<32x256xf32>
    %101 = arith.addf %98, %100 : vector<32x256xf32>
    %cst_74 = arith.constant 0.000000e+00 : f32
    %102 = vector.broadcast %cst_74 : f32 to vector<32x256xf32>
    %103 = arith.maximumf %101, %102 : vector<32x256xf32>
    %c17_i32_75 = arith.constant 17 : i32
    %104 = tpu.dynamic_rotate %103 by %c17_i32_75 dim 1 : vector<32x256xf32>, i32 -> vector<32x256xf32>
    %c0_76 = arith.constant 0 : index
    %c0_77 = arith.constant 0 : index
    %105 = vector.load %arg2[%c0_76, %c0_77] : memref<9x256xf32, #tpu.memory_space<vmem>>, vector<1x256xf32>
    %106 = vector.broadcast %105 : vector<1x256xf32> to vector<32x256xf32>
    %107 = arith.mulf %104, %106 : vector<32x256xf32>
    %c0_78 = arith.constant 0 : index
    %c0_79 = arith.constant 0 : index
    %108 = vector.load %arg14[%c0_78, %c0_79] : memref<288x256xf32, #tpu.memory_space<vmem>>, vector<32x256xf32>
    tpu.vector_store %arg14[%c0_78, %c0_79], %107 {strides = array<i32>} : memref<288x256xf32, #tpu.memory_space<vmem>>, vector<32x256xf32>,
    %c16_i32_80 = arith.constant 16 : i32
    %109 = tpu.dynamic_rotate %103 by %c16_i32_80 dim 1 : vector<32x256xf32>, i32 -> vector<32x256xf32>
    %c1_81 = arith.constant 1 : index
    %c0_82 = arith.constant 0 : index
    %110 = vector.load %arg2[%c1_81, %c0_82] : memref<9x256xf32, #tpu.memory_space<vmem>>, vector<1x256xf32>
    %111 = vector.broadcast %110 : vector<1x256xf32> to vector<32x256xf32>
    %112 = arith.mulf %109, %111 : vector<32x256xf32>
    %c32_83 = arith.constant 32 : index
    %c0_84 = arith.constant 0 : index
    %113 = vector.load %arg14[%c32_83, %c0_84] : memref<288x256xf32, #tpu.memory_space<vmem>>, vector<32x256xf32>
    tpu.vector_store %arg14[%c32_83, %c0_84], %112 {strides = array<i32>} : memref<288x256xf32, #tpu.memory_space<vmem>>, vector<32x256xf32>,
    %c15_i32_85 = arith.constant 15 : i32
    %114 = tpu.dynamic_rotate %103 by %c15_i32_85 dim 1 : vector<32x256xf32>, i32 -> vector<32x256xf32>
    %c2_86 = arith.constant 2 : index
    %c0_87 = arith.constant 0 : index
    %115 = vector.load %arg2[%c2_86, %c0_87] : memref<9x256xf32, #tpu.memory_space<vmem>>, vector<1x256xf32>
    %116 = vector.broadcast %115 : vector<1x256xf32> to vector<32x256xf32>
    %117 = arith.mulf %114, %116 : vector<32x256xf32>
    %c64_88 = arith.constant 64 : index
    %c0_89 = arith.constant 0 : index
    %118 = vector.load %arg14[%c64_88, %c0_89] : memref<288x256xf32, #tpu.memory_space<vmem>>, vector<32x256xf32>
    tpu.vector_store %arg14[%c64_88, %c0_89], %117 {strides = array<i32>} : memref<288x256xf32, #tpu.memory_space<vmem>>, vector<32x256xf32>,
    %c1_i32_90 = arith.constant 1 : i32
    %119 = tpu.dynamic_rotate %103 by %c1_i32_90 dim 1 : vector<32x256xf32>, i32 -> vector<32x256xf32>
    %c3_91 = arith.constant 3 : index
    %c0_92 = arith.constant 0 : index
    %120 = vector.load %arg2[%c3_91, %c0_92] : memref<9x256xf32, #tpu.memory_space<vmem>>, vector<1x256xf32>
    %121 = vector.broadcast %120 : vector<1x256xf32> to vector<32x256xf32>
    %122 = arith.mulf %119, %121 : vector<32x256xf32>
    %c96_93 = arith.constant 96 : index
    %c0_94 = arith.constant 0 : index
    %123 = vector.load %arg14[%c96_93, %c0_94] : memref<288x256xf32, #tpu.memory_space<vmem>>, vector<32x256xf32>
    tpu.vector_store %arg14[%c96_93, %c0_94], %122 {strides = array<i32>} : memref<288x256xf32, #tpu.memory_space<vmem>>, vector<32x256xf32>,
    %c4_95 = arith.constant 4 : index
    %c0_96 = arith.constant 0 : index
    %124 = vector.load %arg2[%c4_95, %c0_96] : memref<9x256xf32, #tpu.memory_space<vmem>>, vector<1x256xf32>
    %125 = vector.broadcast %124 : vector<1x256xf32> to vector<32x256xf32>
    %126 = arith.mulf %103, %125 : vector<32x256xf32>
    %c128_97 = arith.constant 128 : index
    %c0_98 = arith.constant 0 : index
    %127 = vector.load %arg14[%c128_97, %c0_98] : memref<288x256xf32, #tpu.memory_space<vmem>>, vector<32x256xf32>
    tpu.vector_store %arg14[%c128_97, %c0_98], %126 {strides = array<i32>} : memref<288x256xf32, #tpu.memory_space<vmem>>, vector<32x256xf32>,
    %c255_i32_99 = arith.constant 255 : i32
    %128 = tpu.dynamic_rotate %103 by %c255_i32_99 dim 1 : vector<32x256xf32>, i32 -> vector<32x256xf32>
    %c5_100 = arith.constant 5 : index
    %c0_101 = arith.constant 0 : index
    %129 = vector.load %arg2[%c5_100, %c0_101] : memref<9x256xf32, #tpu.memory_space<vmem>>, vector<1x256xf32>
    %130 = vector.broadcast %129 : vector<1x256xf32> to vector<32x256xf32>
    %131 = arith.mulf %128, %130 : vector<32x256xf32>
    %c160_102 = arith.constant 160 : index
    %c0_103 = arith.constant 0 : index
    %132 = vector.load %arg14[%c160_102, %c0_103] : memref<288x256xf32, #tpu.memory_space<vmem>>, vector<32x256xf32>
    tpu.vector_store %arg14[%c160_102, %c0_103], %131 {strides = array<i32>} : memref<288x256xf32, #tpu.memory_space<vmem>>, vector<32x256xf32>,
    %c241_i32_104 = arith.constant 241 : i32
    %133 = tpu.dynamic_rotate %103 by %c241_i32_104 dim 1 : vector<32x256xf32>, i32 -> vector<32x256xf32>
    %c6_105 = arith.constant 6 : index
    %c0_106 = arith.constant 0 : index
    %134 = vector.load %arg2[%c6_105, %c0_106] : memref<9x256xf32, #tpu.memory_space<vmem>>, vector<1x256xf32>
    %135 = vector.broadcast %134 : vector<1x256xf32> to vector<32x256xf32>
    %136 = arith.mulf %133, %135 : vector<32x256xf32>
    %c192_107 = arith.constant 192 : index
    %c0_108 = arith.constant 0 : index
    %137 = vector.load %arg14[%c192_107, %c0_108] : memref<288x256xf32, #tpu.memory_space<vmem>>, vector<32x256xf32>
    tpu.vector_store %arg14[%c192_107, %c0_108], %136 {strides = array<i32>} : memref<288x256xf32, #tpu.memory_space<vmem>>, vector<32x256xf32>,
    %c240_i32_109 = arith.constant 240 : i32
    %138 = tpu.dynamic_rotate %103 by %c240_i32_109 dim 1 : vector<32x256xf32>, i32 -> vector<32x256xf32>
    %c7_110 = arith.constant 7 : index
    %c0_111 = arith.constant 0 : index
    %139 = vector.load %arg2[%c7_110, %c0_111] : memref<9x256xf32, #tpu.memory_space<vmem>>, vector<1x256xf32>
    %140 = vector.broadcast %139 : vector<1x256xf32> to vector<32x256xf32>
    %141 = arith.mulf %138, %140 : vector<32x256xf32>
    %c224_112 = arith.constant 224 : index
    %c0_113 = arith.constant 0 : index
    %142 = vector.load %arg14[%c224_112, %c0_113] : memref<288x256xf32, #tpu.memory_space<vmem>>, vector<32x256xf32>
    tpu.vector_store %arg14[%c224_112, %c0_113], %141 {strides = array<i32>} : memref<288x256xf32, #tpu.memory_space<vmem>>, vector<32x256xf32>,
    %c239_i32_114 = arith.constant 239 : i32
    %143 = tpu.dynamic_rotate %103 by %c239_i32_114 dim 1 : vector<32x256xf32>, i32 -> vector<32x256xf32>
    %c8_115 = arith.constant 8 : index
    %c0_116 = arith.constant 0 : index
    %144 = vector.load %arg2[%c8_115, %c0_116] : memref<9x256xf32, #tpu.memory_space<vmem>>, vector<1x256xf32>
    %145 = vector.broadcast %144 : vector<1x256xf32> to vector<32x256xf32>
    %146 = arith.mulf %143, %145 : vector<32x256xf32>
    %c256_117 = arith.constant 256 : index
    %c0_118 = arith.constant 0 : index
    %147 = vector.load %arg14[%c256_117, %c0_118] : memref<288x256xf32, #tpu.memory_space<vmem>>, vector<32x256xf32>
    tpu.vector_store %arg14[%c256_117, %c0_118], %146 {strides = array<i32>} : memref<288x256xf32, #tpu.memory_space<vmem>>, vector<32x256xf32>,
    %c0_119 = arith.constant 0 : index
    %c0_120 = arith.constant 0 : index
    %148 = vector.load %arg7[%c0_119, %c0_120] : memref<32x288xf32, #tpu.memory_space<vmem>>, vector<32x288xf32>
    %c0_121 = arith.constant 0 : index
    %c0_122 = arith.constant 0 : index
    %149 = vector.load %arg14[%c0_121, %c0_122] : memref<288x256xf32, #tpu.memory_space<vmem>>, vector<288x256xf32>
    %cst_123 = arith.constant dense<0.000000e+00> : vector<32x256xf32>
    %150 = tpu.matmul %148, %149, %cst_123 {dimension_numbers = #tpu.dot_dimension_numbers<[1], [0], [0], [1], [0, 0, 1, 1], [], []>} : vector<32x288xf32>, vector<288x256xf32>, vector<32x256xf32> -> vector<32x256xf32>
    %c0_124 = arith.constant 0 : index
    %c0_125 = arith.constant 0 : index
    %151 = vector.load %arg8[%c0_124, %c0_125] : memref<32x1xf32, #tpu.memory_space<vmem>>, vector<32x1xf32>
    %152 = vector.broadcast %151 : vector<32x1xf32> to vector<32x256xf32>
    %153 = arith.addf %150, %152 : vector<32x256xf32>
    %cst_126 = arith.constant 0.000000e+00 : f32
    %154 = vector.broadcast %cst_126 : f32 to vector<32x256xf32>
    %155 = arith.maximumf %153, %154 : vector<32x256xf32>
    %c17_i32_127 = arith.constant 17 : i32
    %156 = tpu.dynamic_rotate %155 by %c17_i32_127 dim 1 : vector<32x256xf32>, i32 -> vector<32x256xf32>
    %c0_128 = arith.constant 0 : index
    %c0_129 = arith.constant 0 : index
    %157 = vector.load %arg2[%c0_128, %c0_129] : memref<9x256xf32, #tpu.memory_space<vmem>>, vector<1x256xf32>
    %158 = vector.broadcast %157 : vector<1x256xf32> to vector<32x256xf32>
    %159 = arith.mulf %156, %158 : vector<32x256xf32>
    %c0_130 = arith.constant 0 : index
    %c0_131 = arith.constant 0 : index
    %160 = vector.load %arg14[%c0_130, %c0_131] : memref<288x256xf32, #tpu.memory_space<vmem>>, vector<32x256xf32>
    tpu.vector_store %arg14[%c0_130, %c0_131], %159 {strides = array<i32>} : memref<288x256xf32, #tpu.memory_space<vmem>>, vector<32x256xf32>,
    %c16_i32_132 = arith.constant 16 : i32
    %161 = tpu.dynamic_rotate %155 by %c16_i32_132 dim 1 : vector<32x256xf32>, i32 -> vector<32x256xf32>
    %c1_133 = arith.constant 1 : index
    %c0_134 = arith.constant 0 : index
    %162 = vector.load %arg2[%c1_133, %c0_134] : memref<9x256xf32, #tpu.memory_space<vmem>>, vector<1x256xf32>
    %163 = vector.broadcast %162 : vector<1x256xf32> to vector<32x256xf32>
    %164 = arith.mulf %161, %163 : vector<32x256xf32>
    %c32_135 = arith.constant 32 : index
    %c0_136 = arith.constant 0 : index
    %165 = vector.load %arg14[%c32_135, %c0_136] : memref<288x256xf32, #tpu.memory_space<vmem>>, vector<32x256xf32>
    tpu.vector_store %arg14[%c32_135, %c0_136], %164 {strides = array<i32>} : memref<288x256xf32, #tpu.memory_space<vmem>>, vector<32x256xf32>,
    %c15_i32_137 = arith.constant 15 : i32
    %166 = tpu.dynamic_rotate %155 by %c15_i32_137 dim 1 : vector<32x256xf32>, i32 -> vector<32x256xf32>
    %c2_138 = arith.constant 2 : index
    %c0_139 = arith.constant 0 : index
    %167 = vector.load %arg2[%c2_138, %c0_139] : memref<9x256xf32, #tpu.memory_space<vmem>>, vector<1x256xf32>
    %168 = vector.broadcast %167 : vector<1x256xf32> to vector<32x256xf32>
    %169 = arith.mulf %166, %168 : vector<32x256xf32>
    %c64_140 = arith.constant 64 : index
    %c0_141 = arith.constant 0 : index
    %170 = vector.load %arg14[%c64_140, %c0_141] : memref<288x256xf32, #tpu.memory_space<vmem>>, vector<32x256xf32>
    tpu.vector_store %arg14[%c64_140, %c0_141], %169 {strides = array<i32>} : memref<288x256xf32, #tpu.memory_space<vmem>>, vector<32x256xf32>,
    %c1_i32_142 = arith.constant 1 : i32
    %171 = tpu.dynamic_rotate %155 by %c1_i32_142 dim 1 : vector<32x256xf32>, i32 -> vector<32x256xf32>
    %c3_143 = arith.constant 3 : index
    %c0_144 = arith.constant 0 : index
    %172 = vector.load %arg2[%c3_143, %c0_144] : memref<9x256xf32, #tpu.memory_space<vmem>>, vector<1x256xf32>
    %173 = vector.broadcast %172 : vector<1x256xf32> to vector<32x256xf32>
    %174 = arith.mulf %171, %173 : vector<32x256xf32>
    %c96_145 = arith.constant 96 : index
    %c0_146 = arith.constant 0 : index
    %175 = vector.load %arg14[%c96_145, %c0_146] : memref<288x256xf32, #tpu.memory_space<vmem>>, vector<32x256xf32>
    tpu.vector_store %arg14[%c96_145, %c0_146], %174 {strides = array<i32>} : memref<288x256xf32, #tpu.memory_space<vmem>>, vector<32x256xf32>,
    %c4_147 = arith.constant 4 : index
    %c0_148 = arith.constant 0 : index
    %176 = vector.load %arg2[%c4_147, %c0_148] : memref<9x256xf32, #tpu.memory_space<vmem>>, vector<1x256xf32>
    %177 = vector.broadcast %176 : vector<1x256xf32> to vector<32x256xf32>
    %178 = arith.mulf %155, %177 : vector<32x256xf32>
    %c128_149 = arith.constant 128 : index
    %c0_150 = arith.constant 0 : index
    %179 = vector.load %arg14[%c128_149, %c0_150] : memref<288x256xf32, #tpu.memory_space<vmem>>, vector<32x256xf32>
    tpu.vector_store %arg14[%c128_149, %c0_150], %178 {strides = array<i32>} : memref<288x256xf32, #tpu.memory_space<vmem>>, vector<32x256xf32>,
    %c255_i32_151 = arith.constant 255 : i32
    %180 = tpu.dynamic_rotate %155 by %c255_i32_151 dim 1 : vector<32x256xf32>, i32 -> vector<32x256xf32>
    %c5_152 = arith.constant 5 : index
    %c0_153 = arith.constant 0 : index
    %181 = vector.load %arg2[%c5_152, %c0_153] : memref<9x256xf32, #tpu.memory_space<vmem>>, vector<1x256xf32>
    %182 = vector.broadcast %181 : vector<1x256xf32> to vector<32x256xf32>
    %183 = arith.mulf %180, %182 : vector<32x256xf32>
    %c160_154 = arith.constant 160 : index
    %c0_155 = arith.constant 0 : index
    %184 = vector.load %arg14[%c160_154, %c0_155] : memref<288x256xf32, #tpu.memory_space<vmem>>, vector<32x256xf32>
    tpu.vector_store %arg14[%c160_154, %c0_155], %183 {strides = array<i32>} : memref<288x256xf32, #tpu.memory_space<vmem>>, vector<32x256xf32>,
    %c241_i32_156 = arith.constant 241 : i32
    %185 = tpu.dynamic_rotate %155 by %c241_i32_156 dim 1 : vector<32x256xf32>, i32 -> vector<32x256xf32>
    %c6_157 = arith.constant 6 : index
    %c0_158 = arith.constant 0 : index
    %186 = vector.load %arg2[%c6_157, %c0_158] : memref<9x256xf32, #tpu.memory_space<vmem>>, vector<1x256xf32>
    %187 = vector.broadcast %186 : vector<1x256xf32> to vector<32x256xf32>
    %188 = arith.mulf %185, %187 : vector<32x256xf32>
    %c192_159 = arith.constant 192 : index
    %c0_160 = arith.constant 0 : index
    %189 = vector.load %arg14[%c192_159, %c0_160] : memref<288x256xf32, #tpu.memory_space<vmem>>, vector<32x256xf32>
    tpu.vector_store %arg14[%c192_159, %c0_160], %188 {strides = array<i32>} : memref<288x256xf32, #tpu.memory_space<vmem>>, vector<32x256xf32>,
    %c240_i32_161 = arith.constant 240 : i32
    %190 = tpu.dynamic_rotate %155 by %c240_i32_161 dim 1 : vector<32x256xf32>, i32 -> vector<32x256xf32>
    %c7_162 = arith.constant 7 : index
    %c0_163 = arith.constant 0 : index
    %191 = vector.load %arg2[%c7_162, %c0_163] : memref<9x256xf32, #tpu.memory_space<vmem>>, vector<1x256xf32>
    %192 = vector.broadcast %191 : vector<1x256xf32> to vector<32x256xf32>
    %193 = arith.mulf %190, %192 : vector<32x256xf32>
    %c224_164 = arith.constant 224 : index
    %c0_165 = arith.constant 0 : index
    %194 = vector.load %arg14[%c224_164, %c0_165] : memref<288x256xf32, #tpu.memory_space<vmem>>, vector<32x256xf32>
    tpu.vector_store %arg14[%c224_164, %c0_165], %193 {strides = array<i32>} : memref<288x256xf32, #tpu.memory_space<vmem>>, vector<32x256xf32>,
    %c239_i32_166 = arith.constant 239 : i32
    %195 = tpu.dynamic_rotate %155 by %c239_i32_166 dim 1 : vector<32x256xf32>, i32 -> vector<32x256xf32>
    %c8_167 = arith.constant 8 : index
    %c0_168 = arith.constant 0 : index
    %196 = vector.load %arg2[%c8_167, %c0_168] : memref<9x256xf32, #tpu.memory_space<vmem>>, vector<1x256xf32>
    %197 = vector.broadcast %196 : vector<1x256xf32> to vector<32x256xf32>
    %198 = arith.mulf %195, %197 : vector<32x256xf32>
    %c256_169 = arith.constant 256 : index
    %c0_170 = arith.constant 0 : index
    %199 = vector.load %arg14[%c256_169, %c0_170] : memref<288x256xf32, #tpu.memory_space<vmem>>, vector<32x256xf32>
    tpu.vector_store %arg14[%c256_169, %c0_170], %198 {strides = array<i32>} : memref<288x256xf32, #tpu.memory_space<vmem>>, vector<32x256xf32>,
    %c0_171 = arith.constant 0 : index
    %c0_172 = arith.constant 0 : index
    %200 = vector.load %arg9[%c0_171, %c0_172] : memref<32x288xf32, #tpu.memory_space<vmem>>, vector<32x288xf32>
    %c0_173 = arith.constant 0 : index
    %c0_174 = arith.constant 0 : index
    %201 = vector.load %arg14[%c0_173, %c0_174] : memref<288x256xf32, #tpu.memory_space<vmem>>, vector<288x256xf32>
    %cst_175 = arith.constant dense<0.000000e+00> : vector<32x256xf32>
    %202 = tpu.matmul %200, %201, %cst_175 {dimension_numbers = #tpu.dot_dimension_numbers<[1], [0], [0], [1], [0, 0, 1, 1], [], []>} : vector<32x288xf32>, vector<288x256xf32>, vector<32x256xf32> -> vector<32x256xf32>
    %c0_176 = arith.constant 0 : index
    %c0_177 = arith.constant 0 : index
    %203 = vector.load %arg10[%c0_176, %c0_177] : memref<32x1xf32, #tpu.memory_space<vmem>>, vector<32x1xf32>
    %204 = vector.broadcast %203 : vector<32x1xf32> to vector<32x256xf32>
    %205 = arith.addf %202, %204 : vector<32x256xf32>
    %206 = arith.addf %153, %103 : vector<32x256xf32>
    %c0_178 = arith.constant 0 : index
    %c0_179 = arith.constant 0 : index
    %c0_180 = arith.constant 0 : index
    %207 = vector.load %arg11[%c0_178, %c0_179, %c0_180] : memref<1x32x256xf32, #tpu.memory_space<vmem>>, vector<1x32x256xf32>
    %208 = vector.shape_cast %207 : vector<1x32x256xf32> to vector<32x256xf32>
    %209 = vector.shape_cast %206 : vector<32x256xf32> to vector<1x32x256xf32>
    tpu.vector_store %arg11[%c0_178, %c0_179, %c0_180], %209 {strides = array<i32>} : memref<1x32x256xf32, #tpu.memory_space<vmem>>, vector<1x32x256xf32>,
    %210 = arith.addf %155, %103 : vector<32x256xf32>
    %c0_181 = arith.constant 0 : index
    %c0_182 = arith.constant 0 : index
    %c0_183 = arith.constant 0 : index
    %211 = vector.load %arg12[%c0_181, %c0_182, %c0_183] : memref<1x32x256xf32, #tpu.memory_space<vmem>>, vector<1x32x256xf32>
    %212 = vector.shape_cast %211 : vector<1x32x256xf32> to vector<32x256xf32>
    %213 = vector.shape_cast %210 : vector<32x256xf32> to vector<1x32x256xf32>
    tpu.vector_store %arg12[%c0_181, %c0_182, %c0_183], %213 {strides = array<i32>} : memref<1x32x256xf32, #tpu.memory_space<vmem>>, vector<1x32x256xf32>,
    %214 = arith.addf %205, %103 : vector<32x256xf32>
    %c0_184 = arith.constant 0 : index
    %c0_185 = arith.constant 0 : index
    %c0_186 = arith.constant 0 : index
    %215 = vector.load %arg13[%c0_184, %c0_185, %c0_186] : memref<1x32x256xf32, #tpu.memory_space<vmem>>, vector<1x32x256xf32>
    %216 = vector.shape_cast %215 : vector<1x32x256xf32> to vector<32x256xf32>
    %217 = vector.shape_cast %214 : vector<32x256xf32> to vector<1x32x256xf32>
    tpu.vector_store %arg13[%c0_184, %c0_185, %c0_186], %217 {strides = array<i32>} : memref<1x32x256xf32, #tpu.memory_space<vmem>>, vector<1x32x256xf32>,
    return
  }
  func.func @transform_0(%arg0: i32) -> (i32, i32, i32) {
    %c0_i32 = arith.constant 0 : i32
    %c0_i32_0 = arith.constant 0 : i32
    %c0_i32_1 = arith.constant 0 : i32
    return %arg0, %c0_i32, %c0_i32_0 : i32, i32, i32
  }
  func.func @transform_1(%arg0: i32) -> (i32, i32) {
    %c0_i32 = arith.constant 0 : i32
    %c0_i32_0 = arith.constant 0 : i32
    %c0_i32_1 = arith.constant 0 : i32
    return %c0_i32, %c0_i32_0 : i32, i32
  }
  func.func @transform_2(%arg0: i32) -> (i32, i32) {
    %c0_i32 = arith.constant 0 : i32
    %c0_i32_0 = arith.constant 0 : i32
    %c0_i32_1 = arith.constant 0 : i32
    return %c0_i32, %c0_i32_0 : i32, i32
  }
  func.func @transform_3(%arg0: i32) -> (i32, i32) {
    %c0_i32 = arith.constant 0 : i32
    %c0_i32_0 = arith.constant 0 : i32
    %c0_i32_1 = arith.constant 0 : i32
    return %c0_i32, %c0_i32_0 : i32, i32
  }
  func.func @transform_4(%arg0: i32) -> (i32, i32) {
    %c0_i32 = arith.constant 0 : i32
    %c0_i32_0 = arith.constant 0 : i32
    %c0_i32_1 = arith.constant 0 : i32
    return %c0_i32, %c0_i32_0 : i32, i32
  }
  func.func @transform_5(%arg0: i32) -> (i32, i32) {
    %c0_i32 = arith.constant 0 : i32
    %c0_i32_0 = arith.constant 0 : i32
    %c0_i32_1 = arith.constant 0 : i32
    return %c0_i32, %c0_i32_0 : i32, i32
  }
  func.func @transform_6(%arg0: i32) -> (i32, i32) {
    %c0_i32 = arith.constant 0 : i32
    %c0_i32_0 = arith.constant 0 : i32
    %c0_i32_1 = arith.constant 0 : i32
    return %c0_i32, %c0_i32_0 : i32, i32
  }
  func.func @transform_7(%arg0: i32) -> (i32, i32) {
    %c0_i32 = arith.constant 0 : i32
    %c0_i32_0 = arith.constant 0 : i32
    %c0_i32_1 = arith.constant 0 : i32
    return %c0_i32, %c0_i32_0 : i32, i32
  }
  func.func @transform_8(%arg0: i32) -> (i32, i32) {
    %c0_i32 = arith.constant 0 : i32
    %c0_i32_0 = arith.constant 0 : i32
    %c0_i32_1 = arith.constant 0 : i32
    return %c0_i32, %c0_i32_0 : i32, i32
  }
  func.func @transform_9(%arg0: i32) -> (i32, i32) {
    %c0_i32 = arith.constant 0 : i32
    %c0_i32_0 = arith.constant 0 : i32
    %c0_i32_1 = arith.constant 0 : i32
    return %c0_i32, %c0_i32_0 : i32, i32
  }
  func.func @transform_10(%arg0: i32) -> (i32, i32, i32) {
    %c0_i32 = arith.constant 0 : i32
    %c0_i32_0 = arith.constant 0 : i32
    %c0_i32_1 = arith.constant 0 : i32
    return %arg0, %c0_i32, %c0_i32_0 : i32, i32, i32
  }
  func.func @transform_11(%arg0: i32) -> (i32, i32, i32) {
    %c0_i32 = arith.constant 0 : i32
    %c0_i32_0 = arith.constant 0 : i32
    %c0_i32_1 = arith.constant 0 : i32
    return %arg0, %c0_i32, %c0_i32_0 : i32, i32, i32
  }
  func.func @transform_12(%arg0: i32) -> (i32, i32, i32) {
    %c0_i32 = arith.constant 0 : i32
    %c0_i32_0 = arith.constant 0 : i32
    %c0_i32_1 = arith.constant 0 : i32
    return %arg0, %c0_i32, %c0_i32_0 : i32, i32, i32
  }
}

</mosaic_0001>

<bundles_post_ra>
// kernel: _lambda_.1
= control target key start
LH: loop header
LB: loop body
LE: loop exit
PB: predicated region body
PF: predicated region fallthrough
CT: control target
= control target key end

     0   :  { %s3683_s21 = smov 0   ;;  %s5524_s0 = inlined_call_operand.vmem [shape: f32[2,4,256], index: 0, kind: input, shape index: {}]   ;;  %s5525_s1 = inlined_call_operand.vmem [shape: f32[9,256], index: 1, kind: input, shape index: {}]   ;;  %s5526_s2 = inlined_call_operand.vmem [shape: f32[32,36], index: 2, kind: input, shape index: {}]   ;;  %s5527_s3 = inlined_call_operand.vmem [shape: f32[32,1], index: 3, kind: input, shape index: {}]   ;;  %s5528_s4 = inlined_call_operand.vmem [shape: f32[32,288], index: 4, kind: input, shape index: {}]   ;;  %s5529_s5 = inlined_call_operand.vmem [shape: f32[32,1], index: 5, kind: input, shape index: {}]   ;;  %s5530_s6 = inlined_call_operand.vmem [shape: f32[32,288], index: 6, kind: input, shape index: {}]   ;;  %s5531_s7 = inlined_call_operand.vmem [shape: f32[32,1], index: 7, kind: input, shape index: {}]   ;;  %s5532_s8 = inlined_call_operand.vmem [shape: f32[32,288], index: 8, kind: input, shape index: {}]   ;;  %s5533_s9 = inlined_call_operand.vmem [shape: f32[32,1], index: 9, kind: input, shape index: {}]   ;;  %s5534_s10 = inlined_call_operand.vmem [shape: f32[2,32,256], index: 10, kind: output, shape index: {0}]   ;;  %s5535_s11 = inlined_call_operand.vmem [shape: f32[2,32,256], index: 11, kind: output, shape index: {1}]   ;;  %s5536_s12 = inlined_call_operand.vmem [shape: f32[2,32,256], index: 12, kind: output, shape index: {2}]  }
   0x1 LB: > { %s3238_s22 = sadd.s32 4294967295, %s3606_s21   ;;  %p3242_p0 = scmp.ge.s32.totalorder %s3606_s21, 1  ;;  %s3606_s21 = sphi %s3683_s21, %s23_s21  }
   0x2   : > { %p367_p1 = scmp.lt.s32.totalorder %s3606_s21, 3 }
   0x4   : > { %p368_p2 = pnand %p3242_p0, %p367_p1 }
   0x6   : > { %371 = sbr.rel (%p368_p2) target bundleno = 1809 (0x711), region = 60 }
   0xd   : > { %p419_p3 = scmp.lt.s32.totalorder %s3238_s22, 1  ;;  %v447_v0 = vlaneseq  ;;  %v3254_v5 = vld [vmem:[%s5525_s1 + $0x4] ss:$8 sm:$0x3]  ;;  %s3608_s29 = smov 1   ;;  %v5537_v12 = vmov 0.0  }
   0xe   : > { %s3609_s30 = smov 16   ;;  %s3610_s13 = smov 17   ;;  %801 = vmatprep.mubr.f32.mxu0 %v5537_v12  ;;  %v694_v13 = vld [vmem:[%s5527_s3 + $0x8] sm:$0xff]  ;;  %v693_v14 = vld [vmem:[%s5527_s3] sm:$0xff]  ;;  %v3617_v15 = vmov 0   ;;  %v695_v16 = vld [vmem:[%s5527_s3 + $0x10] sm:$0xff] }
   0xf   : > { %s5575_s22 = smov (!%p419_p3, %s3238_s22), 1  ;;  %v455_v1 = vshrl.u32 %v447_v0, 7  ;;  %s3611_s14 = smov 15   ;;  %3598 = vset.pattern.permute.xlu1 %v3617_v15  ;;  %3597 = vset.pattern.permute.xlu0 %v3617_v15  ;;  %v696_v17 = vld [vmem:[%s5527_s3 + $0x18] sm:$0xff]  ;;  %v3735_v18 = vand.u32 127, %v447_v0  ;;  %vm730_vm8 = vcmask 1043456  }
  0x10   : > { %s3303_s23 = sshll.u32 %s5575_s22, 3  ;;  %s3612_s15 = smov 127   ;;  %v3253_v19 = vld [vmem:[%s5525_s1 + $0x3] ss:$8 sm:$0x3]  ;;  %vm717_vm9 = vcmask 293888  }
  0x11   : > { %s423_s26 = scalar_lea.vmem %s5524_s0, %s3303_s23  ;;  %v3697_v3 = vsub.s32 0, %v455_v1  ;;  %v3699_v4 = vsub.s32 1, %v455_v1  ;;  %s3613_s16 = smov 112   ;;  %vm526_vm0 = vcmp.lt.s32.totalorder %v3735_v18, 1  ;;  %vm449_vm1 = vcmp.lt.s32.totalorder %v3735_v18, 17 }
  0x12   : > { %v439_v2 = vld [vmem:[%s423_s26] sm:$0xff]  ;;  %s3614_s17 = smov 113   ;;  %s3615_s18 = smov 111   ;;  %vm472_vm2 = vcmp.lt.s32.totalorder %v3735_v18, 16  ;;  %vm502_vm3 = vcmp.lt.s32.totalorder %v3735_v18, 15  ;;  %vm575_vm4 = vcmp.lt.s32.totalorder %v3735_v18, 127 }
  0x13   : > { %522 = vrot.lane.b32.xlu1 %v439_v2, %s3608_s29  ;;  %468 = vrot.lane.b32.xlu0 %v439_v2, %s3609_s30  ;;  %v441_v6 = vcombine.high %v439_v2, %v439_v2  ;;  %v558_v7 = vrot.slane %v3254_v5, %v3697_v3  ;;  %v562_v8 = vrot.slane %v3254_v5, %v3699_v4  ;;  %v452_v24 = vld [vmem:[%s5525_s1] ss:$8 sm:$0x3]  ;;  %v3251_v25 = vld [vmem:[%s5525_s1 + $0x1] ss:$8 sm:$0x3] }
  0x14   : > { %v535_v22 = vrot.slane %v3253_v19, %v3697_v3  ;;  %v539_v23 = vrot.slane %v3253_v19, %v3699_v4  ;;  %v457_v30 = vrot.slane %v452_v24, %v3697_v3  ;;  %v461_v31 = vrot.slane %v452_v24, %v3699_v4  ;;  %v3252_v32 = vld [vmem:[%s5525_s1 + $0x2] ss:$8 sm:$0x3]  ;;  %v3255_v51 = vld [vmem:[%s5525_s1 + $0x5] ss:$8 sm:$0x3] }
  0x15   : > { %v563_v9 = vcombine.low %v558_v7, %v562_v8  ;;  %v481_v35 = vrot.slane %v3251_v25, %v3697_v3  ;;  %v485_v36 = vrot.slane %v3251_v25, %v3699_v4  ;;  %v511_v41 = vrot.slane %v3252_v32, %v3697_v3  ;;  %v3257_v62 = vld [vmem:[%s5525_s1 + $0x7] ss:$8 sm:$0x3]  ;;  %s4822_s25 = sshll.u32 %s5575_s22, 6 }
  0x16   : > { %v515_v42 = vrot.slane %v3252_v32, %v3699_v4  ;;  %v584_v60 = vrot.slane %v3255_v51, %v3697_v3  ;;  %v588_v61 = vrot.slane %v3255_v51, %v3699_v4  ;;  %vm629_vm5 = vcmp.lt.s32.totalorder %v3735_v18, 112  ;;  %s4828_s28 = scalar_lea.vmem %s5534_s10, %s4822_s25  ;;  %s4837_s20 = scalar_lea.vmem %s5535_s11, %s4822_s25 }
  0x17   : > { %443 = vrot.lane.b32.xlu0 %v439_v2, %s3610_s13  ;;  %524 = vrot.lane.b32.xlu1 %v441_v6, %s3608_s29  ;;  %v565_v10 = vmul.f32 %v563_v9, %v439_v2  ;;  %v638_v7 = vrot.slane %v3257_v62, %v3697_v3  ;;  %v642_v8 = vrot.slane %v3257_v62, %v3699_v4  ;;  %v3256_v9 = vld [vmem:[%s5525_s1 + $0x6] ss:$8 sm:$0x3]  ;;  %vm605_vm6 = vcmp.lt.s32.totalorder %v3735_v18, 113 }
  0x18   : > { %vm659_vm7 = vcmp.lt.s32.totalorder %v3735_v18, 111  ;;  %vm1378_vm10 = vcmask 261120   ;;  %v2775_v18 = vld [vmem:[%s5532_s8 + $0x20] sm:$0xff] }
  0x19   : > { %v567_v11 = vcombine.high %v565_v10, %v565_v10  ;;  %569 = vst [vmem:[#allocation3 + $0x20] sm:$0xf] %v565_v10 }
  0x1b   : > { %445 = vrot.lane.b32.xlu1 %v441_v6, %s3610_s13  ;;  %470 = vrot.lane.b32.xlu0 %v441_v6, %s3609_s30  ;;  %570 = vst [vmem:[#allocation3 + $0x28] sm:$0xf] %v567_v11 }
  0x1f   : > { %500 = vrot.lane.b32.xlu1 %v441_v6, %s3611_s14  ;;  %498 = vrot.lane.b32.xlu0 %v439_v2, %s3611_s14 }
  0x23   : > { %573 = vrot.lane.b32.xlu1 %v441_v6, %s3612_s15  ;;  %571 = vrot.lane.b32.xlu0 %v439_v2, %s3612_s15 }
  0x27   : > { %627 = vrot.lane.b32.xlu1 %v441_v6, %s3613_s16  ;;  %625 = vrot.lane.b32.xlu0 %v439_v2, %s3613_s16 }
  0x2b   : > { %603 = vrot.lane.b32.xlu1 %v441_v6, %s3614_s17  ;;  %601 = vrot.lane.b32.xlu0 %v439_v2, %s3614_s17 }
  0x2f   : > { %657 = vrot.lane.b32.xlu1 %v441_v6, %s3615_s18  ;;  %655 = vrot.lane.b32.xlu0 %v439_v2, %s3615_s18 }
  0x33   : > { %704 = vperm.xlu1 %3598, %v694_v13   ;;  %699 = vperm.xlu0 %3597, %v693_v14  }
  0x37   : > { %709 = vperm.xlu1 %3598, %v695_v16   ;;  %714 = vperm.xlu0 %3597, %v696_v17  }
  0x85   : > { %v523_v20 = vpop.permute.xlu1 %522  ;;  %v469_v21 = vpop.permute.xlu0 %468 }
  0x89   : > { %v444_v26 = vpop.permute.xlu0 %443  ;;  %v525_v27 = vpop.permute.xlu1 %524 }
  0x8a   : > { %v527_v28 = vsel %vm526_vm0, %v523_v20, %v525_v27  ;;  %v528_v29 = vsel %vm526_vm0, %v525_v27, %v523_v20  ;;  %v614_v20 = vrot.slane %v3256_v9, %v3697_v3 }
  0x8b   : > { %v542_v33 = vmul.f32 %v535_v22, %v528_v29  ;;  %v543_v34 = vmul.f32 %v539_v23, %v527_v28  ;;  %v3258_v23 = vld [vmem:[%s5525_s1 + $0x10] ss:$8 sm:$0x3] }
  0x8d   : > { %v546_v37 = vrot.slane %v542_v33, 4  ;;  %v547_v38 = vrot.slane %v543_v34, 4  ;;  %v446_v39 = vpop.permute.xlu1 %445  ;;  %v471_v40 = vpop.permute.xlu0 %470 }
  0x8e   : > { %v450_v43 = vsel %vm449_vm1, %v444_v26, %v446_v39  ;;  %v451_v44 = vsel %vm449_vm1, %v446_v39, %v444_v26  ;;  %v473_v45 = vsel %vm472_vm2, %v469_v21, %v471_v40  ;;  %v474_v46 = vsel %vm472_vm2, %v471_v40, %v469_v21 }
  0x8f   : > { %550 = vst [vmem:[#allocation3 + $0x10] sm:$0xf0] %v546_v37  ;;  %551 = vst [vmem:[#allocation3 + $0x18] sm:$0xf0] %v547_v38  ;;  %v464_v47 = vmul.f32 %v457_v30, %v451_v44  ;;  %v465_v48 = vmul.f32 %v461_v31, %v450_v43  ;;  %v488_v49 = vmul.f32 %v481_v35, %v474_v46 }
  0x90   : > { %v489_v50 = vmul.f32 %v485_v36, %v473_v45  ;;  %v618_v21 = vrot.slane %v3256_v9, %v3699_v4  ;;  %v668_v37 = vrot.slane %v3258_v23, %v3697_v3  ;;  %v672_v38 = vrot.slane %v3258_v23, %v3699_v4  ;;  %v1354_v23 = vld [vmem:[%s5529_s5] sm:$0xff] }
  0x91   : > { %466 = vst [vmem:[#allocation3] sm:$0xf] %v464_v47  ;;  %467 = vst [vmem:[#allocation3 + $0x8] sm:$0xf] %v465_v48  ;;  %v492_v52 = vrot.slane %v488_v49, 4  ;;  %v501_v54 = vpop.permute.xlu1 %500  ;;  %v499_v55 = vpop.permute.xlu0 %498 }
  0x92   : > { %v493_v53 = vrot.slane %v489_v50, 4  ;;  %v503_v56 = vsel %vm502_vm3, %v499_v55, %v501_v54  ;;  %v504_v57 = vsel %vm502_vm3, %v501_v54, %v499_v55  ;;  %v680_v54 = vld [vmem:[%s5526_s2 + $0x8] sm:$0xff]  ;;  %v681_v55 = vld [vmem:[%s5526_s2 + $0x10] sm:$0xff] }
  0x93   : > { %496 = vst [vmem:[#allocation3] sm:$0xf0] %v492_v52  ;;  %v518_v58 = vmul.f32 %v511_v41, %v504_v57  ;;  %v519_v59 = vmul.f32 %v515_v42, %v503_v56  ;;  %v682_v56 = vld [vmem:[%s5526_s2 + $0x18] sm:$0xff] }
  0x94   : > { %497 = vst [vmem:[#allocation3 + $0x8] sm:$0xf0] %v493_v53  ;;  %v679_v53 = vld [vmem:[%s5526_s2] sm:$0xff] }
  0x95   : > { %520 = vst [vmem:[#allocation3 + $0x10] sm:$0xf] %v518_v58  ;;  %521 = vst [vmem:[#allocation3 + $0x18] sm:$0xf] %v519_v59  ;;  %v574_v63 = vpop.permute.xlu1 %573  ;;  %v572_v0 = vpop.permute.xlu0 %571 }
  0x96   : > { %v576_v1 = vsel %vm575_vm4, %v572_v0, %v574_v63  ;;  %v577_v2 = vsel %vm575_vm4, %v574_v63, %v572_v0 }
  0x97   : > { %v591_v5 = vmul.f32 %v584_v60, %v576_v1  ;;  %v592_v6 = vmul.f32 %v588_v61, %v577_v2 }
  0x99   : > { %v595_v10 = vrot.slane %v591_v5, 4  ;;  %v596_v11 = vrot.slane %v592_v6, 4  ;;  %v628_v13 = vpop.permute.xlu1 %627  ;;  %v626_v14 = vpop.permute.xlu0 %625 }
  0x9a   : > { %v630_v15 = vsel %vm629_vm5, %v626_v14, %v628_v13  ;;  %v631_v16 = vsel %vm629_vm5, %v628_v13, %v626_v14  ;;  %v683_v25 = vld [vmem:[#allocation3] sm:$0xff] }
  0x9b   : > { %599 = vst [vmem:[#allocation3 + $0x20] sm:$0xf0] %v595_v10  ;;  %600 = vst [vmem:[#allocation3 + $0x28] sm:$0xf0] %v596_v11  ;;  %v645_v17 = vmul.f32 %v638_v7, %v630_v15  ;;  %v646_v19 = vmul.f32 %v642_v8, %v631_v16  ;;  %v684_v22 = vld [vmem:[#allocation3 + $0x8] sm:$0xff] }
  0x9c   : > { %v686_v24 = vld [vmem:[#allocation3 + $0x18] sm:$0xff]  ;;  %v685_v26 = vld [vmem:[#allocation3 + $0x10] sm:$0xff] }
  0x9d   : > { %v649_v27 = vrot.slane %v645_v17, 4  ;;  %v650_v28 = vrot.slane %v646_v19, 4  ;;  %v604_v29 = vpop.permute.xlu1 %603  ;;  %v602_v30 = vpop.permute.xlu0 %601  ;;  %v3307_v31 = vpack.c.bf16 %v686_v24, %v684_v22  ;;  %v3309_v32 = vpack.c.bf16 %v685_v26, %v683_v25  ;;  %v1356_v26 = vld [vmem:[%s5529_s5 + $0x10] sm:$0xff] }
  0x9e   : > { %v606_v33 = vsel %vm605_vm6, %v602_v30, %v604_v29  ;;  %v607_v34 = vsel %vm605_vm6, %v604_v29, %v602_v30  ;;  %v1357_v30 = vld [vmem:[%s5529_s5 + $0x18] sm:$0xff] }
  0x9f   : > { %653 = vst [vmem:[#allocation3 + $0x30] sm:$0xf0] %v649_v27  ;;  %654 = vst [vmem:[#allocation3 + $0x38] sm:$0xf0] %v650_v28  ;;  %v621_v35 = vmul.f32 %v614_v20, %v606_v33  ;;  %v622_v36 = vmul.f32 %v618_v21, %v607_v34  ;;  %3308 = vmatprep.subr.bf16.mxu0 %v3307_v31  ;;  %v1271_v20 = vld [vmem:[%s5528_s4 + $0x8] sm:$0xff] }
  0xa0   : > { %3310 = vmatpush1.bf16.msra.mxu0 %v3309_v32  ;;  %1455 = vmatprep.mubr.f32.mxu1 %v1271_v20  ;;  %v1355_v27 = vld [vmem:[%s5529_s5 + $0x8] sm:$0xff] }
  0xa1   : > { %623 = vst [vmem:[#allocation3 + $0x30] sm:$0xf] %v621_v35  ;;  %624 = vst [vmem:[#allocation3 + $0x38] sm:$0xf] %v622_v36  ;;  %v658_v39 = vpop.permute.xlu1 %657  ;;  %v656_v40 = vpop.permute.xlu0 %655 }
  0xa2   : > { %v660_v41 = vsel %vm659_vm7, %v656_v40, %v658_v39  ;;  %v661_v42 = vsel %vm659_vm7, %v658_v39, %v656_v40  ;;  %v688_v45 = vld [vmem:[#allocation3 + $0x28] sm:$0xff]  ;;  %v687_v47 = vld [vmem:[#allocation3 + $0x20] sm:$0xff] }
  0xa3   : > { %v675_v43 = vmul.f32 %v668_v37, %v660_v41  ;;  %v676_v44 = vmul.f32 %v672_v38, %v661_v42  ;;  %v850_v33 = vld [vmem:[%s5525_s1] ss:$8 sm:$0x3] }
  0xa4   : > { %v859_v36 = vrot.slane %v850_v33, %v3699_v4  ;;  %v855_v37 = vrot.slane %v850_v33, %v3697_v3 }
  0xa5   : > { %677 = vst [vmem:[#allocation3 + $0x40] sm:$0xf] %v675_v43  ;;  %678 = vst [vmem:[#allocation3 + $0x48] sm:$0xf] %v676_v44 }
  0xa8   : > { %v690_v46 = vld [vmem:[#allocation3 + $0x38] sm:$0xff]  ;;  %v689_v48 = vld [vmem:[#allocation3 + $0x30] sm:$0xff] }
  0xa9   : > { %v3311_v49 = vpack.c.bf16 %v690_v46, %v688_v45  ;;  %v3313_v50 = vpack.c.bf16 %v689_v48, %v687_v47 }
  0xab   : > { %3312 = vmatprep.subr.bf16.mxu0 %v3311_v49 }
  0xac   : > { %3314 = vmatpush1.bf16.msra.mxu0 %v3313_v50  ;;  %v692_v51 = vld [vmem:[#allocation3 + $0x48] sm:$0xf]  ;;  %v691_v52 = vld [vmem:[#allocation3 + $0x40] sm:$0xf] }
  0xad   : > { %3259 = vmatprep.subr.msk.mxu0 %vm730_vm8, %v692_v51 }
  0xb0   : > { %3260 = vmatpush1.msk.msra.mxu0 %vm730_vm8, %v691_v52 }
  0xb1   : > { %3261 = vmatmul.mubr.msk.f32.vlgmr.msra.gmra.mrb[0].mxu0 %vm717_vm9, %v679_v53 }
  0xb2   : > { %807 = vmatprep.mubr.f32.mxu0 %v5537_v12  ;;  %v700_v57 = vpop.permute.xlu0 %699  ;;  %v705_v61 = vpop.permute.xlu1 %704 }
  0xb5   : > { %3262 = vmatmul.mubr.msk.f32.gmra.mrb[2].mxu0 %vm717_vm9, %v680_v54 }
  0xb6   : > { %813 = vmatprep.mubr.f32.mxu0 %v5537_v12  ;;  %v710_v9 = vpop.permute.xlu1 %709  ;;  %v715_v11 = vpop.permute.xlu0 %714 }
  0xb9   : > { %3263 = vmatmul.mubr.msk.f32.gmra.mrb[4].mxu0 %vm717_vm9, %v681_v55 }
  0xba   : > { %819 = vmatprep.mubr.f32.mxu0 %v5537_v12 }
  0xbd   : > { %3264 = vmatmul.mubr.msk.f32.gmra.mrb[6].mxu0 %vm717_vm9, %v682_v56 }
  0xbe   : > { %1544 = vmatprep.mubr.f32.mxu0 %v5537_v12 }
 0x184   : > { %v803_v58 = vpop.f32.mrb[0].mxu0 }
 0x185   : > { %v3833_v59 = vadd.f32 %v803_v58, %v700_v57  ;;  %v805_v60 = vpop.f32.mrb[1].mxu0 }
 0x186   : > { %v3859_v7 = vadd.f32 %v805_v60, %v700_v57 }
 0x187   : > { %826 = vrot.lane.b32.xlu1 %v3833_v59, %s3610_s13 }
 0x188   : > { %v809_v62 = vpop.f32.mrb[2].mxu0 }
 0x189   : > { %v3837_v63 = vadd.f32 %v809_v62, %v705_v61  ;;  %v811_v0 = vpop.f32.mrb[3].mxu0 }
 0x18a   : > { %v3865_v8 = vadd.f32 %v811_v0, %v705_v61 }
 0x18b   : > { %828 = vrot.lane.b32.xlu0 %v3837_v63, %s3610_s13  ;;  %878 = vrot.lane.b32.xlu1 %v3833_v59, %s3609_s30 }
 0x18c   : > { %v815_v1 = vpop.f32.mrb[4].mxu0 }
 0x18d   : > { %v817_v2 = vpop.f32.mrb[5].mxu0  ;;  %v3883_v10 = vadd.f32 %v815_v1, %v710_v9 }
 0x18e   : > { %v3907_v14 = vadd.f32 %v817_v2, %v710_v9 }
 0x18f   : > { %880 = vrot.lane.b32.xlu0 %v3837_v63, %s3609_s30  ;;  %930 = vrot.lane.b32.xlu1 %v3833_v59, %s3611_s14 }
 0x190   : > { %v821_v5 = vpop.f32.mrb[6].mxu0 }
 0x191   : > { %v823_v6 = vpop.f32.mrb[7].mxu0  ;;  %v3889_v13 = vadd.f32 %v821_v5, %v715_v11 }
 0x192   : > { %v3913_v15 = vadd.f32 %v823_v6, %v715_v11  ;;  %v3265_v6 = vld [vmem:[%s5525_s1 + $0x1] ss:$8 sm:$0x3] }
 0x193   : > { %932 = vrot.lane.b32.xlu0 %v3837_v63, %s3611_s14  ;;  %982 = vrot.lane.b32.xlu1 %v3833_v59, %s3608_s29 }
 0x197   : > { %984 = vrot.lane.b32.xlu0 %v3837_v63, %s3608_s29  ;;  %1062 = vrot.lane.b32.xlu1 %v3833_v59, %s3612_s15 }
 0x19b   : > { %1064 = vrot.lane.b32.xlu0 %v3837_v63, %s3612_s15  ;;  %1114 = vrot.lane.b32.xlu1 %v3833_v59, %s3614_s17 }
 0x19f   : > { %1116 = vrot.lane.b32.xlu0 %v3837_v63, %s3614_s17  ;;  %834 = vrot.lane.b32.xlu1 %v3859_v7, %s3610_s13 }
 0x1a3   : > { %836 = vrot.lane.b32.xlu0 %v3865_v8, %s3610_s13  ;;  %886 = vrot.lane.b32.xlu1 %v3859_v7, %s3609_s30 }
 0x1a7   : > { %888 = vrot.lane.b32.xlu0 %v3865_v8, %s3609_s30  ;;  %938 = vrot.lane.b32.xlu1 %v3859_v7, %s3611_s14 }
 0x1ab   : > { %940 = vrot.lane.b32.xlu0 %v3865_v8, %s3611_s14  ;;  %990 = vrot.lane.b32.xlu1 %v3859_v7, %s3608_s29 }
 0x1af   : > { %992 = vrot.lane.b32.xlu0 %v3865_v8, %s3608_s29  ;;  %1070 = vrot.lane.b32.xlu1 %v3859_v7, %s3612_s15 }
 0x1b3   : > { %1072 = vrot.lane.b32.xlu0 %v3865_v8, %s3612_s15  ;;  %830 = vrot.lane.b32.xlu1 %v3883_v10, %s3610_s13 }
 0x1b7   : > { %882 = vrot.lane.b32.xlu1 %v3883_v10, %s3609_s30  ;;  %832 = vrot.lane.b32.xlu0 %v3889_v13, %s3610_s13 }
 0x1bb   : > { %934 = vrot.lane.b32.xlu1 %v3883_v10, %s3611_s14  ;;  %884 = vrot.lane.b32.xlu0 %v3889_v13, %s3609_s30 }
 0x1bf   : > { %986 = vrot.lane.b32.xlu1 %v3883_v10, %s3608_s29  ;;  %936 = vrot.lane.b32.xlu0 %v3889_v13, %s3611_s14 }
 0x1c3   : > { %1066 = vrot.lane.b32.xlu1 %v3883_v10, %s3612_s15  ;;  %988 = vrot.lane.b32.xlu0 %v3889_v13, %s3608_s29 }
 0x1c7   : > { %838 = vrot.lane.b32.xlu1 %v3907_v14, %s3610_s13  ;;  %1068 = vrot.lane.b32.xlu0 %v3889_v13, %s3612_s15 }
 0x1cb   : > { %1122 = vrot.lane.b32.xlu1 %v3859_v7, %s3614_s17  ;;  %840 = vrot.lane.b32.xlu0 %v3913_v15, %s3610_s13 }
 0x1cf   : > { %890 = vrot.lane.b32.xlu1 %v3907_v14, %s3609_s30  ;;  %1124 = vrot.lane.b32.xlu0 %v3865_v8, %s3614_s17 }
 0x1d3   : > { %942 = vrot.lane.b32.xlu1 %v3907_v14, %s3611_s14  ;;  %892 = vrot.lane.b32.xlu0 %v3913_v15, %s3609_s30 }
 0x1d7   : > { %994 = vrot.lane.b32.xlu1 %v3907_v14, %s3608_s29  ;;  %1120 = vrot.lane.b32.xlu0 %v3889_v13, %s3614_s17 }
 0x1db   : > { %1074 = vrot.lane.b32.xlu1 %v3907_v14, %s3612_s15  ;;  %944 = vrot.lane.b32.xlu0 %v3913_v15, %s3611_s14 }
 0x1df   : > { %1118 = vrot.lane.b32.xlu1 %v3883_v10, %s3614_s17  ;;  %1168 = vrot.lane.b32.xlu0 %v3837_v63, %s3613_s16 }
 0x1e3   : > { %1126 = vrot.lane.b32.xlu1 %v3907_v14, %s3614_s17  ;;  %996 = vrot.lane.b32.xlu0 %v3913_v15, %s3608_s29 }
 0x1e7   : > { %1166 = vrot.lane.b32.xlu1 %v3833_v59, %s3613_s16  ;;  %1176 = vrot.lane.b32.xlu0 %v3865_v8, %s3613_s16 }
 0x1eb   : > { %1174 = vrot.lane.b32.xlu1 %v3859_v7, %s3613_s16  ;;  %1220 = vrot.lane.b32.xlu0 %v3837_v63, %s3615_s18 }
 0x1ef   : > { %1218 = vrot.lane.b32.xlu1 %v3833_v59, %s3615_s18  ;;  %1228 = vrot.lane.b32.xlu0 %v3865_v8, %s3615_s18 }
 0x1f3   : > { %1226 = vrot.lane.b32.xlu1 %v3859_v7, %s3615_s18  ;;  %1076 = vrot.lane.b32.xlu0 %v3913_v15, %s3612_s15 }
 0x1f7   : > { %1170 = vrot.lane.b32.xlu1 %v3883_v10, %s3613_s16  ;;  %1172 = vrot.lane.b32.xlu0 %v3889_v13, %s3613_s16 }
 0x1f9   : > { %v827_v16 = vpop.permute.xlu1 %826 }
 0x1fb   : > { %1178 = vrot.lane.b32.xlu1 %v3907_v14, %s3613_s16  ;;  %1128 = vrot.lane.b32.xlu0 %v3913_v15, %s3614_s17 }
 0x1fd   : > { %v3967_v17 = vpop.permute.xlu1 %878  ;;  %v829_v19 = vpop.permute.xlu0 %828 }
 0x1ff   : > { %1222 = vrot.lane.b32.xlu1 %v3883_v10, %s3615_s18  ;;  %1224 = vrot.lane.b32.xlu0 %v3889_v13, %s3615_s18 }
 0x201   : > { %v3976_v21 = vpop.permute.xlu1 %930  ;;  %v3978_v22 = vpop.permute.xlu0 %880 }
 0x203   : > { %1230 = vrot.lane.b32.xlu1 %v3907_v14, %s3615_s18  ;;  %1180 = vrot.lane.b32.xlu0 %v3913_v15, %s3613_s16 }
 0x205   : > { %v3987_v24 = vpop.permute.xlu1 %982  ;;  %v3989_v25 = vpop.permute.xlu0 %932 }
 0x207   : > { %1360 = vperm.xlu1 %3598, %v1354_v23   ;;  %1232 = vrot.lane.b32.xlu0 %v3913_v15, %s3615_s18 }
 0x209   : > { %v3999_v28 = vpop.permute.xlu1 %1062  ;;  %v4001_v29 = vpop.permute.xlu0 %984 }
 0x20b   : > { %1370 = vperm.xlu1 %3598, %v1356_v26   ;;  %1365 = vperm.xlu0 %3597, %v1355_v27   ;;  %v907_v26 = vrot.slane %v3265_v6, %v3697_v3 }
 0x20d   : > { %v4006_v31 = vpop.permute.xlu1 %1114  ;;  %v4008_v32 = vpop.permute.xlu0 %1064 }
 0x20f   : > { %1375 = vperm.xlu0 %3597, %v1357_v30  }
 0x211   : > { %v835_v34 = vpop.permute.xlu1 %834  ;;  %v4013_v35 = vpop.permute.xlu0 %1116 }
 0x212   : > { %v846_v38 = vsel %vm449_vm1, %v835_v34, %v827_v16  ;;  %v842_v39 = vsel %vm449_vm1, %v827_v16, %v835_v34 }
 0x213   : > { %v863_v44 = vmul.f32 %v859_v36, %v842_v39  ;;  %v862_v46 = vmul.f32 %v855_v37, %v846_v38 }
 0x215   : > { %v887_v40 = vpop.permute.xlu1 %886  ;;  %v837_v41 = vpop.permute.xlu0 %836 }
 0x216   : > { %v847_v42 = vsel %vm449_vm1, %v837_v41, %v829_v19  ;;  %v843_v43 = vsel %vm449_vm1, %v829_v19, %v837_v41  ;;  %v911_v19 = vrot.slane %v3265_v6, %v3699_v4  ;;  %v894_v27 = vsel %vm472_vm2, %v3967_v17, %v887_v40 }
 0x217   : > { %v865_v45 = vmul.f32 %v859_v36, %v843_v43  ;;  %v864_v47 = vmul.f32 %v855_v37, %v847_v42 }
 0x219   : > { %v4025_v48 = vpop.permute.xlu1 %938  ;;  %v889_v49 = vpop.permute.xlu0 %888  ;;  %v3315_v50 = vpack.c.bf16 %v865_v45, %v863_v44  ;;  %v3317_v51 = vpack.c.bf16 %v864_v47, %v862_v46  ;;  %v898_v46 = vsel %vm472_vm2, %v887_v40, %v3967_v17  ;;  %v915_v47 = vmul.f32 %v911_v19, %v894_v27 }
 0x21a   : > { %v895_v16 = vsel %vm472_vm2, %v3978_v22, %v889_v49  ;;  %v899_v34 = vsel %vm472_vm2, %v889_v49, %v3978_v22  ;;  %v3266_v22 = vld [vmem:[%s5525_s1 + $0x2] ss:$8 sm:$0x3] }
 0x21b   : > { %3316 = vmatprep.subr.bf16.mxu1 %v3315_v50  ;;  %v917_v38 = vmul.f32 %v911_v19, %v895_v16  ;;  %v916_v49 = vmul.f32 %v907_v26, %v899_v34  ;;  %v963_v17 = vrot.slane %v3266_v22, %v3699_v4  ;;  %v959_v16 = vrot.slane %v3266_v22, %v3697_v3 }
 0x21c   : > { %3318 = vmatpush1.bf16.msra.mxu1 %v3317_v51 }
 0x21d   : > { %v4027_v52 = vpop.permute.xlu1 %990  ;;  %v941_v53 = vpop.permute.xlu0 %940 }
 0x21e   : > { %v951_v34 = vsel %vm502_vm3, %v941_v53, %v3989_v25 }
 0x221   : > { %v4029_v54 = vpop.permute.xlu1 %1070  ;;  %v4031_v55 = vpop.permute.xlu0 %992 }
 0x225   : > { %v831_v56 = vpop.permute.xlu1 %830  ;;  %v4033_v57 = vpop.permute.xlu0 %1072 }
 0x229   : > { %v883_v58 = vpop.permute.xlu1 %882  ;;  %v833_v60 = vpop.permute.xlu0 %832 }
 0x22d   : > { %v4035_v61 = vpop.permute.xlu1 %934  ;;  %v885_v62 = vpop.permute.xlu0 %884 }
 0x231   : > { %v4037_v0 = vpop.permute.xlu1 %986  ;;  %v4039_v1 = vpop.permute.xlu0 %936 }
 0x235   : > { %v4041_v2 = vpop.permute.xlu1 %1066  ;;  %v4043_v5 = vpop.permute.xlu0 %988 }
 0x239   : > { %v839_v9 = vpop.permute.xlu1 %838  ;;  %v4048_v11 = vpop.permute.xlu0 %1068 }
 0x23a   : > { %v844_v20 = vsel %vm449_vm1, %v831_v56, %v839_v9  ;;  %v848_v23 = vsel %vm449_vm1, %v839_v9, %v831_v56 }
 0x23b   : > { %v866_v42 = vmul.f32 %v855_v37, %v848_v23  ;;  %v867_v43 = vmul.f32 %v859_v36, %v844_v20  ;;  %v946_v20 = vsel %vm502_vm3, %v3976_v21, %v4025_v48 }
 0x23d   : > { %v4062_v30 = vpop.permute.xlu1 %1122  ;;  %v841_v33 = vpop.permute.xlu0 %840 }
 0x23e   : > { %v845_v39 = vsel %vm449_vm1, %v833_v60, %v841_v33  ;;  %v849_v41 = vsel %vm449_vm1, %v841_v33, %v833_v60  ;;  %v914_v60 = vmul.f32 %v907_v26, %v898_v46  ;;  %v967_v46 = vmul.f32 %v963_v17, %v946_v20 }
 0x23f   : > { %v868_v44 = vmul.f32 %v855_v37, %v849_v41  ;;  %v869_v45 = vmul.f32 %v859_v36, %v845_v39  ;;  %v947_v36 = vsel %vm502_vm3, %v3989_v25, %v941_v53  ;;  %v3323_v37 = vpack.c.bf16 %v917_v38, %v915_v47  ;;  %v3267_v25 = vld [vmem:[%s5525_s1 + $0x3] ss:$8 sm:$0x3] }
 0x240   : > { %v3325_v33 = vpack.c.bf16 %v916_v49, %v914_v60  ;;  %v969_v38 = vmul.f32 %v963_v17, %v947_v36  ;;  %v968_v53 = vmul.f32 %v959_v16, %v951_v34 }
 0x241   : > { %v891_v50 = vpop.permute.xlu1 %890  ;;  %v4077_v51 = vpop.permute.xlu0 %1124  ;;  %v3319_v56 = vpack.c.bf16 %v869_v45, %v867_v43  ;;  %v3321_v6 = vpack.c.bf16 %v868_v44, %v866_v42  ;;  %v950_v45 = vsel %vm502_vm3, %v4025_v48, %v3976_v21  ;;  %v1015_v48 = vrot.slane %v3267_v25, %v3699_v4 }
 0x242   : > { %v896_v40 = vsel %vm472_vm2, %v883_v58, %v891_v50  ;;  %v900_v9 = vsel %vm472_vm2, %v891_v50, %v883_v58  ;;  %v966_v50 = vmul.f32 %v959_v16, %v950_v45  ;;  %v3331_v21 = vpack.c.bf16 %v969_v38, %v967_v46 }
 0x243   : > { %3320 = vmatprep.subr.bf16.mxu1 %v3319_v56  ;;  %v918_v41 = vmul.f32 %v907_v26, %v900_v9  ;;  %v919_v42 = vmul.f32 %v911_v19, %v896_v40  ;;  %v1003_v40 = vsel %vm526_vm0, %v4031_v55, %v4001_v29  ;;  %v1011_v38 = vrot.slane %v3267_v25, %v3697_v3 }
 0x244   : > { %3322 = vmatpush1.bf16.msra.mxu1 %v3321_v6  ;;  %v998_v6 = vsel %vm526_vm0, %v3987_v24, %v4027_v52 }
 0x245   : > { %v943_v23 = vpop.permute.xlu1 %942  ;;  %3324 = vmatprep.subr.bf16.mxu1 %v3323_v37  ;;  %v893_v27 = vpop.permute.xlu0 %892  ;;  %v3333_v37 = vpack.c.bf16 %v968_v53, %v966_v50 }
 0x246   : > { %v897_v58 = vsel %vm472_vm2, %v885_v62, %v893_v27  ;;  %v901_v39 = vsel %vm472_vm2, %v893_v27, %v885_v62  ;;  %v952_v56 = vsel %vm502_vm3, %v943_v23, %v4035_v61 }
 0x247   : > { %v920_v43 = vmul.f32 %v907_v26, %v901_v39  ;;  %v921_v44 = vmul.f32 %v911_v19, %v897_v58  ;;  %v999_v19 = vsel %vm526_vm0, %v4001_v29, %v4031_v55  ;;  %v948_v26 = vsel %vm502_vm3, %v4035_v61, %v943_v23 }
 0x248   : > { %3326 = vmatpush1.bf16.msra.mxu1 %v3325_v33  ;;  %v1021_v9 = vmul.f32 %v1015_v48, %v999_v19  ;;  %v970_v23 = vmul.f32 %v959_v16, %v952_v56  ;;  %v971_v27 = vmul.f32 %v963_v17, %v948_v26  ;;  %v1002_v29 = vsel %vm526_vm0, %v4027_v52, %v3987_v24 }
 0x249   : > { %v995_v47 = vpop.permute.xlu1 %994  ;;  %v4106_v22 = vpop.permute.xlu0 %1120  ;;  %v3327_v62 = vpack.c.bf16 %v921_v44, %v919_v42  ;;  %v3329_v49 = vpack.c.bf16 %v920_v43, %v918_v41  ;;  %v1019_v55 = vmul.f32 %v1015_v48, %v998_v6  ;;  %v1018_v43 = vmul.f32 %v1011_v38, %v1002_v29 }
 0x24a   : > { %v1000_v44 = vsel %vm526_vm0, %v4037_v0, %v995_v47  ;;  %v1004_v24 = vsel %vm526_vm0, %v995_v47, %v4037_v0 }
 0x24b   : > { %3328 = vmatprep.subr.bf16.mxu1 %v3327_v62  ;;  %v1022_v50 = vmul.f32 %v1011_v38, %v1004_v24  ;;  %v1023_v0 = vmul.f32 %v1015_v48, %v1000_v44 }
 0x24c   : > { %3330 = vmatpush1.bf16.msra.mxu1 %v3329_v49 }
 0x24d   : > { %v4123_v60 = vpop.permute.xlu1 %1074  ;;  %3332 = vmatprep.subr.bf16.mxu1 %v3331_v21  ;;  %v945_v36 = vpop.permute.xlu0 %944 }
 0x24e   : > { %v949_v61 = vsel %vm502_vm3, %v4039_v1, %v945_v36  ;;  %v953_v20 = vsel %vm502_vm3, %v945_v36, %v4039_v1  ;;  %v3268_v1 = vld [vmem:[%s5525_s1 + $0x4] ss:$8 sm:$0x3]  ;;  %v1080_v44 = vsel %vm575_vm4, %v4041_v2, %v4123_v60  ;;  %v1084_v24 = vsel %vm575_vm4, %v4123_v60, %v4041_v2 }
 0x24f   : > { %v972_v33 = vmul.f32 %v959_v16, %v953_v20  ;;  %v973_v34 = vmul.f32 %v963_v17, %v949_v61  ;;  %v1020_v17 = vmul.f32 %v1011_v38, %v1003_v40  ;;  %v3339_v16 = vpack.c.bf16 %v1021_v9, %v1019_v55 }
 0x250   : > { %3334 = vmatpush1.bf16.msra.mxu1 %v3333_v37  ;;  %v1043_v52 = vrot.slane %v3268_v1, %v3699_v4  ;;  %v1039_v21 = vrot.slane %v3268_v1, %v3697_v3  ;;  %v1083_v9 = vsel %vm575_vm4, %v4033_v57, %v4008_v32 }
 0x251   : > { %v4140_v58 = vpop.permute.xlu1 %1118  ;;  %v4142_v39 = vpop.permute.xlu0 %1168  ;;  %v3335_v41 = vpack.c.bf16 %v973_v34, %v971_v27  ;;  %v3337_v42 = vpack.c.bf16 %v972_v33, %v970_v23  ;;  %v3341_v62 = vpack.c.bf16 %v1020_v17, %v1018_v43  ;;  %v1078_v34 = vsel %vm575_vm4, %v3999_v28, %v4029_v54 }
 0x252   : > { %v1049_v49 = vmul.f32 %v1043_v52, %v3865_v8  ;;  %v1047_v37 = vmul.f32 %v1043_v52, %v3859_v7  ;;  %v1048_v8 = vmul.f32 %v1039_v21, %v3837_v63  ;;  %v1046_v61 = vmul.f32 %v1039_v21, %v3833_v59 }
 0x253   : > { %3336 = vmatprep.subr.bf16.mxu1 %v3335_v41  ;;  %v1052_v7 = vmul.f32 %v1039_v21, %v3889_v13  ;;  %v1079_v63 = vsel %vm575_vm4, %v4008_v32, %v4033_v57  ;;  %v1051_v59 = vmul.f32 %v1043_v52, %v3907_v14  ;;  %v3272_v13 = vld [vmem:[%s5525_s1 + $0x10] ss:$8 sm:$0x3]  ;;  %v1082_v32 = vsel %vm575_vm4, %v4029_v54, %v3999_v28 }
 0x254   : > { %3338 = vmatpush1.bf16.msra.mxu1 %v3337_v42  ;;  %v3347_v40 = vpack.c.bf16 %v1049_v49, %v1047_v37  ;;  %v3349_v57 = vpack.c.bf16 %v1048_v8, %v1046_v61  ;;  %v4208_v42 = vrot.slane %v3272_v13, %v3697_v3  ;;  %v1135_v28 = vsel %vm605_vm6, %v4077_v51, %v4013_v35 }
 0x255   : > { %v4154_v45 = vpop.permute.xlu1 %1126  ;;  %3340 = vmatprep.subr.bf16.mxu1 %v3339_v16  ;;  %v997_v46 = vpop.permute.xlu0 %996  ;;  %v1131_v49 = vsel %vm605_vm6, %v4013_v35, %v4077_v51 }
 0x256   : > { %v1001_v25 = vsel %vm526_vm0, %v4043_v5, %v997_v46  ;;  %v1005_v53 = vsel %vm526_vm0, %v997_v46, %v4043_v5  ;;  %v3269_v5 = vld [vmem:[%s5525_s1 + $0x5] ss:$8 sm:$0x3] }
 0x257   : > { %v1024_v47 = vmul.f32 %v1011_v38, %v1005_v53  ;;  %v1025_v19 = vmul.f32 %v1015_v48, %v1001_v25  ;;  %v1053_v48 = vmul.f32 %v1043_v52, %v3913_v15  ;;  %v1091_v20 = vrot.slane %v3269_v5, %v3697_v3  ;;  %v3270_v15 = vld [vmem:[%s5525_s1 + $0x6] ss:$8 sm:$0x3] }
 0x258   : > { %3342 = vmatpush1.bf16.msra.mxu1 %v3341_v62  ;;  %v1095_v23 = vrot.slane %v3269_v5, %v3699_v4  ;;  %v1050_v38 = vmul.f32 %v1039_v21, %v3883_v10  ;;  %v4205_v41 = vrot.slane %v3270_v15, %v3699_v4  ;;  %v4215_v10 = vrot.slane %v3272_v13, %v3699_v4 }
 0x259   : > { %v4164_v26 = vpop.permute.xlu1 %1166  ;;  %v4166_v56 = vpop.permute.xlu0 %1176  ;;  %v3343_v6 = vpack.c.bf16 %v1025_v19, %v1023_v0  ;;  %v3345_v36 = vpack.c.bf16 %v1024_v47, %v1022_v50  ;;  %v3351_v55 = vpack.c.bf16 %v1053_v48, %v1051_v59  ;;  %v1100_v14 = vmul.f32 %v1091_v20, %v1079_v63 }
 0x25a   : > { %v1101_v29 = vmul.f32 %v1095_v23, %v1083_v9  ;;  %v3353_v1 = vpack.c.bf16 %v1052_v7, %v1050_v38  ;;  %v1098_v17 = vmul.f32 %v1091_v20, %v1078_v34  ;;  %v1099_v16 = vmul.f32 %v1095_v23, %v1082_v32 }
 0x25b   : > { %3344 = vmatprep.subr.bf16.mxu1 %v3343_v6  ;;  %v1143_v25 = vrot.slane %v3270_v15, %v3697_v3  ;;  %v1134_v62 = vsel %vm605_vm6, %v4062_v30, %v4006_v31  ;;  %v1153_v2 = vmul.f32 %v4205_v41, %v1135_v28  ;;  %v1102_v50 = vmul.f32 %v1091_v20, %v1080_v44 }
 0x25c   : > { %3346 = vmatpush1.bf16.msra.mxu1 %v3345_v36  ;;  %v3355_v53 = vpack.c.bf16 %v1101_v29, %v1099_v16  ;;  %v3357_v60 = vpack.c.bf16 %v1100_v14, %v1098_v17  ;;  %v1103_v0 = vmul.f32 %v1095_v23, %v1084_v24  ;;  %v1130_v9 = vsel %vm605_vm6, %v4006_v31, %v4062_v30 }
 0x25d   : > { %v4189_v27 = vpop.permute.xlu1 %1174  ;;  %3348 = vmatprep.subr.bf16.mxu1 %v3347_v40  ;;  %v1221_v33 = vpop.permute.xlu0 %1220  ;;  %v1151_v61 = vmul.f32 %v4205_v41, %v1134_v62  ;;  %v1152_v7 = vmul.f32 %v1143_v25, %v1131_v49  ;;  %v1150_v31 = vmul.f32 %v1143_v25, %v1130_v9  ;;  %v1136_v30 = vsel %vm605_vm6, %v4154_v45, %v4140_v58 }
 0x25e   : > { %v1186_v32 = vsel %vm629_vm5, %v4189_v27, %v4164_v26  ;;  %v1182_v16 = vsel %vm629_vm5, %v4164_v26, %v4189_v27  ;;  %v1183_v24 = vsel %vm629_vm5, %v4142_v39, %v4166_v56 }
 0x25f   : > { %v3363_v34 = vpack.c.bf16 %v1153_v2, %v1151_v61  ;;  %v3365_v14 = vpack.c.bf16 %v1152_v7, %v1150_v31  ;;  %v1270_v7 = vld [vmem:[%s5528_s4] sm:$0xff] }
 0x260   : > { %3350 = vmatpush1.bf16.msra.mxu1 %v3349_v57  ;;  %v1278_v31 = vld [vmem:[%s5528_s4 + $0x40] sm:$0xff] }
 0x261   : > { %v1219_v54 = vpop.permute.xlu1 %1218  ;;  %3352 = vmatprep.subr.bf16.mxu1 %v3351_v55  ;;  %v1229_v43 = vpop.permute.xlu0 %1228 }
 0x262   : > { %v1235_v52 = vsel %vm659_vm7, %v1221_v33, %v1229_v43  ;;  %v1239_v46 = vsel %vm659_vm7, %v1229_v43, %v1221_v33 }
 0x263   : > { %v1256_v47 = vmul.f32 %v4208_v42, %v1235_v52  ;;  %v1257_v19 = vmul.f32 %v4215_v10, %v1239_v46 }
 0x264   : > { %3354 = vmatpush1.bf16.msra.mxu1 %v3353_v1  ;;  %v1155_v1 = vmul.f32 %v4205_v41, %v1136_v30  ;;  %v1281_v30 = vld [vmem:[%s5528_s4 + $0x58] sm:$0xff] }
 0x265   : > { %v1227_v21 = vpop.permute.xlu1 %1226  ;;  %3356 = vmatprep.subr.bf16.mxu1 %v3355_v53  ;;  %v1077_v6 = vpop.permute.xlu0 %1076 }
 0x266   : > { %v1234_v36 = vsel %vm659_vm7, %v1219_v54, %v1227_v21  ;;  %v1238_v37 = vsel %vm659_vm7, %v1227_v21, %v1219_v54  ;;  %v1081_v35 = vsel %vm575_vm4, %v4048_v11, %v1077_v6  ;;  %v1085_v51 = vsel %vm575_vm4, %v1077_v6, %v4048_v11 }
 0x267   : > { %v1254_v5 = vmul.f32 %v4208_v42, %v1234_v36  ;;  %v1255_v8 = vmul.f32 %v4215_v10, %v1238_v37  ;;  %v1104_v40 = vmul.f32 %v1091_v20, %v1081_v35  ;;  %v1105_v48 = vmul.f32 %v1095_v23, %v1085_v51  ;;  %v3271_v23 = vld [vmem:[%s5525_s1 + $0x7] ss:$8 sm:$0x3] }
 0x268   : > { %3358 = vmatpush1.bf16.msra.mxu1 %v3357_v60  ;;  %v1132_v20 = vsel %vm605_vm6, %v4140_v58, %v4154_v45  ;;  %v1199_v38 = vrot.slane %v3271_v23, %v3699_v4  ;;  %v1187_v58 = vsel %vm629_vm5, %v4166_v56, %v4142_v39  ;;  %v1195_v44 = vrot.slane %v3271_v23, %v3697_v3  ;;  %v1279_v23 = vld [vmem:[%s5528_s4 + $0x48] sm:$0xff] }
 0x269   : > { %v3381_v63 = vpack.c.bf16 %v1256_v47, %v1254_v5  ;;  %v1171_v15 = vpop.permute.xlu1 %1170  ;;  %v1173_v33 = vpop.permute.xlu0 %1172  ;;  %v3359_v59 = vpack.c.bf16 %v1105_v48, %v1103_v0  ;;  %v3379_v11 = vpack.c.bf16 %v1257_v19, %v1255_v8  ;;  %v3361_v13 = vpack.c.bf16 %v1104_v40, %v1102_v50 }
 0x26a   : > { %v1154_v57 = vmul.f32 %v1143_v25, %v1132_v20  ;;  %v1203_v28 = vmul.f32 %v1199_v38, %v1186_v32  ;;  %v1205_v52 = vmul.f32 %v1199_v38, %v1187_v58  ;;  %v1202_v49 = vmul.f32 %v1195_v44, %v1182_v16  ;;  %v1280_v20 = vld [vmem:[%s5528_s4 + $0x50] sm:$0xff] }
 0x26b   : > { %3360 = vmatprep.subr.bf16.mxu1 %v3359_v59  ;;  %3380 = vmatprep.subr.bf16.mxu0 %v3379_v11  ;;  %v1204_v27 = vmul.f32 %v1195_v44, %v1183_v24  ;;  %v1277_v59 = vld [vmem:[%s5528_s4 + $0x38] sm:$0xff]  ;;  %v1276_v11 = vld [vmem:[%s5528_s4 + $0x30] sm:$0xff] }
 0x26c   : > { %3362 = vmatpush1.bf16.msra.mxu1 %v3361_v13  ;;  %3382 = vmatpush1.bf16.msra.mxu0 %v3381_v63  ;;  %v3371_v26 = vpack.c.bf16 %v1205_v52, %v1203_v28  ;;  %v1275_v13 = vld [vmem:[%s5528_s4 + $0x28] sm:$0xff] }
 0x26d   : > { %v1179_v29 = vpop.permute.xlu1 %1178  ;;  %3364 = vmatprep.subr.bf16.mxu1 %v3363_v34  ;;  %v1129_v55 = vpop.permute.xlu0 %1128  ;;  %v3373_v50 = vpack.c.bf16 %v1204_v27, %v1202_v49 }
 0x26e   : > { %v1133_v45 = vsel %vm605_vm6, %v4106_v22, %v1129_v55  ;;  %v1137_v17 = vsel %vm605_vm6, %v1129_v55, %v4106_v22 }
 0x26f   : > { %v1156_v54 = vmul.f32 %v1143_v25, %v1133_v45  ;;  %v1157_v43 = vmul.f32 %v4205_v41, %v1137_v17  ;;  %v1184_v41 = vsel %vm629_vm5, %v1171_v15, %v1179_v29  ;;  %v1188_v25 = vsel %vm629_vm5, %v1179_v29, %v1171_v15 }
 0x270   : > { %3366 = vmatpush1.bf16.msra.mxu1 %v3365_v14  ;;  %v1206_v0 = vmul.f32 %v1195_v44, %v1184_v41  ;;  %v1207_v47 = vmul.f32 %v1199_v38, %v1188_v25 }
 0x271   : > { %v1223_v46 = vpop.permute.xlu1 %1222  ;;  %v1225_v22 = vpop.permute.xlu0 %1224  ;;  %v3367_v53 = vpack.c.bf16 %v1157_v43, %v1155_v1  ;;  %v3369_v62 = vpack.c.bf16 %v1156_v54, %v1154_v57 }
 0x273   : > { %3368 = vmatprep.subr.bf16.mxu1 %v3367_v53 }
 0x274   : > { %3370 = vmatpush1.bf16.msra.mxu1 %v3369_v62 }
 0x275   : > { %v1231_v2 = vpop.permute.xlu1 %1230  ;;  %3372 = vmatprep.subr.bf16.mxu1 %v3371_v26  ;;  %v1181_v60 = vpop.permute.xlu0 %1180 }
 0x276   : > { %v1185_v39 = vsel %vm629_vm5, %v1173_v33, %v1181_v60  ;;  %v1189_v56 = vsel %vm629_vm5, %v1181_v60, %v1173_v33  ;;  %v1236_v6 = vsel %vm659_vm7, %v1223_v46, %v1231_v2  ;;  %v1240_v36 = vsel %vm659_vm7, %v1231_v2, %v1223_v46  ;;  %v1274_v33 = vld [vmem:[%s5528_s4 + $0x20] sm:$0xff] }
 0x277   : > { %v1208_v19 = vmul.f32 %v1195_v44, %v1185_v39  ;;  %v1209_v21 = vmul.f32 %v1199_v38, %v1189_v56  ;;  %v1258_v40 = vmul.f32 %v4208_v42, %v1236_v6  ;;  %v1259_v48 = vmul.f32 %v4215_v10, %v1240_v36 }
 0x278   : > { %3374 = vmatpush1.bf16.msra.mxu1 %v3373_v50 }
 0x279   : > { %v1233_v37 = vpop.permute.xlu0 %1232  ;;  %v3375_v35 = vpack.c.bf16 %v1209_v21, %v1207_v47  ;;  %v3377_v51 = vpack.c.bf16 %v1208_v19, %v1206_v0 }
 0x27a   : > { %v1237_v5 = vsel %vm659_vm7, %v1225_v22, %v1233_v37  ;;  %v1241_v8 = vsel %vm659_vm7, %v1233_v37, %v1225_v22 }
 0x27b   : > { %v1260_v9 = vmul.f32 %v4208_v42, %v1237_v5  ;;  %v1261_v61 = vmul.f32 %v4215_v10, %v1241_v8  ;;  %3376 = vmatprep.subr.bf16.mxu1 %v3375_v35  ;;  %v1273_v42 = vld [vmem:[%s5528_s4 + $0x18] sm:$0xff]  ;;  %v1272_v10 = vld [vmem:[%s5528_s4 + $0x10] sm:$0xff] }
 0x27c   : > { %3378 = vmatpush1.bf16.msra.mxu1 %v3377_v51 }
 0x27d   : > { %v3385_v63 = vpack.c.bf16 %v1260_v9, %v1258_v40  ;;  %v3383_v15 = vpack.c.bf16 %v1261_v61, %v1259_v48  ;;  %v2022_v48 = vld [vmem:[%s5530_s6 + $0x8] sm:$0xff] }
 0x27f   : > { %1456 = vmatmul.mubr.f32.vlgmr.msra.gmra.mrb[0].mxu1 %v1270_v7  ;;  %3384 = vmatprep.subr.bf16.mxu0 %v3383_v15 }
 0x280   : > { %3386 = vmatpush1.bf16.msra.mxu0 %v3385_v63  ;;  %1461 = vmatprep.mubr.f32.mxu1 %v1274_v33  ;;  %v2105_v33 = vld [vmem:[%s5531_s7] sm:$0xff] }
 0x283   : > { %1462 = vmatmul.mubr.f32.gmra.mrb[2].mxu1 %v1273_v42  ;;  %3273 = vmatmul.mubr.msk.f32.vlgmr.msra.gmra.mrb[8].mxu0 %vm1378_vm10, %v1272_v10 }
 0x284   : > { %1467 = vmatprep.mubr.f32.mxu1 %v1277_v59  ;;  %1550 = vmatprep.mubr.f32.mxu0 %v5537_v12  ;;  %v2107_v59 = vld [vmem:[%s5531_s7 + $0x10] sm:$0xff] }
 0x286   : > { %v1361_v57 = vpop.permute.xlu1 %1360 }
 0x287   : > { %1468 = vmatmul.mubr.f32.gmra.mrb[4].mxu1 %v1276_v11  ;;  %3274 = vmatmul.mubr.msk.f32.gmra.mrb[10].mxu0 %vm1378_vm10, %v1275_v13  ;;  %v2106_v11 = vld [vmem:[%s5531_s7 + $0x8] sm:$0xff] }
 0x288   : > { %1473 = vmatprep.mubr.f32.mxu1 %v1280_v20  ;;  %1556 = vmatprep.mubr.f32.mxu0 %v5537_v12 }
 0x28a   : > { %v1366_v17 = vpop.permute.xlu0 %1365  ;;  %v1371_v53 = vpop.permute.xlu1 %1370 }
 0x28b   : > { %1474 = vmatmul.mubr.f32.gmra.mrb[6].mxu1 %v1279_v23  ;;  %3275 = vmatmul.mubr.msk.f32.gmra.mrb[12].mxu0 %vm1378_vm10, %v1278_v31  ;;  %v1601_v23 = vld [vmem:[%s5525_s1] ss:$8 sm:$0x3]  ;;  %v2108_v31 = vld [vmem:[%s5531_s7 + $0x18] sm:$0xff] }
 0x28c   : > { %1562 = vmatprep.mubr.f32.mxu0 %v5537_v12 }
 0x28e   : > { %v1376_v56 = vpop.permute.xlu0 %1375 }
 0x28f   : > { %3276 = vmatmul.mubr.msk.f32.gmra.mrb[14].mxu0 %vm1378_vm10, %v1281_v30 }
 0x290   : > { %2205 = vmatprep.mubr.f32.mxu0 %v2022_v48 }
 0x352   : > { %v1457_v34 = vpop.f32.mrb[0].mxu1 }
 0x353   : > { %v1459_v32 = vpop.f32.mrb[1].mxu1  ;;  %v1458_v38 = vadd.f32 %v1457_v34, %v1361_v57 }
 0x354   : > { %v1460_v29 = vadd.f32 %v1459_v32, %v1361_v57  ;;  %v1606_v32 = vrot.slane %v1601_v23, %v3697_v3  ;;  %v1610_v57 = vrot.slane %v1601_v23, %v3699_v4 }
 0x356   : > { %v1463_v55 = vpop.f32.mrb[2].mxu1  ;;  %v1546_v14 = vpop.f32.mrb[8].mxu0 }
 0x357   : > { %v1547_v1 = vadd.f32 %v1546_v14, %v1458_v38  ;;  %v1465_v58 = vpop.f32.mrb[3].mxu1  ;;  %v1548_v45 = vpop.f32.mrb[9].mxu0  ;;  %v1464_v28 = vadd.f32 %v1463_v55, %v1366_v17 }
 0x358   : > { %v1549_v16 = vadd.f32 %v1548_v45, %v1460_v29  ;;  %v1466_v43 = vadd.f32 %v1465_v58, %v1366_v17 }
 0x359   : > { %v4355_v54 = vmax.f32 %v1547_v1, 0.0 }
 0x35a   : > { %v1469_v44 = vpop.f32.mrb[4].mxu1  ;;  %v1552_v24 = vpop.f32.mrb[10].mxu0  ;;  %v4377_v37 = vmax.f32 %v1549_v16, 0.0 }
 0x35b   : > { %5548 = vst [vmem:[#allocation4_spill] sm:$0xff] %v4355_v54  ;;  %v1553_v52 = vadd.f32 %v1552_v24, %v1464_v28  ;;  %v1471_v46 = vpop.f32.mrb[5].mxu1  ;;  %v1554_v22 = vpop.f32.mrb[11].mxu0  ;;  %1577 = vrot.lane.b32.xlu1 %v4355_v54, %s3610_s13  ;;  %v1470_v49 = vadd.f32 %v1469_v44, %v1371_v53 }
 0x35c   : > { %v1555_v62 = vadd.f32 %v1554_v22, %v1466_v43  ;;  %v1472_v27 = vadd.f32 %v1471_v46, %v1371_v53  ;;  %5550 = vst [vmem:[#allocation6_spill] sm:$0xff] %v4377_v37 }
 0x35d   : > { %v4359_v26 = vmax.f32 %v1553_v52, 0.0 }
 0x35e   : > { %v1475_v41 = vpop.f32.mrb[6].mxu1  ;;  %v1558_v25 = vpop.f32.mrb[12].mxu0  ;;  %v4383_v35 = vmax.f32 %v1555_v62, 0.0 }
 0x35f   : > { %5549 = vst [vmem:[#allocation5_spill] sm:$0xff] %v4359_v26  ;;  %v1559_v2 = vadd.f32 %v1558_v25, %v1470_v49  ;;  %v1477_v60 = vpop.f32.mrb[7].mxu1  ;;  %v1560_v39 = vpop.f32.mrb[13].mxu0  ;;  %1629 = vrot.lane.b32.xlu1 %v4355_v54, %s3609_s30  ;;  %1579 = vrot.lane.b32.xlu0 %v4359_v26, %s3610_s13  ;;  %v1476_v0 = vadd.f32 %v1475_v41, %v1376_v56 }
 0x360   : > { %v1561_v50 = vadd.f32 %v1560_v39, %v1472_v27  ;;  %v1478_v47 = vadd.f32 %v1477_v60, %v1376_v56  ;;  %5551 = vst [vmem:[#allocation7_spill] sm:$0xff] %v4383_v35  ;;  %v3277_v39 = vld [vmem:[%s5525_s1 + $0x1] ss:$8 sm:$0x3] }
 0x361   : > { %v4397_v51 = vmax.f32 %v1559_v2, 0.0 }
 0x362   : > { %v1564_v19 = vpop.f32.mrb[14].mxu0  ;;  %v4417_v8 = vmax.f32 %v1561_v50, 0.0 }
 0x363   : > { %v1565_v21 = vadd.f32 %v1564_v19, %v1476_v0  ;;  %v1566_v6 = vpop.f32.mrb[15].mxu0  ;;  %1681 = vrot.lane.b32.xlu1 %v4355_v54, %s3611_s14  ;;  %1631 = vrot.lane.b32.xlu0 %v4359_v26, %s3609_s30  ;;  %5552 = vst [vmem:[#allocation8_spill] sm:$0xff] %v4397_v51 }
 0x364   : > { %v1567_v36 = vadd.f32 %v1566_v6, %v1478_v47  ;;  %5554 = vst [vmem:[#allocation10_spill] sm:$0xff] %v4417_v8  ;;  %v1662_v47 = vrot.slane %v3277_v39, %v3699_v4  ;;  %v1658_v6 = vrot.slane %v3277_v39, %v3697_v3 }
 0x365   : > { %v4403_v5 = vmax.f32 %v1565_v21, 0.0 }
 0x366   : > { %v4423_v40 = vmax.f32 %v1567_v36, 0.0 }
 0x367   : > { %1733 = vrot.lane.b32.xlu1 %v4355_v54, %s3608_s29  ;;  %1683 = vrot.lane.b32.xlu0 %v4359_v26, %s3611_s14  ;;  %5553 = vst [vmem:[#allocation9_spill] sm:$0xff] %v4403_v5 }
 0x368   : > { %5555 = vst [vmem:[#allocation11_spill] sm:$0xff] %v4423_v40 }
 0x36b   : > { %1813 = vrot.lane.b32.xlu1 %v4355_v54, %s3612_s15  ;;  %1735 = vrot.lane.b32.xlu0 %v4359_v26, %s3608_s29 }
 0x36f   : > { %1585 = vrot.lane.b32.xlu1 %v4377_v37, %s3610_s13  ;;  %1815 = vrot.lane.b32.xlu0 %v4359_v26, %s3612_s15 }
 0x373   : > { %1637 = vrot.lane.b32.xlu1 %v4377_v37, %s3609_s30  ;;  %1587 = vrot.lane.b32.xlu0 %v4383_v35, %s3610_s13 }
 0x377   : > { %1689 = vrot.lane.b32.xlu1 %v4377_v37, %s3611_s14  ;;  %1639 = vrot.lane.b32.xlu0 %v4383_v35, %s3609_s30 }
 0x37b   : > { %1741 = vrot.lane.b32.xlu1 %v4377_v37, %s3608_s29  ;;  %1691 = vrot.lane.b32.xlu0 %v4383_v35, %s3611_s14 }
 0x37f   : > { %1581 = vrot.lane.b32.xlu1 %v4397_v51, %s3610_s13  ;;  %1743 = vrot.lane.b32.xlu0 %v4383_v35, %s3608_s29 }
 0x383   : > { %1633 = vrot.lane.b32.xlu1 %v4397_v51, %s3609_s30  ;;  %1583 = vrot.lane.b32.xlu0 %v4403_v5, %s3610_s13 }
 0x387   : > { %1685 = vrot.lane.b32.xlu1 %v4397_v51, %s3611_s14  ;;  %1635 = vrot.lane.b32.xlu0 %v4403_v5, %s3609_s30 }
 0x38b   : > { %1737 = vrot.lane.b32.xlu1 %v4397_v51, %s3608_s29  ;;  %1687 = vrot.lane.b32.xlu0 %v4403_v5, %s3611_s14 }
 0x38f   : > { %1589 = vrot.lane.b32.xlu1 %v4417_v8, %s3610_s13  ;;  %1739 = vrot.lane.b32.xlu0 %v4403_v5, %s3608_s29 }
 0x393   : > { %1821 = vrot.lane.b32.xlu1 %v4377_v37, %s3612_s15  ;;  %1591 = vrot.lane.b32.xlu0 %v4423_v40, %s3610_s13 }
 0x397   : > { %1641 = vrot.lane.b32.xlu1 %v4417_v8, %s3609_s30  ;;  %1823 = vrot.lane.b32.xlu0 %v4383_v35, %s3612_s15 }
 0x39b   : > { %1693 = vrot.lane.b32.xlu1 %v4417_v8, %s3611_s14  ;;  %1643 = vrot.lane.b32.xlu0 %v4423_v40, %s3609_s30 }
 0x39f   : > { %1745 = vrot.lane.b32.xlu1 %v4417_v8, %s3608_s29  ;;  %1819 = vrot.lane.b32.xlu0 %v4403_v5, %s3612_s15 }
 0x3a3   : > { %1817 = vrot.lane.b32.xlu1 %v4397_v51, %s3612_s15  ;;  %1695 = vrot.lane.b32.xlu0 %v4423_v40, %s3611_s14 }
 0x3a7   : > { %1825 = vrot.lane.b32.xlu1 %v4417_v8, %s3612_s15  ;;  %1867 = vrot.lane.b32.xlu0 %v4359_v26, %s3614_s17 }
 0x3ab   : > { %1865 = vrot.lane.b32.xlu1 %v4355_v54, %s3614_s17  ;;  %1747 = vrot.lane.b32.xlu0 %v4423_v40, %s3608_s29 }
 0x3af   : > { %1873 = vrot.lane.b32.xlu1 %v4377_v37, %s3614_s17  ;;  %1875 = vrot.lane.b32.xlu0 %v4383_v35, %s3614_s17 }
 0x3b3   : > { %1869 = vrot.lane.b32.xlu1 %v4397_v51, %s3614_s17  ;;  %1871 = vrot.lane.b32.xlu0 %v4403_v5, %s3614_s17 }
 0x3b7   : > { %1877 = vrot.lane.b32.xlu1 %v4417_v8, %s3614_s17  ;;  %1919 = vrot.lane.b32.xlu0 %v4359_v26, %s3613_s16 }
 0x3bb   : > { %1917 = vrot.lane.b32.xlu1 %v4355_v54, %s3613_s16  ;;  %1827 = vrot.lane.b32.xlu0 %v4423_v40, %s3612_s15 }
 0x3bf   : > { %1925 = vrot.lane.b32.xlu1 %v4377_v37, %s3613_s16  ;;  %1927 = vrot.lane.b32.xlu0 %v4383_v35, %s3613_s16 }
 0x3c3   : > { %1921 = vrot.lane.b32.xlu1 %v4397_v51, %s3613_s16  ;;  %1879 = vrot.lane.b32.xlu0 %v4423_v40, %s3614_s17 }
 0x3c7   : > { %1929 = vrot.lane.b32.xlu1 %v4417_v8, %s3613_s16  ;;  %1923 = vrot.lane.b32.xlu0 %v4403_v5, %s3613_s16 }
 0x3cb   : > { %1969 = vrot.lane.b32.xlu1 %v4355_v54, %s3615_s18  ;;  %1931 = vrot.lane.b32.xlu0 %v4423_v40, %s3613_s16 }
 0x3cd   : > { %v1578_v9 = vpop.permute.xlu1 %1577 }
 0x3cf   : > { %1977 = vrot.lane.b32.xlu1 %v4377_v37, %s3615_s18  ;;  %1971 = vrot.lane.b32.xlu0 %v4359_v26, %s3615_s18 }
 0x3d1   : > { %v4492_v61 = vpop.permute.xlu1 %1629  ;;  %v1580_v7 = vpop.permute.xlu0 %1579 }
 0x3d3   : > { %1973 = vrot.lane.b32.xlu1 %v4397_v51, %s3615_s18  ;;  %1979 = vrot.lane.b32.xlu0 %v4383_v35, %s3615_s18 }
 0x3d5   : > { %v4498_v63 = vpop.permute.xlu1 %1681  ;;  %v1632_v15 = vpop.permute.xlu0 %1631 }
 0x3d7   : > { %1981 = vrot.lane.b32.xlu1 %v4417_v8, %s3615_s18  ;;  %1975 = vrot.lane.b32.xlu0 %v4403_v5, %s3615_s18 }
 0x3d9   : > { %v4507_v42 = vpop.permute.xlu1 %1733  ;;  %v4509_v10 = vpop.permute.xlu0 %1683 }
 0x3db   : > { %2111 = vperm.xlu1 %3598, %v2105_v33   ;;  %1983 = vrot.lane.b32.xlu0 %v4423_v40, %s3615_s18 }
 0x3dd   : > { %v4519_v13 = vpop.permute.xlu1 %1813  ;;  %v4521_v20 = vpop.permute.xlu0 %1735 }
 0x3df   : > { %2121 = vperm.xlu1 %3598, %v2107_v59   ;;  %2116 = vperm.xlu0 %3597, %v2106_v11  }
 0x3e1   : > { %v1586_v30 = vpop.permute.xlu1 %1585  ;;  %v4529_v34 = vpop.permute.xlu0 %1815 }
 0x3e2   : > { %v1593_v38 = vsel %vm449_vm1, %v1578_v9, %v1586_v30  ;;  %v1597_v29 = vsel %vm449_vm1, %v1586_v30, %v1578_v9 }
 0x3e3   : > { %2126 = vperm.xlu0 %3597, %v2108_v31   ;;  %v1613_v45 = vmul.f32 %v1606_v32, %v1597_v29  ;;  %v1614_v17 = vmul.f32 %v1610_v57, %v1593_v38 }
 0x3e5   : > { %v1638_v55 = vpop.permute.xlu1 %1637  ;;  %v1588_v14 = vpop.permute.xlu0 %1587 }
 0x3e6   : > { %v1594_v1 = vsel %vm449_vm1, %v1580_v7, %v1588_v14  ;;  %v1598_v58 = vsel %vm449_vm1, %v1588_v14, %v1580_v7  ;;  %v1645_v36 = vsel %vm472_vm2, %v4492_v61, %v1638_v55  ;;  %v1649_v29 = vsel %vm472_vm2, %v1638_v55, %v4492_v61 }
 0x3e7   : > { %v1615_v16 = vmul.f32 %v1606_v32, %v1598_v58  ;;  %v1616_v28 = vmul.f32 %v1610_v57, %v1594_v1  ;;  %v1666_v14 = vmul.f32 %v1662_v47, %v1645_v36 }
 0x3e9   : > { %v3389_v43 = vpack.c.bf16 %v1615_v16, %v1613_v45  ;;  %v4541_v44 = vpop.permute.xlu1 %1689  ;;  %v1640_v24 = vpop.permute.xlu0 %1639  ;;  %v3387_v52 = vpack.c.bf16 %v1616_v28, %v1614_v17  ;;  %v1665_v28 = vmul.f32 %v1658_v6, %v1649_v29 }
 0x3ea   : > { %v1646_v0 = vsel %vm472_vm2, %v1632_v15, %v1640_v24  ;;  %v1650_v7 = vsel %vm472_vm2, %v1640_v24, %v1632_v15  ;;  %v3278_v15 = vld [vmem:[%s5525_s1 + $0x2] ss:$8 sm:$0x3] }
 0x3eb   : > { %3388 = vmatprep.subr.bf16.mxu0 %v3387_v52  ;;  %v1668_v33 = vmul.f32 %v1662_v47, %v1646_v0  ;;  %v1667_v1 = vmul.f32 %v1658_v6, %v1650_v7  ;;  %v1714_v61 = vrot.slane %v3278_v15, %v3699_v4  ;;  %v1710_v24 = vrot.slane %v3278_v15, %v3697_v3 }
 0x3ec   : > { %3390 = vmatpush1.bf16.msra.mxu0 %v3389_v43  ;;  %v1697_v52 = vsel %vm502_vm3, %v4498_v63, %v4541_v44 }
 0x3ed   : > { %v4543_v46 = vpop.permute.xlu1 %1741  ;;  %v1692_v22 = vpop.permute.xlu0 %1691 }
 0x3ee   : > { %v1749_v29 = vsel %vm526_vm0, %v4507_v42, %v4543_v46 }
 0x3f1   : > { %v1582_v53 = vpop.permute.xlu1 %1581  ;;  %v4545_v62 = vpop.permute.xlu0 %1743 }
 0x3f5   : > { %v1634_v49 = vpop.permute.xlu1 %1633  ;;  %v1584_v27 = vpop.permute.xlu0 %1583 }
 0x3f9   : > { %v4547_v41 = vpop.permute.xlu1 %1685  ;;  %v1636_v25 = vpop.permute.xlu0 %1635 }
 0x3fd   : > { %v4549_v2 = vpop.permute.xlu1 %1737  ;;  %v4551_v60 = vpop.permute.xlu0 %1687 }
 0x401   : > { %v1590_v56 = vpop.permute.xlu1 %1589  ;;  %v4556_v50 = vpop.permute.xlu0 %1739 }
 0x402   : > { %v1595_v19 = vsel %vm449_vm1, %v1582_v53, %v1590_v56  ;;  %v1599_v21 = vsel %vm449_vm1, %v1590_v56, %v1582_v53  ;;  %v3397_v53 = vpack.c.bf16 %v1667_v1, %v1665_v28  ;;  %v1702_v56 = vsel %vm502_vm3, %v1692_v22, %v4509_v10 }
 0x403   : > { %v1617_v23 = vmul.f32 %v1606_v32, %v1599_v21  ;;  %v1618_v31 = vmul.f32 %v1610_v57, %v1595_v19 }
 0x405   : > { %v4569_v48 = vpop.permute.xlu1 %1821  ;;  %v1592_v9 = vpop.permute.xlu0 %1591 }
 0x406   : > { %v1596_v59 = vsel %vm449_vm1, %v1584_v27, %v1592_v9  ;;  %v1600_v11 = vsel %vm449_vm1, %v1592_v9, %v1584_v27 }
 0x407   : > { %v1619_v30 = vmul.f32 %v1606_v32, %v1600_v11  ;;  %v1620_v38 = vmul.f32 %v1610_v57, %v1596_v59  ;;  %v1698_v32 = vsel %vm502_vm3, %v4509_v10, %v1692_v22  ;;  %v3395_v57 = vpack.c.bf16 %v1668_v33, %v1666_v14  ;;  %v3279_v10 = vld [vmem:[%s5525_s1 + $0x3] ss:$8 sm:$0x3] }
 0x408   : > { %v1720_v0 = vmul.f32 %v1714_v61, %v1698_v32  ;;  %v1701_v33 = vsel %vm502_vm3, %v4541_v44, %v4498_v63  ;;  %v1718_v59 = vmul.f32 %v1714_v61, %v1697_v52  ;;  %v1719_v22 = vmul.f32 %v1710_v24, %v1702_v56 }
 0x409   : > { %v3393_v58 = vpack.c.bf16 %v1619_v30, %v1617_v23  ;;  %v1642_v45 = vpop.permute.xlu1 %1641  ;;  %v4583_v17 = vpop.permute.xlu0 %1823  ;;  %v3391_v16 = vpack.c.bf16 %v1620_v38, %v1618_v31  ;;  %v1717_v30 = vmul.f32 %v1710_v24, %v1701_v33  ;;  %v1766_v44 = vrot.slane %v3279_v10, %v3699_v4 }
 0x40a   : > { %v1647_v55 = vsel %vm472_vm2, %v1634_v49, %v1642_v45  ;;  %v1651_v43 = vsel %vm472_vm2, %v1642_v45, %v1634_v49  ;;  %v3403_v63 = vpack.c.bf16 %v1720_v0, %v1718_v59 }
 0x40b   : > { %3392 = vmatprep.subr.bf16.mxu0 %v3391_v16  ;;  %v1669_v21 = vmul.f32 %v1658_v6, %v1651_v43  ;;  %v1670_v36 = vmul.f32 %v1662_v47, %v1647_v55  ;;  %v3405_v14 = vpack.c.bf16 %v1719_v22, %v1717_v30  ;;  %v1762_v43 = vrot.slane %v3279_v10, %v3697_v3 }
 0x40c   : > { %3394 = vmatpush1.bf16.msra.mxu0 %v3393_v58  ;;  %v1754_v58 = vsel %vm526_vm0, %v4545_v62, %v4521_v20 }
 0x40d   : > { %v1694_v27 = vpop.permute.xlu1 %1693  ;;  %3396 = vmatprep.subr.bf16.mxu0 %v3395_v57  ;;  %v1644_v39 = vpop.permute.xlu0 %1643 }
 0x40e   : > { %v1648_v49 = vsel %vm472_vm2, %v1636_v25, %v1644_v39  ;;  %v1652_v19 = vsel %vm472_vm2, %v1644_v39, %v1636_v25  ;;  %v1703_v38 = vsel %vm502_vm3, %v1694_v27, %v4547_v41 }
 0x40f   : > { %v1671_v9 = vmul.f32 %v1658_v6, %v1652_v19  ;;  %v1672_v7 = vmul.f32 %v1662_v47, %v1648_v49  ;;  %v1750_v47 = vsel %vm526_vm0, %v4521_v20, %v4545_v62  ;;  %v1699_v6 = vsel %vm502_vm3, %v4547_v41, %v1694_v27 }
 0x410   : > { %3398 = vmatpush1.bf16.msra.mxu0 %v3397_v53  ;;  %v1772_v45 = vmul.f32 %v1766_v44, %v1750_v47  ;;  %v1721_v28 = vmul.f32 %v1710_v24, %v1703_v38  ;;  %v1722_v32 = vmul.f32 %v1714_v61, %v1699_v6  ;;  %v1753_v20 = vsel %vm526_vm0, %v4543_v46, %v4507_v42 }
 0x411   : > { %v3401_v11 = vpack.c.bf16 %v1671_v9, %v1669_v21  ;;  %v1746_v23 = vpop.permute.xlu1 %1745  ;;  %v4612_v31 = vpop.permute.xlu0 %1819  ;;  %v3399_v25 = vpack.c.bf16 %v1672_v7, %v1670_v36  ;;  %v1770_v62 = vmul.f32 %v1766_v44, %v1749_v29  ;;  %v1769_v56 = vmul.f32 %v1762_v43, %v1753_v20 }
 0x412   : > { %v1751_v0 = vsel %vm526_vm0, %v4549_v2, %v1746_v23  ;;  %v1755_v42 = vsel %vm526_vm0, %v1746_v23, %v4549_v2  ;;  %v1829_v20 = vsel %vm575_vm4, %v4519_v13, %v4569_v48 }
 0x413   : > { %3400 = vmatprep.subr.bf16.mxu0 %v3399_v25  ;;  %v1773_v33 = vmul.f32 %v1762_v43, %v1755_v42  ;;  %v1774_v2 = vmul.f32 %v1766_v44, %v1751_v0 }
 0x414   : > { %3402 = vmatpush1.bf16.msra.mxu0 %v3401_v11 }
 0x415   : > { %v4629_v15 = vpop.permute.xlu1 %1817  ;;  %3404 = vmatprep.subr.bf16.mxu0 %v3403_v63  ;;  %v1696_v1 = vpop.permute.xlu0 %1695  ;;  %v3281_v63 = vld [vmem:[%s5525_s1 + $0x5] ss:$8 sm:$0x3] }
 0x416   : > { %v1700_v41 = vsel %vm502_vm3, %v4551_v60, %v1696_v1  ;;  %v1704_v16 = vsel %vm502_vm3, %v1696_v1, %v4551_v60  ;;  %v3280_v60 = vld [vmem:[%s5525_s1 + $0x4] ss:$8 sm:$0x3] }
 0x417   : > { %v1723_v57 = vmul.f32 %v1710_v24, %v1704_v16  ;;  %v1724_v55 = vmul.f32 %v1714_v61, %v1700_v41  ;;  %v1771_v24 = vmul.f32 %v1762_v43, %v1754_v58  ;;  %v3411_v61 = vpack.c.bf16 %v1772_v45, %v1770_v62  ;;  %v3282_v62 = vld [vmem:[%s5525_s1 + $0x6] ss:$8 sm:$0x3] }
 0x418   : > { %3406 = vmatpush1.bf16.msra.mxu0 %v3405_v14  ;;  %v1794_v46 = vrot.slane %v3280_v60, %v3699_v4  ;;  %v1790_v22 = vrot.slane %v3280_v60, %v3697_v3  ;;  %v1846_v14 = vrot.slane %v3281_v63, %v3699_v4  ;;  %v1833_v41 = vsel %vm575_vm4, %v4569_v48, %v4519_v13 }
 0x419   : > { %v3409_v52 = vpack.c.bf16 %v1723_v57, %v1721_v28  ;;  %v1826_v53 = vpop.permute.xlu1 %1825  ;;  %v4646_v27 = vpop.permute.xlu0 %1867  ;;  %v3407_v39 = vpack.c.bf16 %v1724_v55, %v1722_v32  ;;  %v3413_v21 = vpack.c.bf16 %v1771_v24, %v1769_v56  ;;  %v1830_v16 = vsel %vm575_vm4, %v4529_v34, %v4583_v17 }
 0x41a   : > { %v1800_v7 = vmul.f32 %v1794_v46, %v4383_v35  ;;  %v1798_v47 = vmul.f32 %v1794_v46, %v4377_v37  ;;  %v1804_v38 = vmul.f32 %v1794_v46, %v4423_v40  ;;  %v1797_v29 = vmul.f32 %v1790_v22, %v4355_v54 }
 0x41b   : > { %3408 = vmatprep.subr.bf16.mxu0 %v3407_v39  ;;  %v1802_v45 = vmul.f32 %v1794_v46, %v4417_v8  ;;  %v1803_v32 = vmul.f32 %v1790_v22, %v4403_v5  ;;  %v1842_v57 = vrot.slane %v3281_v63, %v3697_v3  ;;  %v1831_v24 = vsel %vm575_vm4, %v4629_v15, %v1826_v53 }
 0x41c   : > { %3410 = vmatpush1.bf16.msra.mxu0 %v3409_v52  ;;  %v3419_v6 = vpack.c.bf16 %v1800_v7, %v1798_v47  ;;  %v1801_v52 = vmul.f32 %v1790_v22, %v4397_v51  ;;  %v1835_v13 = vsel %vm575_vm4, %v1826_v53, %v4629_v15  ;;  %v1898_v56 = vrot.slane %v3282_v62, %v3699_v4 }
 0x41d   : > { %v4658_v49 = vpop.permute.xlu1 %1865  ;;  %3412 = vmatprep.subr.bf16.mxu0 %v3411_v61  ;;  %v1748_v19 = vpop.permute.xlu0 %1747  ;;  %v1849_v61 = vmul.f32 %v1842_v57, %v1829_v20 }
 0x41e   : > { %v1752_v36 = vsel %vm526_vm0, %v4556_v50, %v1748_v19  ;;  %v1756_v9 = vsel %vm526_vm0, %v1748_v19, %v4556_v50  ;;  %v1799_v50 = vmul.f32 %v1790_v22, %v4359_v26  ;;  %v3425_v48 = vpack.c.bf16 %v1803_v32, %v1801_v52 }
 0x41f   : > { %v1775_v59 = vmul.f32 %v1762_v43, %v1756_v9  ;;  %v1776_v10 = vmul.f32 %v1766_v44, %v1752_v36  ;;  %v1834_v44 = vsel %vm575_vm4, %v4583_v17, %v4529_v34  ;;  %v3423_v43 = vpack.c.bf16 %v1804_v38, %v1802_v45 }
 0x420   : > { %3414 = vmatpush1.bf16.msra.mxu0 %v3413_v21  ;;  %v3421_v28 = vpack.c.bf16 %v1799_v50, %v1797_v29  ;;  %v1852_v55 = vmul.f32 %v1846_v14, %v1834_v44  ;;  %v1850_v34 = vmul.f32 %v1846_v14, %v1833_v41  ;;  %v1851_v17 = vmul.f32 %v1842_v57, %v1830_v16 }
 0x421   : > { %v3417_v11 = vpack.c.bf16 %v1775_v59, %v1773_v33  ;;  %v1874_v23 = vpop.permute.xlu1 %1873  ;;  %v1876_v25 = vpop.permute.xlu0 %1875  ;;  %v3415_v30 = vpack.c.bf16 %v1776_v10, %v1774_v2  ;;  %v1853_v21 = vmul.f32 %v1842_v57, %v1831_v24  ;;  %v1854_v36 = vmul.f32 %v1846_v14, %v1835_v13 }
 0x422   : > { %v3427_v0 = vpack.c.bf16 %v1852_v55, %v1850_v34  ;;  %v1885_v42 = vsel %vm605_vm6, %v1874_v23, %v4658_v49  ;;  %v1886_v46 = vsel %vm605_vm6, %v1876_v25, %v4646_v27  ;;  %v3429_v19 = vpack.c.bf16 %v1851_v17, %v1849_v61 }
 0x423   : > { %3416 = vmatprep.subr.bf16.mxu0 %v3415_v30  ;;  %v1894_v9 = vrot.slane %v3282_v62, %v3697_v3  ;;  %v1881_v7 = vsel %vm605_vm6, %v4658_v49, %v1874_v23  ;;  %v1882_v33 = vsel %vm605_vm6, %v4646_v27, %v1876_v25  ;;  %v1902_v10 = vmul.f32 %v1898_v56, %v1885_v42  ;;  %v3283_v49 = vld [vmem:[%s5525_s1 + $0x7] ss:$8 sm:$0x3] }
 0x424   : > { %3418 = vmatpush1.bf16.msra.mxu0 %v3417_v11  ;;  %v1904_v22 = vmul.f32 %v1898_v56, %v1886_v46  ;;  %v1950_v38 = vrot.slane %v3283_v49, %v3699_v4 }
 0x425   : > { %v1870_v1 = vpop.permute.xlu1 %1869  ;;  %3420 = vmatprep.subr.bf16.mxu0 %v3419_v6  ;;  %v4680_v58 = vpop.permute.xlu0 %1871  ;;  %v1901_v23 = vmul.f32 %v1894_v9, %v1881_v7  ;;  %v1903_v47 = vmul.f32 %v1894_v9, %v1882_v33  ;;  %v3284_v33 = vld [vmem:[%s5525_s1 + $0x10] ss:$8 sm:$0x3] }
 0x426   : > { %v3435_v44 = vpack.c.bf16 %v1904_v22, %v1902_v10 }
 0x427   : > { %v3437_v45 = vpack.c.bf16 %v1903_v47, %v1901_v23  ;;  %v2021_v47 = vld [vmem:[%s5530_s6] sm:$0xff] }
 0x428   : > { %3422 = vmatpush1.bf16.msra.mxu0 %v3421_v28  ;;  %v1946_v28 = vrot.slane %v3283_v49, %v3697_v3 }
 0x429   : > { %v1878_v39 = vpop.permute.xlu1 %1877  ;;  %3424 = vmatprep.subr.bf16.mxu0 %v3423_v43  ;;  %v1920_v60 = vpop.permute.xlu0 %1919 }
 0x42a   : > { %v1883_v6 = vsel %vm605_vm6, %v1870_v1, %v1878_v39 }
 0x42b   : > { %v1905_v41 = vmul.f32 %v1894_v9, %v1883_v6 }
 0x42c   : > { %3426 = vmatpush1.bf16.msra.mxu0 %v3425_v48 }
 0x42d   : > { %v1918_v15 = vpop.permute.xlu1 %1917  ;;  %3428 = vmatprep.subr.bf16.mxu0 %v3427_v0  ;;  %v1828_v53 = vpop.permute.xlu0 %1827 }
 0x42e   : > { %v1832_v2 = vsel %vm575_vm4, %v4612_v31, %v1828_v53  ;;  %v1836_v59 = vsel %vm575_vm4, %v1828_v53, %v4612_v31  ;;  %v1887_v31 = vsel %vm605_vm6, %v1878_v39, %v1870_v1 }
 0x42f   : > { %v1855_v11 = vmul.f32 %v1842_v57, %v1832_v2  ;;  %v1856_v30 = vmul.f32 %v1846_v14, %v1836_v59  ;;  %v1906_v16 = vmul.f32 %v1898_v56, %v1887_v31 }
 0x430   : > { %3430 = vmatpush1.bf16.msra.mxu0 %v3429_v19 }
 0x431   : > { %v3433_v27 = vpack.c.bf16 %v1855_v11, %v1853_v21  ;;  %v1926_v25 = vpop.permute.xlu1 %1925  ;;  %v1928_v63 = vpop.permute.xlu0 %1927  ;;  %v3431_v50 = vpack.c.bf16 %v1856_v30, %v1854_v36  ;;  %v1998_v11 = vrot.slane %v3284_v33, %v3697_v3  ;;  %v2002_v30 = vrot.slane %v3284_v33, %v3699_v4 }
 0x432   : > { %v1937_v29 = vsel %vm629_vm5, %v1926_v25, %v1918_v15  ;;  %v1938_v14 = vsel %vm629_vm5, %v1928_v63, %v1920_v60  ;;  %v1933_v1 = vsel %vm629_vm5, %v1918_v15, %v1926_v25  ;;  %v1934_v55 = vsel %vm629_vm5, %v1920_v60, %v1928_v63  ;;  %v2025_v63 = vld [vmem:[%s5530_s6 + $0x20] sm:$0xff] }
 0x433   : > { %3432 = vmatprep.subr.bf16.mxu0 %v3431_v50  ;;  %v1954_v62 = vmul.f32 %v1950_v38, %v1937_v29  ;;  %v1956_v52 = vmul.f32 %v1950_v38, %v1938_v14  ;;  %v1953_v61 = vmul.f32 %v1946_v28, %v1933_v1  ;;  %v1955_v0 = vmul.f32 %v1946_v28, %v1934_v55  ;;  %v2024_v14 = vld [vmem:[%s5530_s6 + $0x18] sm:$0xff]  ;;  %v2027_v55 = vld [vmem:[%s5530_s6 + $0x30] sm:$0xff] }
 0x434   : > { %3434 = vmatpush1.bf16.msra.mxu0 %v3433_v27 }
 0x435   : > { %v1922_v32 = vpop.permute.xlu1 %1921  ;;  %3436 = vmatprep.subr.bf16.mxu0 %v3435_v44  ;;  %v1880_v57 = vpop.permute.xlu0 %1879  ;;  %v3443_v60 = vpack.c.bf16 %v1956_v52, %v1954_v62 }
 0x436   : > { %v1884_v43 = vsel %vm605_vm6, %v4680_v58, %v1880_v57  ;;  %v1888_v20 = vsel %vm605_vm6, %v1880_v57, %v4680_v58 }
 0x437   : > { %v1907_v34 = vmul.f32 %v1894_v9, %v1884_v43  ;;  %v1908_v17 = vmul.f32 %v1898_v56, %v1888_v20  ;;  %v3445_v56 = vpack.c.bf16 %v1955_v0, %v1953_v61  ;;  %v2031_v20 = vld [vmem:[%s5530_s6 + $0x50] sm:$0xff] }
 0x438   : > { %3438 = vmatpush1.bf16.msra.mxu0 %v3437_v45  ;;  %v2023_v0 = vld [vmem:[%s5530_s6 + $0x10] sm:$0xff] }
 0x439   : > { %v3441_v39 = vpack.c.bf16 %v1907_v34, %v1905_v41  ;;  %v1930_v24 = vpop.permute.xlu1 %1929  ;;  %v1924_v13 = vpop.permute.xlu0 %1923  ;;  %v3439_v48 = vpack.c.bf16 %v1908_v17, %v1906_v16 }
 0x43a   : > { %v1935_v42 = vsel %vm629_vm5, %v1922_v32, %v1930_v24  ;;  %v1939_v46 = vsel %vm629_vm5, %v1930_v24, %v1922_v32  ;;  %v2028_v32 = vld [vmem:[%s5530_s6 + $0x38] sm:$0xff] }
 0x43b   : > { %3440 = vmatprep.subr.bf16.mxu0 %v3439_v48  ;;  %v1957_v9 = vmul.f32 %v1946_v28, %v1935_v42  ;;  %v1958_v15 = vmul.f32 %v1950_v38, %v1939_v46  ;;  %v2029_v42 = vld [vmem:[%s5530_s6 + $0x40] sm:$0xff]  ;;  %v2032_v46 = vld [vmem:[%s5530_s6 + $0x58] sm:$0xff] }
 0x43c   : > { %3442 = vmatpush1.bf16.msra.mxu0 %v3441_v39 }
 0x43d   : > { %v1970_v58 = vpop.permute.xlu1 %1969  ;;  %3444 = vmatprep.subr.bf16.mxu0 %v3443_v60  ;;  %v1932_v19 = vpop.permute.xlu0 %1931  ;;  %v2026_v60 = vld [vmem:[%s5530_s6 + $0x28] sm:$0xff] }
 0x43e   : > { %v1936_v21 = vsel %vm629_vm5, %v1924_v13, %v1932_v19  ;;  %v1940_v36 = vsel %vm629_vm5, %v1932_v19, %v1924_v13  ;;  %v2030_v13 = vld [vmem:[%s5530_s6 + $0x48] sm:$0xff] }
 0x43f   : > { %v1959_v53 = vmul.f32 %v1946_v28, %v1936_v21  ;;  %v1960_v7 = vmul.f32 %v1950_v38, %v1940_v36 }
 0x440   : > { %3446 = vmatpush1.bf16.msra.mxu0 %v3445_v56 }
 0x441   : > { %v3449_v2 = vpack.c.bf16 %v1959_v53, %v1957_v9  ;;  %v1978_v59 = vpop.permute.xlu1 %1977  ;;  %v1972_v10 = vpop.permute.xlu0 %1971  ;;  %v3447_v22 = vpack.c.bf16 %v1960_v7, %v1958_v15 }
 0x442   : > { %v1985_v49 = vsel %vm659_vm7, %v1970_v58, %v1978_v59  ;;  %v1989_v23 = vsel %vm659_vm7, %v1978_v59, %v1970_v58 }
 0x443   : > { %3448 = vmatprep.subr.bf16.mxu0 %v3447_v22  ;;  %v2005_v31 = vmul.f32 %v1998_v11, %v1985_v49  ;;  %v2006_v38 = vmul.f32 %v2002_v30, %v1989_v23 }
 0x444   : > { %3450 = vmatpush1.bf16.msra.mxu0 %v3449_v2 }
 0x445   : > { %v1974_v27 = vpop.permute.xlu1 %1973  ;;  %v1980_v25 = vpop.permute.xlu0 %1979 }
 0x446   : > { %v1986_v50 = vsel %vm659_vm7, %v1972_v10, %v1980_v25  ;;  %v1990_v6 = vsel %vm659_vm7, %v1980_v25, %v1972_v10 }
 0x447   : > { %v2007_v44 = vmul.f32 %v1998_v11, %v1986_v50  ;;  %v2008_v29 = vmul.f32 %v2002_v30, %v1990_v6  ;;  %2206 = vmatmul.mubr.f32.vlgmr.msra.gmra.mrb[16].mxu0 %v2021_v47 }
 0x448   : > { %2211 = vmatprep.mubr.f32.mxu0 %v2025_v63 }
 0x449   : > { %v3453_v45 = vpack.c.bf16 %v2007_v44, %v2005_v31  ;;  %v1982_v41 = vpop.permute.xlu1 %1981  ;;  %v1976_v16 = vpop.permute.xlu0 %1975  ;;  %v3451_v28 = vpack.c.bf16 %v2008_v29, %v2006_v38 }
 0x44a   : > { %v1987_v57 = vsel %vm659_vm7, %v1974_v27, %v1982_v41  ;;  %v1991_v1 = vsel %vm659_vm7, %v1982_v41, %v1974_v27 }
 0x44b   : > { %2212 = vmatmul.mubr.f32.gmra.mrb[18].mxu0 %v2024_v14  ;;  %3452 = vmatprep.subr.bf16.mxu0 %v3451_v28  ;;  %v2009_v34 = vmul.f32 %v1998_v11, %v1987_v57  ;;  %v2010_v17 = vmul.f32 %v2002_v30, %v1991_v1 }
 0x44c   : > { %3454 = vmatpush1.bf16.msra.mxu0 %v3453_v45  ;;  %2217 = vmatprep.mubr.f32.mxu0 %v2028_v32 }
 0x44d   : > { %v1984_v43 = vpop.permute.xlu0 %1983 }
 0x44e   : > { %v1988_v62 = vsel %vm659_vm7, %v1976_v16, %v1984_v43  ;;  %v1992_v52 = vsel %vm659_vm7, %v1984_v43, %v1976_v16 }
 0x44f   : > { %v2011_v39 = vmul.f32 %v1998_v11, %v1988_v62  ;;  %v2012_v24 = vmul.f32 %v2002_v30, %v1992_v52  ;;  %2218 = vmatmul.mubr.f32.gmra.mrb[20].mxu0 %v2027_v55 }
 0x450   : > { %2223 = vmatprep.mubr.f32.mxu0 %v2031_v20 }
 0x451   : > { %v3457_v48 = vpack.c.bf16 %v2011_v39, %v2009_v34  ;;  %v3455_v61 = vpack.c.bf16 %v2012_v24, %v2010_v17 }
 0x453   : > { %2224 = vmatmul.mubr.f32.gmra.mrb[22].mxu0 %v2030_v13  ;;  %3456 = vmatprep.subr.bf16.mxu0 %v3455_v61  ;;  %v2772_v61 = vld [vmem:[%s5532_s8 + $0x8] sm:$0xff] }
 0x454   : > { %3458 = vmatpush1.bf16.msra.mxu0 %v3457_v48  ;;  %2294 = vmatprep.mubr.f32.mxu0 %v5537_v12 }
 0x455   : > { %2955 = vmatprep.mubr.f32.mxu1 %v2772_v61 }
 0x457   : > { %3285 = vmatmul.mubr.msk.f32.vlgmr.msra.gmra.mrb[16].mxu0 %vm1378_vm10, %v2023_v0 }
 0x458   : > { %2300 = vmatprep.mubr.f32.mxu0 %v5537_v12 }
 0x45a   : > { %v2112_v58 = vpop.permute.xlu1 %2111 }
 0x45b   : > { %3286 = vmatmul.mubr.msk.f32.gmra.mrb[18].mxu0 %vm1378_vm10, %v2026_v60 }
 0x45c   : > { %2306 = vmatprep.mubr.f32.mxu0 %v5537_v12 }
 0x45e   : > { %v2117_v53 = vpop.permute.xlu0 %2116  ;;  %v2122_v47 = vpop.permute.xlu1 %2121 }
 0x45f   : > { %3287 = vmatmul.mubr.msk.f32.gmra.mrb[20].mxu0 %vm1378_vm10, %v2029_v42  ;;  %v2855_v42 = vld [vmem:[%s5533_s9] sm:$0xff] }
 0x460   : > { %2312 = vmatprep.mubr.f32.mxu0 %v5537_v12 }
 0x462   : > { %v2127_v45 = vpop.permute.xlu0 %2126 }
 0x463   : > { %3288 = vmatmul.mubr.msk.f32.gmra.mrb[22].mxu0 %vm1378_vm10, %v2032_v46 }
 0x464   : > { %3044 = vmatprep.mubr.f32.mxu0 %v5537_v12 }
 0x52a   : > { %v2296_v19 = vpop.f32.mrb[16].mxu0 }
 0x52b   : > { %v3547_v56 = vadd.f32 %v2296_v19, %v2112_v58  ;;  %v2298_v21 = vpop.f32.mrb[17].mxu0  ;;  %v2857_v19 = vld [vmem:[%s5533_s9 + $0x10] sm:$0xff] }
 0x52c   : > { %v3548_v36 = vadd.f32 %v2298_v21, %v2112_v58 }
 0x52d   : > { %v4830_v9 = vmax.f32 %v3547_v56, 0.0  ;;  %v3069_v15 = vadd.f32 %v3547_v56, %v4355_v54  ;;  %v2856_v56 = vld [vmem:[%s5533_s9 + $0x8] sm:$0xff] }
 0x52e   : > { %v4839_v7 = vmax.f32 %v3548_v36, 0.0  ;;  %v3070_v33 = vadd.f32 %v3548_v36, %v4377_v37  ;;  %v2302_v2 = vpop.f32.mrb[18].mxu0 }
 0x52f   : > { %3077 = vst [vmem:[%s4828_s28] sm:$0xff] %v3069_v15  ;;  %v3085_v59 = vadd.f32 %v4830_v9, %v4355_v54  ;;  %v3549_v10 = vadd.f32 %v2302_v2, %v2117_v53  ;;  %v2304_v22 = vpop.f32.mrb[19].mxu0  ;;  %2327 = vrot.lane.b32.xlu1 %v4830_v9, %s3610_s13  ;;  %v2858_v15 = vld [vmem:[%s5533_s9 + $0x18] sm:$0xff]  ;;  %v2351_v2 = vld [vmem:[%s5525_s1] ss:$8 sm:$0x3] }
 0x530   : > { %3078 = vst [vmem:[%s4828_s28 + $0x8] sm:$0xff] %v3070_v33  ;;  %v3086_v11 = vadd.f32 %v4839_v7, %v4377_v37  ;;  %v3550_v30 = vadd.f32 %v2304_v22, %v2117_v53  ;;  %v5053_v22 = vrot.slane %v2351_v2, %v3697_v3 }
 0x531   : > { %3093 = vst [vmem:[%s4837_s20] sm:$0xff] %v3085_v59  ;;  %v4851_v49 = vmax.f32 %v3549_v10, 0.0  ;;  %v3071_v23 = vadd.f32 %v3549_v10, %v4359_v26 }
 0x532   : > { %3094 = vst [vmem:[%s4837_s20 + $0x8] sm:$0xff] %v3086_v11  ;;  %v4855_v27 = vmax.f32 %v3550_v30, 0.0  ;;  %v3072_v25 = vadd.f32 %v3550_v30, %v4383_v35  ;;  %v2308_v63 = vpop.f32.mrb[20].mxu0  ;;  %v5056_v11 = vrot.slane %v2351_v2, %v3699_v4  ;;  %v5061_v30 = vld [vmem:[%s5525_s1 + $0x1] ss:$8 sm:$0x3] }
 0x533   : > { %3079 = vst [vmem:[%s4828_s28 + $0x10] sm:$0xff] %v3071_v23  ;;  %v3087_v50 = vadd.f32 %v4851_v49, %v4359_v26  ;;  %v3551_v6 = vadd.f32 %v2308_v63, %v2122_v47  ;;  %v2310_v31 = vpop.f32.mrb[21].mxu0  ;;  %2379 = vrot.lane.b32.xlu1 %v4830_v9, %s3609_s30  ;;  %2329 = vrot.lane.b32.xlu0 %v4851_v49, %s3610_s13 }
 0x534   : > { %3080 = vst [vmem:[%s4828_s28 + $0x18] sm:$0xff] %v3072_v25  ;;  %v3088_v38 = vadd.f32 %v4855_v27, %v4383_v35  ;;  %v3552_v44 = vadd.f32 %v2310_v31, %v2122_v47 }
 0x535   : > { %3095 = vst [vmem:[%s4837_s20 + $0x10] sm:$0xff] %v3087_v50  ;;  %v4869_v29 = vmax.f32 %v3551_v6, 0.0  ;;  %v3073_v14 = vadd.f32 %v3551_v6, %v4397_v51  ;;  %v5071_v50 = vrot.slane %v5061_v30, %v3697_v3 }
 0x536   : > { %3096 = vst [vmem:[%s4837_s20 + $0x18] sm:$0xff] %v3088_v38  ;;  %v4873_v41 = vmax.f32 %v3552_v44, 0.0  ;;  %v3074_v16 = vadd.f32 %v3552_v44, %v4417_v8  ;;  %v2314_v28 = vpop.f32.mrb[22].mxu0 }
 0x537   : > { %3081 = vst [vmem:[%s4828_s28 + $0x20] sm:$0xff] %v3073_v14  ;;  %v3089_v32 = vadd.f32 %v4869_v29, %v4397_v51  ;;  %v3553_v57 = vadd.f32 %v2314_v28, %v2127_v45  ;;  %v2316_v1 = vpop.f32.mrb[23].mxu0  ;;  %2431 = vrot.lane.b32.xlu1 %v4830_v9, %s3611_s14  ;;  %2381 = vrot.lane.b32.xlu0 %v4851_v49, %s3609_s30  ;;  %v3290_v28 = vld [vmem:[%s5525_s1 + $0x2] ss:$8 sm:$0x3] }
 0x538   : > { %3082 = vst [vmem:[%s4828_s28 + $0x28] sm:$0xff] %v3074_v16  ;;  %v3090_v55 = vadd.f32 %v4873_v41, %v4417_v8  ;;  %v3554_v43 = vadd.f32 %v2316_v1, %v2127_v45 }
 0x539   : > { %3097 = vst [vmem:[%s4837_s20 + $0x20] sm:$0xff] %v3089_v32  ;;  %v4887_v20 = vmax.f32 %v3553_v57, 0.0  ;;  %v3075_v62 = vadd.f32 %v3553_v57, %v4403_v5 }
 0x53a   : > { %3098 = vst [vmem:[%s4837_s20 + $0x28] sm:$0xff] %v3090_v55  ;;  %v4891_v52 = vmax.f32 %v3554_v43, 0.0  ;;  %v3076_v34 = vadd.f32 %v3554_v43, %v4423_v40 }
 0x53b   : > { %3083 = vst [vmem:[%s4828_s28 + $0x30] sm:$0xff] %v3075_v62  ;;  %v3091_v17 = vadd.f32 %v4887_v20, %v4403_v5  ;;  %2483 = vrot.lane.b32.xlu1 %v4830_v9, %s3608_s29  ;;  %2433 = vrot.lane.b32.xlu0 %v4851_v49, %s3611_s14 }
 0x53c   : > { %3084 = vst [vmem:[%s4828_s28 + $0x38] sm:$0xff] %v3076_v34  ;;  %v3092_v39 = vadd.f32 %v4891_v52, %v4423_v40  ;;  %v5098_v34 = vrot.slane %v3290_v28, %v3697_v3 }
 0x53d   : > { %3099 = vst [vmem:[%s4837_s20 + $0x30] sm:$0xff] %v3091_v17  ;;  %v5101_v17 = vrot.slane %v3290_v28, %v3699_v4  ;;  %v2412_v28 = vrot.slane %v5061_v30, %v3699_v4 }
 0x53e   : > { %3100 = vst [vmem:[%s4837_s20 + $0x38] sm:$0xff] %v3092_v39 }
 0x53f   : > { %2563 = vrot.lane.b32.xlu1 %v4830_v9, %s3612_s15  ;;  %2485 = vrot.lane.b32.xlu0 %v4851_v49, %s3608_s29 }
 0x543   : > { %2615 = vrot.lane.b32.xlu1 %v4830_v9, %s3614_s17  ;;  %2565 = vrot.lane.b32.xlu0 %v4851_v49, %s3612_s15 }
 0x547   : > { %2335 = vrot.lane.b32.xlu1 %v4839_v7, %s3610_s13  ;;  %2617 = vrot.lane.b32.xlu0 %v4851_v49, %s3614_s17 }
 0x54b   : > { %2387 = vrot.lane.b32.xlu1 %v4839_v7, %s3609_s30  ;;  %2337 = vrot.lane.b32.xlu0 %v4855_v27, %s3610_s13 }
 0x54f   : > { %2439 = vrot.lane.b32.xlu1 %v4839_v7, %s3611_s14  ;;  %2389 = vrot.lane.b32.xlu0 %v4855_v27, %s3609_s30 }
 0x553   : > { %2491 = vrot.lane.b32.xlu1 %v4839_v7, %s3608_s29  ;;  %2441 = vrot.lane.b32.xlu0 %v4855_v27, %s3611_s14 }
 0x557   : > { %2571 = vrot.lane.b32.xlu1 %v4839_v7, %s3612_s15  ;;  %2493 = vrot.lane.b32.xlu0 %v4855_v27, %s3608_s29 }
 0x55b   : > { %2331 = vrot.lane.b32.xlu1 %v4869_v29, %s3610_s13  ;;  %2573 = vrot.lane.b32.xlu0 %v4855_v27, %s3612_s15 }
 0x55f   : > { %2383 = vrot.lane.b32.xlu1 %v4869_v29, %s3609_s30  ;;  %2333 = vrot.lane.b32.xlu0 %v4887_v20, %s3610_s13 }
 0x563   : > { %2435 = vrot.lane.b32.xlu1 %v4869_v29, %s3611_s14  ;;  %2385 = vrot.lane.b32.xlu0 %v4887_v20, %s3609_s30 }
 0x567   : > { %2487 = vrot.lane.b32.xlu1 %v4869_v29, %s3608_s29  ;;  %2437 = vrot.lane.b32.xlu0 %v4887_v20, %s3611_s14 }
 0x56b   : > { %2567 = vrot.lane.b32.xlu1 %v4869_v29, %s3612_s15  ;;  %2489 = vrot.lane.b32.xlu0 %v4887_v20, %s3608_s29 }
 0x56f   : > { %2339 = vrot.lane.b32.xlu1 %v4873_v41, %s3610_s13  ;;  %2569 = vrot.lane.b32.xlu0 %v4887_v20, %s3612_s15 }
 0x573   : > { %2623 = vrot.lane.b32.xlu1 %v4839_v7, %s3614_s17  ;;  %2341 = vrot.lane.b32.xlu0 %v4891_v52, %s3610_s13 }
 0x577   : > { %2391 = vrot.lane.b32.xlu1 %v4873_v41, %s3609_s30  ;;  %2625 = vrot.lane.b32.xlu0 %v4855_v27, %s3614_s17 }
 0x57b   : > { %2443 = vrot.lane.b32.xlu1 %v4873_v41, %s3611_s14  ;;  %2393 = vrot.lane.b32.xlu0 %v4891_v52, %s3609_s30 }
 0x57f   : > { %2495 = vrot.lane.b32.xlu1 %v4873_v41, %s3608_s29  ;;  %2621 = vrot.lane.b32.xlu0 %v4887_v20, %s3614_s17 }
 0x583   : > { %2575 = vrot.lane.b32.xlu1 %v4873_v41, %s3612_s15  ;;  %2445 = vrot.lane.b32.xlu0 %v4891_v52, %s3611_s14 }
 0x587   : > { %2619 = vrot.lane.b32.xlu1 %v4869_v29, %s3614_s17  ;;  %2669 = vrot.lane.b32.xlu0 %v4851_v49, %s3613_s16 }
 0x58b   : > { %2627 = vrot.lane.b32.xlu1 %v4873_v41, %s3614_s17  ;;  %2497 = vrot.lane.b32.xlu0 %v4891_v52, %s3608_s29 }
 0x58f   : > { %2667 = vrot.lane.b32.xlu1 %v4830_v9, %s3613_s16  ;;  %2677 = vrot.lane.b32.xlu0 %v4855_v27, %s3613_s16 }
 0x593   : > { %2675 = vrot.lane.b32.xlu1 %v4839_v7, %s3613_s16  ;;  %2721 = vrot.lane.b32.xlu0 %v4851_v49, %s3615_s18 }
 0x597   : > { %2719 = vrot.lane.b32.xlu1 %v4830_v9, %s3615_s18  ;;  %2729 = vrot.lane.b32.xlu0 %v4855_v27, %s3615_s18 }
 0x59b   : > { %2727 = vrot.lane.b32.xlu1 %v4839_v7, %s3615_s18  ;;  %2577 = vrot.lane.b32.xlu0 %v4891_v52, %s3612_s15  ;;  %s5503_s15 = scalar_lea.vmem %s5536_s12, %s4822_s25 }
 0x59f   : > { %2671 = vrot.lane.b32.xlu1 %v4869_v29, %s3613_s16  ;;  %2673 = vrot.lane.b32.xlu0 %v4887_v20, %s3613_s16 }
 0x5a1   : > { %v2328_v24 = vpop.permute.xlu1 %2327 }
 0x5a3   : > { %2679 = vrot.lane.b32.xlu1 %v4873_v41, %s3613_s16  ;;  %2629 = vrot.lane.b32.xlu0 %v4891_v52, %s3614_s17 }
 0x5a5   : > { %v5010_v13 = vpop.permute.xlu1 %2379  ;;  %v2330_v48 = vpop.permute.xlu0 %2329 }
 0x5a7   : > { %2723 = vrot.lane.b32.xlu1 %v4869_v29, %s3615_s18  ;;  %2725 = vrot.lane.b32.xlu0 %v4887_v20, %s3615_s18 }
 0x5a9   : > { %v2432_v0 = vpop.permute.xlu1 %2431  ;;  %v5019_v60 = vpop.permute.xlu0 %2381 }
 0x5ab   : > { %2731 = vrot.lane.b32.xlu1 %v4873_v41, %s3615_s18  ;;  %2681 = vrot.lane.b32.xlu0 %v4891_v52, %s3613_s16 }
 0x5ad   : > { %v2484_v46 = vpop.permute.xlu1 %2483  ;;  %v2434_v58 = vpop.permute.xlu0 %2433 }
 0x5af   : > { %2861 = vperm.xlu1 %3598, %v2855_v42   ;;  %2733 = vrot.lane.b32.xlu0 %v4891_v52, %s3615_s18 }
 0x5b1   : > { %v5036_v21 = vpop.permute.xlu1 %2563  ;;  %v5038_v36 = vpop.permute.xlu0 %2485 }
 0x5b3   : > { %2871 = vperm.xlu1 %3598, %v2857_v19   ;;  %2866 = vperm.xlu0 %3597, %v2856_v56  }
 0x5b5   : > { %v5043_v53 = vpop.permute.xlu1 %2615  ;;  %v5045_v33 = vpop.permute.xlu0 %2565 }
 0x5b7   : > { %2876 = vperm.xlu0 %3597, %v2858_v15  }
 0x5b9   : > { %v2336_v59 = vpop.permute.xlu1 %2335  ;;  %v5050_v10 = vpop.permute.xlu0 %2617 }
 0x5ba   : > { %v2343_v23 = vsel %vm449_vm1, %v2328_v24, %v2336_v59  ;;  %v2347_v47 = vsel %vm449_vm1, %v2336_v59, %v2328_v24  ;;  %v3291_v24 = vld [vmem:[%s5525_s1 + $0x3] ss:$8 sm:$0x3] }
 0x5bb   : > { %v2363_v38 = vmul.f32 %v5053_v22, %v2347_v47  ;;  %v2364_v44 = vmul.f32 %v5056_v11, %v2343_v23  ;;  %v5116_v15 = vrot.slane %v3291_v24, %v3697_v3  ;;  %v5119_v2 = vrot.slane %v3291_v24, %v3699_v4 }
 0x5bd   : > { %v5067_v25 = vpop.permute.xlu1 %2387  ;;  %v2338_v63 = vpop.permute.xlu0 %2337 }
 0x5be   : > { %v2344_v6 = vsel %vm449_vm1, %v2330_v48, %v2338_v63  ;;  %v2348_v31 = vsel %vm449_vm1, %v2338_v63, %v2330_v48  ;;  %v2399_v16 = vsel %vm472_vm2, %v5067_v25, %v5010_v13  ;;  %v2395_v5 = vsel %vm472_vm2, %v5010_v13, %v5067_v25 }
 0x5bf   : > { %v2365_v14 = vmul.f32 %v5053_v22, %v2348_v31  ;;  %v2366_v45 = vmul.f32 %v5056_v11, %v2344_v6  ;;  %v5095_v62 = vmul.f32 %v5071_v50, %v2399_v16  ;;  %v2416_v37 = vmul.f32 %v2412_v28, %v2395_v5 }
 0x5c1   : > { %v3461_v32 = vpack.c.bf16 %v2365_v14, %v2363_v38  ;;  %v2440_v57 = vpop.permute.xlu1 %2439  ;;  %v5088_v1 = vpop.permute.xlu0 %2389  ;;  %v3459_v55 = vpack.c.bf16 %v2366_v45, %v2364_v44 }
 0x5c2   : > { %v2400_v43 = vsel %vm472_vm2, %v5088_v1, %v5019_v60  ;;  %v2447_v48 = vsel %vm502_vm3, %v2432_v0, %v2440_v57  ;;  %v2451_v61 = vsel %vm502_vm3, %v2440_v57, %v2432_v0  ;;  %v3293_v0 = vld [vmem:[%s5525_s1 + $0x5] ss:$8 sm:$0x3] }
 0x5c3   : > { %v5104_v39 = vmul.f32 %v5071_v50, %v2400_v43  ;;  %3460 = vmatprep.subr.bf16.mxu1 %v3459_v55  ;;  %v5129_v47 = vmul.f32 %v5098_v34, %v2451_v61  ;;  %v5132_v63 = vmul.f32 %v5101_v17, %v2447_v48  ;;  %v5147_v14 = vrot.slane %v3293_v0, %v3697_v3 }
 0x5c4   : > { %3462 = vmatpush1.bf16.msra.mxu1 %v3461_v32  ;;  %v5152_v32 = vrot.slane %v3293_v0, %v3699_v4 }
 0x5c5   : > { %v2492_v19 = vpop.permute.xlu1 %2491  ;;  %v2442_v56 = vpop.permute.xlu0 %2441 }
 0x5c6   : > { %v2448_v59 = vsel %vm502_vm3, %v2434_v58, %v2442_v56  ;;  %v2452_v23 = vsel %vm502_vm3, %v2442_v56, %v2434_v58  ;;  %v2499_v38 = vsel %vm526_vm0, %v2484_v46, %v2492_v19  ;;  %v2503_v58 = vsel %vm526_vm0, %v2492_v19, %v2484_v46 }
 0x5c7   : > { %v5135_v6 = vmul.f32 %v5098_v34, %v2452_v23  ;;  %v5138_v31 = vmul.f32 %v5101_v17, %v2448_v59  ;;  %v5164_v43 = vmul.f32 %v5116_v15, %v2503_v58  ;;  %v5167_v24 = vmul.f32 %v5119_v2, %v2499_v38 }
 0x5c9   : > { %v2572_v45 = vpop.permute.xlu1 %2571  ;;  %v2494_v16 = vpop.permute.xlu0 %2493 }
 0x5ca   : > { %v2579_v57 = vsel %vm575_vm4, %v5036_v21, %v2572_v45  ;;  %v2500_v46 = vsel %vm526_vm0, %v5038_v36, %v2494_v16  ;;  %v2504_v55 = vsel %vm526_vm0, %v2494_v16, %v5038_v36  ;;  %v2583_v19 = vsel %vm575_vm4, %v2572_v45, %v5036_v21 }
 0x5cb   : > { %v5170_v48 = vmul.f32 %v5116_v15, %v2504_v55  ;;  %v5173_v61 = vmul.f32 %v5119_v2, %v2500_v46  ;;  %v5189_v58 = vmul.f32 %v5147_v14, %v2579_v57  ;;  %v5192_v21 = vmul.f32 %v5152_v32, %v2583_v19  ;;  %v3294_v46 = vld [vmem:[%s5525_s1 + $0x6] ss:$8 sm:$0x3] }
 0x5cc   : > { %v5232_v8 = vrot.slane %v3294_v46, %v3697_v3 }
 0x5cd   : > { %v2332_v36 = vpop.permute.xlu1 %2331  ;;  %v2574_v59 = vpop.permute.xlu0 %2573  ;;  %5556 = vst [vmem:[#allocation12_spill] sm:$0xff] %v5189_v58 }
 0x5ce   : > { %v2580_v0 = vsel %vm575_vm4, %v5045_v33, %v2574_v59  ;;  %v2584_v38 = vsel %vm575_vm4, %v2574_v59, %v5045_v33  ;;  %v2396_v33 = vsel %vm472_vm2, %v5019_v60, %v5088_v1  ;;  %v5235_v1 = vrot.slane %v3294_v46, %v3699_v4 }
 0x5cf   : > { %v5195_v45 = vmul.f32 %v5147_v14, %v2580_v0  ;;  %v5198_v16 = vmul.f32 %v5152_v32, %v2584_v38  ;;  %v2418_v60 = vmul.f32 %v2412_v28, %v2396_v33 }
 0x5d1   : > { %v2384_v55 = vpop.permute.xlu1 %2383  ;;  %v2334_v12 = vpop.permute.xlu0 %2333 }
 0x5d5   : > { %v2436_v59 = vpop.permute.xlu1 %2435  ;;  %v2386_v57 = vpop.permute.xlu0 %2385 }
 0x5d9   : > { %v5204_v56 = vpop.permute.xlu1 %2487  ;;  %v5206_v19 = vpop.permute.xlu0 %2437 }
 0x5dd   : > { %v5208_v23 = vpop.permute.xlu1 %2567  ;;  %v5210_v0 = vpop.permute.xlu0 %2489 }
 0x5e1   : > { %v2340_v38 = vpop.permute.xlu1 %2339  ;;  %v5212_v44 = vpop.permute.xlu0 %2569 }
 0x5e2   : > { %v2345_v42 = vsel %vm449_vm1, %v2332_v36, %v2340_v38  ;;  %v2349_v40 = vsel %vm449_vm1, %v2340_v38, %v2332_v36 }
 0x5e3   : > { %v2367_v38 = vmul.f32 %v5053_v22, %v2349_v40  ;;  %v2368_v26 = vmul.f32 %v5056_v11, %v2345_v42 }
 0x5e5   : > { %v2624_v51 = vpop.permute.xlu1 %2623  ;;  %v2342_v35 = vpop.permute.xlu0 %2341 }
 0x5e6   : > { %v2346_v30 = vsel %vm449_vm1, %v2334_v12, %v2342_v35  ;;  %v2350_v36 = vsel %vm449_vm1, %v2342_v35, %v2334_v12  ;;  %v2631_v46 = vsel %vm605_vm6, %v5043_v53, %v2624_v51  ;;  %v2635_v33 = vsel %vm605_vm6, %v2624_v51, %v5043_v53 }
 0x5e7   : > { %v2369_v13 = vmul.f32 %v5053_v22, %v2350_v36  ;;  %v2370_v25 = vmul.f32 %v5056_v11, %v2346_v30  ;;  %v3467_v22 = vpack.c.bf16 %v2418_v60, %v2416_v37  ;;  %v5258_v11 = vmul.f32 %v5232_v8, %v2631_v46 }
 0x5e8   : > { %v5261_v42 = vmul.f32 %v5235_v1, %v2635_v33 }
 0x5e9   : > { %v3465_v54 = vpack.c.bf16 %v2369_v13, %v2367_v38  ;;  %v2392_v58 = vpop.permute.xlu1 %2391  ;;  %v2626_v12 = vpop.permute.xlu0 %2625  ;;  %v3463_v35 = vpack.c.bf16 %v2370_v25, %v2368_v26 }
 0x5ea   : > { %v2632_v40 = vsel %vm605_vm6, %v5050_v10, %v2626_v12  ;;  %v2636_v5 = vsel %vm605_vm6, %v2626_v12, %v5050_v10  ;;  %v2397_v53 = vsel %vm472_vm2, %v2384_v55, %v2392_v58  ;;  %v2401_v10 = vsel %vm472_vm2, %v2392_v58, %v2384_v55 }
 0x5eb   : > { %v5264_v51 = vmul.f32 %v5232_v8, %v2632_v40  ;;  %v5267_v26 = vmul.f32 %v5235_v1, %v2636_v5  ;;  %3464 = vmatprep.subr.bf16.mxu1 %v3463_v35  ;;  %v2419_v25 = vmul.f32 %v5071_v50, %v2401_v10  ;;  %v2420_v46 = vmul.f32 %v2412_v28, %v2397_v53 }
 0x5ec   : > { %3466 = vmatpush1.bf16.msra.mxu1 %v3465_v54  ;;  %v5557_v55 = vpack.c.bf16 %v5104_v39, %v5095_v62 }
 0x5ed   : > { %v3509_v37 = vpack.c.bf16 %v5264_v51, %v5258_v11  ;;  %v2444_v60 = vpop.permute.xlu1 %2443  ;;  %3468 = vmatprep.subr.bf16.mxu1 %v3467_v22  ;;  %v2394_v30 = vpop.permute.xlu0 %2393  ;;  %v3507_v36 = vpack.c.bf16 %v5267_v26, %v5261_v42 }
 0x5ee   : > { %v2398_v38 = vsel %vm472_vm2, %v2386_v57, %v2394_v30  ;;  %v2402_v13 = vsel %vm472_vm2, %v2394_v30, %v2386_v57  ;;  %v2449_v5 = vsel %vm502_vm3, %v2436_v59, %v2444_v60  ;;  %v2453_v57 = vsel %vm502_vm3, %v2444_v60, %v2436_v59 }
 0x5ef   : > { %v2421_v54 = vmul.f32 %v5071_v50, %v2402_v13  ;;  %v2422_v58 = vmul.f32 %v2412_v28, %v2398_v38  ;;  %v5558_v50 = vpack.c.bf16 %v5138_v31, %v5132_v63  ;;  %v2471_v53 = vmul.f32 %v5098_v34, %v2453_v57 }
 0x5f0   : > { %3470 = vmatpush1.bf16.msra.mxu1 %v5557_v55  ;;  %v2472_v10 = vmul.f32 %v5101_v17, %v2449_v5  ;;  %v5559_v63 = vpack.c.bf16 %v5135_v6, %v5129_v47 }
 0x5f1   : > { %v3473_v33 = vpack.c.bf16 %v2421_v54, %v2419_v25  ;;  %v2496_v12 = vpop.permute.xlu1 %2495  ;;  %v5286_v35 = vpop.permute.xlu0 %2621  ;;  %v3471_v40 = vpack.c.bf16 %v2422_v58, %v2420_v46  ;;  %v5560_v25 = vpack.c.bf16 %v5173_v61, %v5167_v24  ;;  %v5561_v61 = vpack.c.bf16 %v5170_v48, %v5164_v43 }
 0x5f3   : > { %3472 = vmatprep.subr.bf16.mxu1 %v3471_v40 }
 0x5f4   : > { %3474 = vmatpush1.bf16.msra.mxu1 %v3473_v33 }
 0x5f5   : > { %v2576_v22 = vpop.permute.xlu1 %2575  ;;  %3476 = vmatprep.subr.bf16.mxu1 %v5558_v50  ;;  %v2446_v62 = vpop.permute.xlu0 %2445 }
 0x5f6   : > { %v2450_v39 = vsel %vm502_vm3, %v5206_v19, %v2446_v62  ;;  %v2454_v28 = vsel %vm502_vm3, %v2446_v62, %v5206_v19  ;;  %v3292_v19 = vld [vmem:[%s5525_s1 + $0x4] ss:$8 sm:$0x3] }
 0x5f7   : > { %v2473_v59 = vmul.f32 %v5098_v34, %v2454_v28  ;;  %v2474_v60 = vmul.f32 %v5101_v17, %v2450_v39  ;;  %v2501_v34 = vsel %vm526_vm0, %v5204_v56, %v2496_v12  ;;  %v2505_v17 = vsel %vm526_vm0, %v2496_v12, %v5204_v56 }
 0x5f8   : > { %3478 = vmatpush1.bf16.msra.mxu1 %v5559_v63  ;;  %v2544_v47 = vrot.slane %v3292_v19, %v3699_v4  ;;  %v2523_v55 = vmul.f32 %v5116_v15, %v2505_v17  ;;  %v2524_v33 = vmul.f32 %v5119_v2, %v2501_v34  ;;  %v2540_v40 = vrot.slane %v3292_v19, %v3697_v3 }
 0x5f9   : > { %v3481_v31 = vpack.c.bf16 %v2473_v59, %v2471_v53  ;;  %v5308_v30 = vpop.permute.xlu1 %2619  ;;  %v5310_v38 = vpop.permute.xlu0 %2669  ;;  %v3479_v13 = vpack.c.bf16 %v2474_v60, %v2472_v10 }
 0x5fa   : > { %v2550_v56 = vmul.f32 %v2544_v47, %v4855_v27  ;;  %v2548_v50 = vmul.f32 %v2544_v47, %v4839_v7  ;;  %v2549_v62 = vmul.f32 %v2540_v40, %v4851_v49  ;;  %v2547_v43 = vmul.f32 %v2540_v40, %v4830_v9  ;;  %v3296_v7 = vld [vmem:[%s5525_s1 + $0x10] ss:$8 sm:$0x3] }
 0x5fb   : > { %3480 = vmatprep.subr.bf16.mxu1 %v3479_v13  ;;  %v2552_v28 = vmul.f32 %v2544_v47, %v4873_v41  ;;  %v2553_v53 = vmul.f32 %v2540_v40, %v4887_v20  ;;  %v2551_v59 = vmul.f32 %v2540_v40, %v4869_v29  ;;  %v5357_v9 = vrot.slane %v3296_v7, %v3697_v3 }
 0x5fc   : > { %3482 = vmatpush1.bf16.msra.mxu1 %v3481_v31  ;;  %v3493_v10 = vpack.c.bf16 %v2549_v62, %v2547_v43  ;;  %v5360_v60 = vrot.slane %v3296_v7, %v3699_v4  ;;  %v2581_v20 = vsel %vm575_vm4, %v5208_v23, %v2576_v22  ;;  %v2585_v31 = vsel %vm575_vm4, %v2576_v22, %v5208_v23 }
 0x5fd   : > { %v5322_v6 = vpop.permute.xlu1 %2627  ;;  %3484 = vmatprep.subr.bf16.mxu1 %v5560_v25  ;;  %v2498_v46 = vpop.permute.xlu0 %2497  ;;  %v3497_v63 = vpack.c.bf16 %v2553_v53, %v2551_v59  ;;  %v2603_v19 = vmul.f32 %v5147_v14, %v2581_v20  ;;  %v2604_v34 = vmul.f32 %v5152_v32, %v2585_v31 }
 0x5fe   : > { %v2502_v54 = vsel %vm526_vm0, %v5210_v0, %v2498_v46  ;;  %v2506_v58 = vsel %vm526_vm0, %v2498_v46, %v5210_v0  ;;  %v5562_v46 = vpack.c.bf16 %v5198_v16, %v5192_v21 }
 0x5ff   : > { %v2525_v12 = vmul.f32 %v5116_v15, %v2506_v58  ;;  %v2526_v24 = vmul.f32 %v5119_v2, %v2502_v54  ;;  %v3491_v15 = vpack.c.bf16 %v2550_v56, %v2548_v50  ;;  %v2554_v2 = vmul.f32 %v2544_v47, %v4891_v52 }
 0x600   : > { %3486 = vmatpush1.bf16.msra.mxu1 %v5561_v61 }
 0x601   : > { %v3489_v5 = vpack.c.bf16 %v2525_v12, %v2523_v55  ;;  %v5342_v57 = vpop.permute.xlu1 %2667  ;;  %v5344_v0 = vpop.permute.xlu0 %2677  ;;  %v3487_v27 = vpack.c.bf16 %v2526_v24, %v2524_v33  ;;  %v3495_v49 = vpack.c.bf16 %v2554_v2, %v2552_v28  ;;  %v5563_v12 = vld [vmem:[#allocation12_spill] sm:$0xff] }
 0x602   : > { %v5564_v24 = vpack.c.bf16 %v5195_v45, %v5563_v12  ;;  %v2777_v12 = vld [vmem:[%s5532_s8 + $0x30] sm:$0xff] }
 0x603   : > { %3488 = vmatprep.subr.bf16.mxu1 %v3487_v27 }
 0x604   : > { %3490 = vmatpush1.bf16.msra.mxu1 %v3489_v5 }
 0x605   : > { %v2676_v48 = vpop.permute.xlu1 %2675  ;;  %3492 = vmatprep.subr.bf16.mxu1 %v3491_v15  ;;  %v2722_v39 = vpop.permute.xlu0 %2721 }
 0x606   : > { %v2687_v45 = vsel %vm629_vm5, %v2676_v48, %v5342_v57  ;;  %v2683_v42 = vsel %vm629_vm5, %v5342_v57, %v2676_v48 }
 0x608   : > { %3494 = vmatpush1.bf16.msra.mxu1 %v3493_v10 }
 0x609   : > { %v2720_v52 = vpop.permute.xlu1 %2719  ;;  %3496 = vmatprep.subr.bf16.mxu1 %v3495_v49  ;;  %v2730_v41 = vpop.permute.xlu0 %2729 }
 0x60a   : > { %v2736_v29 = vsel %vm659_vm7, %v2722_v39, %v2730_v41  ;;  %v2740_v13 = vsel %vm659_vm7, %v2730_v41, %v2722_v39 }
 0x60b   : > { %v2757_v17 = vmul.f32 %v5357_v9, %v2736_v29  ;;  %v2758_v47 = vmul.f32 %v5360_v60, %v2740_v13 }
 0x60c   : > { %3498 = vmatpush1.bf16.msra.mxu1 %v3497_v63 }
 0x60d   : > { %v2728_v25 = vpop.permute.xlu1 %2727  ;;  %3500 = vmatprep.subr.bf16.mxu1 %v5562_v46  ;;  %v2578_v23 = vpop.permute.xlu0 %2577 }
 0x60e   : > { %v2735_v22 = vsel %vm659_vm7, %v2720_v52, %v2728_v25  ;;  %v2739_v54 = vsel %vm659_vm7, %v2728_v25, %v2720_v52  ;;  %v2582_v58 = vsel %vm575_vm4, %v5212_v44, %v2578_v23  ;;  %v2586_v56 = vsel %vm575_vm4, %v2578_v23, %v5212_v44 }
 0x60f   : > { %v2755_v55 = vmul.f32 %v5357_v9, %v2735_v22  ;;  %v2756_v21 = vmul.f32 %v5360_v60, %v2739_v54  ;;  %v2605_v16 = vmul.f32 %v5147_v14, %v2582_v58  ;;  %v2606_v33 = vmul.f32 %v5152_v32, %v2586_v56  ;;  %v3295_v14 = vld [vmem:[%s5525_s1 + $0x7] ss:$8 sm:$0x3] }
 0x610   : > { %3502 = vmatpush1.bf16.msra.mxu1 %v5564_v24  ;;  %v2633_v44 = vsel %vm605_vm6, %v5308_v30, %v5322_v6  ;;  %v2637_v32 = vsel %vm605_vm6, %v5322_v6, %v5308_v30  ;;  %v2700_v2 = vrot.slane %v3295_v14, %v3699_v4  ;;  %v2688_v6 = vsel %vm629_vm5, %v5344_v0, %v5310_v38  ;;  %v2771_v56 = vld [vmem:[%s5532_s8] sm:$0xff]  ;;  %v2776_v24 = vld [vmem:[%s5532_s8 + $0x28] sm:$0xff] }
 0x611   : > { %v3525_v61 = vpack.c.bf16 %v2757_v17, %v2755_v55  ;;  %v3505_v40 = vpack.c.bf16 %v2605_v16, %v2603_v19  ;;  %v2672_v5 = vpop.permute.xlu1 %2671  ;;  %v2674_v27 = vpop.permute.xlu0 %2673  ;;  %v3503_v50 = vpack.c.bf16 %v2606_v33, %v2604_v34  ;;  %v3523_v62 = vpack.c.bf16 %v2758_v47, %v2756_v21  ;;  %v2778_v16 = vld [vmem:[%s5532_s8 + $0x38] sm:$0xff] }
 0x612   : > { %v2655_v15 = vmul.f32 %v5232_v8, %v2633_v44  ;;  %v2656_v30 = vmul.f32 %v5235_v1, %v2637_v32  ;;  %v2704_v26 = vmul.f32 %v2700_v2, %v2687_v45  ;;  %v2696_v10 = vrot.slane %v3295_v14, %v3697_v3 }
 0x613   : > { %3504 = vmatprep.subr.bf16.mxu1 %v3503_v50  ;;  %3524 = vmatprep.subr.bf16.mxu0 %v3523_v62  ;;  %v2706_v7 = vmul.f32 %v2700_v2, %v2688_v6  ;;  %v5565_v33 = vmov 0.0  }
 0x614   : > { %3506 = vmatpush1.bf16.msra.mxu1 %v3505_v40  ;;  %3526 = vmatpush1.bf16.msra.mxu0 %v3525_v61  ;;  %v2703_v52 = vmul.f32 %v2696_v10, %v2683_v42  ;;  %v2781_v61 = vld [vmem:[%s5532_s8 + $0x50] sm:$0xff]  ;;  %v2780_v40 = vld [vmem:[%s5532_s8 + $0x48] sm:$0xff] }
 0x615   : > { %v2680_v43 = vpop.permute.xlu1 %2679  ;;  %3508 = vmatprep.subr.bf16.mxu1 %v3507_v36  ;;  %v2630_v39 = vpop.permute.xlu0 %2629 }
 0x616   : > { %v2634_v28 = vsel %vm605_vm6, %v5286_v35, %v2630_v39  ;;  %v2638_v4 = vsel %vm605_vm6, %v2630_v39, %v5286_v35  ;;  %v2684_v35 = vsel %vm629_vm5, %v5310_v38, %v5344_v0  ;;  %v2685_v3 = vsel %vm629_vm5, %v2672_v5, %v2680_v43 }
 0x617   : > { %v2657_v36 = vmul.f32 %v5232_v8, %v2634_v28  ;;  %v2658_v53 = vmul.f32 %v5235_v1, %v2638_v4  ;;  %v3515_v8 = vpack.c.bf16 %v2706_v7, %v2704_v26  ;;  %v2705_v1 = vmul.f32 %v2696_v10, %v2684_v35  ;;  %v5566_v4 = vld [vmem:[#allocation4_spill] sm:$0xff] }
 0x618   : > { %3510 = vmatpush1.bf16.msra.mxu1 %v3509_v37  ;;  %v2689_v11 = vsel %vm629_vm5, %v2680_v43, %v2672_v5  ;;  %v2707_v63 = vmul.f32 %v2696_v10, %v2685_v3  ;;  %v2779_v5 = vld [vmem:[%s5532_s8 + $0x40] sm:$0xff] }
 0x619   : > { %v3513_v49 = vpack.c.bf16 %v2657_v36, %v2655_v15  ;;  %v2724_v59 = vpop.permute.xlu1 %2723  ;;  %v2726_v57 = vpop.permute.xlu0 %2725  ;;  %v3511_v48 = vpack.c.bf16 %v2658_v53, %v2656_v30  ;;  %v3517_v38 = vpack.c.bf16 %v2705_v1, %v2703_v52  ;;  %v2708_v20 = vmul.f32 %v2700_v2, %v2689_v11  ;;  %v5567_v36 = vld [vmem:[#allocation6_spill] sm:$0xff]  ;;  %v5569_v11 = vld [vmem:[#allocation7_spill] sm:$0xff] }
 0x61b   : > { %3512 = vmatprep.subr.bf16.mxu1 %v3511_v48 }
 0x61c   : > { %3514 = vmatpush1.bf16.msra.mxu1 %v3513_v49 }
 0x61d   : > { %v2732_v51 = vpop.permute.xlu1 %2731  ;;  %3516 = vmatprep.subr.bf16.mxu1 %v3515_v8  ;;  %v2682_v37 = vpop.permute.xlu0 %2681  ;;  %v5568_v8 = vld [vmem:[#allocation5_spill] sm:$0xff] }
 0x61e   : > { %v2686_v0 = vsel %vm629_vm5, %v2674_v27, %v2682_v37  ;;  %v2690_v41 = vsel %vm629_vm5, %v2682_v37, %v2674_v27  ;;  %v2737_v13 = vsel %vm659_vm7, %v2724_v59, %v2732_v51  ;;  %v2741_v19 = vsel %vm659_vm7, %v2732_v51, %v2724_v59  ;;  %v2782_v27 = vld [vmem:[%s5532_s8 + $0x58] sm:$0xff] }
 0x61f   : > { %v2709_v31 = vmul.f32 %v2696_v10, %v2686_v0  ;;  %v2710_v29 = vmul.f32 %v2700_v2, %v2690_v41  ;;  %v2759_v23 = vmul.f32 %v5357_v9, %v2737_v13  ;;  %v2760_v22 = vmul.f32 %v5360_v60, %v2741_v19  ;;  %v5570_v13 = vld [vmem:[#allocation8_spill] sm:$0xff] }
 0x620   : > { %3518 = vmatpush1.bf16.msra.mxu1 %v3517_v38 }
 0x621   : > { %v3521_v34 = vpack.c.bf16 %v2709_v31, %v2707_v63  ;;  %v2734_v17 = vpop.permute.xlu0 %2733  ;;  %v3519_v47 = vpack.c.bf16 %v2710_v29, %v2708_v20 }
 0x622   : > { %v2738_v25 = vsel %vm659_vm7, %v2726_v57, %v2734_v17  ;;  %v2742_v46 = vsel %vm659_vm7, %v2734_v17, %v2726_v57  ;;  %v5571_v17 = vld [vmem:[#allocation10_spill] sm:$0xff] }
 0x623   : > { %v2761_v54 = vmul.f32 %v5357_v9, %v2738_v25  ;;  %v2762_v58 = vmul.f32 %v5360_v60, %v2742_v46  ;;  %3520 = vmatprep.subr.bf16.mxu1 %v3519_v47  ;;  %v2774_v9 = vld [vmem:[%s5532_s8 + $0x18] sm:$0xff]  ;;  %v2773_v60 = vld [vmem:[%s5532_s8 + $0x10] sm:$0xff] }
 0x624   : > { %3522 = vmatpush1.bf16.msra.mxu1 %v3521_v34 }
 0x625   : > { %v3529_v55 = vpack.c.bf16 %v2761_v54, %v2759_v23  ;;  %v3527_v21 = vpack.c.bf16 %v2762_v58, %v2760_v22  ;;  %v5572_v54 = vld [vmem:[#allocation9_spill] sm:$0xff] }
 0x627   : > { %2956 = vmatmul.mubr.f32.vlgmr.msra.gmra.mrb[8].mxu1 %v2771_v56  ;;  %3528 = vmatprep.subr.bf16.mxu0 %v3527_v21  ;;  %v5573_v56 = vld [vmem:[#allocation11_spill] sm:$0xff] }
 0x628   : > { %3530 = vmatpush1.bf16.msra.mxu0 %v3529_v55  ;;  %2961 = vmatprep.mubr.f32.mxu1 %v2775_v18 }
 0x62b   : > { %2962 = vmatmul.mubr.f32.gmra.mrb[10].mxu1 %v2774_v9  ;;  %3297 = vmatmul.mubr.msk.f32.vlgmr.msra.gmra.mrb[24].mxu0 %vm1378_vm10, %v2773_v60 }
 0x62c   : > { %2967 = vmatprep.mubr.f32.mxu1 %v2778_v16  ;;  %3050 = vmatprep.mubr.f32.mxu0 %v5565_v33 }
 0x62e   : > { %v2862_v44 = vpop.permute.xlu1 %2861 }
 0x62f   : > { %2968 = vmatmul.mubr.f32.gmra.mrb[12].mxu1 %v2777_v12  ;;  %3298 = vmatmul.mubr.msk.f32.gmra.mrb[26].mxu0 %vm1378_vm10, %v2776_v24 }
 0x630   : > { %2973 = vmatprep.mubr.f32.mxu1 %v2781_v61  ;;  %3056 = vmatprep.mubr.f32.mxu0 %v5565_v33 }
 0x632   : > { %v2867_v30 = vpop.permute.xlu0 %2866  ;;  %v2872_v57 = vpop.permute.xlu1 %2871 }
 0x633   : > { %2974 = vmatmul.mubr.f32.gmra.mrb[14].mxu1 %v2780_v40  ;;  %3299 = vmatmul.mubr.msk.f32.gmra.mrb[28].mxu0 %vm1378_vm10, %v2779_v5 }
 0x634   : > { %3062 = vmatprep.mubr.f32.mxu0 %v5565_v33 }
 0x636   : > { %v2877_v20 = vpop.permute.xlu0 %2876 }
 0x637   : > { %3300 = vmatmul.mubr.msk.f32.gmra.mrb[30].mxu0 %vm1378_vm10, %v2782_v27 }
 0x6fa   : > { %v2957_v50 = vpop.f32.mrb[8].mxu1 }
 0x6fb   : > { %v2959_v62 = vpop.f32.mrb[9].mxu1  ;;  %v2958_v14 = vadd.f32 %v2957_v50, %v2862_v44 }
 0x6fc   : > { %v2960_v32 = vadd.f32 %v2959_v62, %v2862_v44 }
 0x6fe   : > { %v2963_v45 = vpop.f32.mrb[10].mxu1  ;;  %v3046_v15 = vpop.f32.mrb[24].mxu0 }
 0x6ff   : > { %v3047_v2 = vadd.f32 %v3046_v15, %v2958_v14  ;;  %v2965_v43 = vpop.f32.mrb[11].mxu1  ;;  %v3048_v39 = vpop.f32.mrb[25].mxu0  ;;  %v2964_v28 = vadd.f32 %v2963_v45, %v2867_v30 }
 0x700   : > { %v3049_v6 = vadd.f32 %v3048_v39, %v2960_v32  ;;  %v2966_v26 = vadd.f32 %v2965_v43, %v2867_v30 }
 0x701   : > { %v3101_v42 = vadd.f32 %v3047_v2, %v5566_v4 }
 0x702   : > { %v3102_v53 = vadd.f32 %v3049_v6, %v5567_v36  ;;  %v2969_v10 = vpop.f32.mrb[12].mxu1  ;;  %v3052_v35 = vpop.f32.mrb[26].mxu0 }
 0x703   : > { %3109 = vst [vmem:[%s5503_s15] sm:$0xff] %v3101_v42  ;;  %v3053_v7 = vadd.f32 %v3052_v35, %v2964_v28  ;;  %v2971_v49 = vpop.f32.mrb[13].mxu1  ;;  %v3054_v59 = vpop.f32.mrb[27].mxu0  ;;  %v2970_v52 = vadd.f32 %v2969_v10, %v2872_v57 }
 0x704   : > { %3110 = vst [vmem:[%s5503_s15 + $0x8] sm:$0xff] %v3102_v53  ;;  %v3055_v48 = vadd.f32 %v3054_v59, %v2966_v26  ;;  %v2972_v3 = vadd.f32 %v2971_v49, %v2872_v57 }
 0x705   : > { %v3103_v1 = vadd.f32 %v3053_v7, %v5568_v8 }
 0x706   : > { %v3104_v51 = vadd.f32 %v3055_v48, %v5569_v11  ;;  %v2975_v37 = vpop.f32.mrb[14].mxu1  ;;  %v3058_v38 = vpop.f32.mrb[28].mxu0 }
 0x707   : > { %3111 = vst [vmem:[%s5503_s15 + $0x10] sm:$0xff] %v3103_v1  ;;  %v3059_v0 = vadd.f32 %v3058_v38, %v2970_v52  ;;  %v2977_v41 = vpop.f32.mrb[15].mxu1  ;;  %v3060_v63 = vpop.f32.mrb[29].mxu0  ;;  %v2976_v29 = vadd.f32 %v2975_v37, %v2877_v20 }
 0x708   : > { %3112 = vst [vmem:[%s5503_s15 + $0x18] sm:$0xff] %v3104_v51  ;;  %v3061_v31 = vadd.f32 %v3060_v63, %v2972_v3  ;;  %v2978_v34 = vadd.f32 %v2977_v41, %v2877_v20 }
 0x709   : > { %v3105_v19 = vadd.f32 %v3059_v0, %v5570_v13 }
 0x70a   : > { %v3106_v47 = vadd.f32 %v3061_v31, %v5571_v17  ;;  %v3064_v25 = vpop.f32.mrb[30].mxu0 }
 0x70b   : > { %3113 = vst [vmem:[%s5503_s15 + $0x20] sm:$0xff] %v3105_v19  ;;  %v3065_v46 = vadd.f32 %v3064_v25, %v2976_v29  ;;  %v3066_v23 = vpop.f32.mrb[31].mxu0 }
 0x70c   : > { %3114 = vst [vmem:[%s5503_s15 + $0x28] sm:$0xff] %v3106_v47  ;;  %v3067_v22 = vadd.f32 %v3066_v23, %v2978_v34 }
 0x70d   : > { %v3107_v58 = vadd.f32 %v3065_v46, %v5572_v54 }
 0x70e   : > { %v3108_v55 = vadd.f32 %v3067_v22, %v5573_v56 }
 0x70f   : > { %3115 = vst [vmem:[%s5503_s15 + $0x30] sm:$0xff] %v3107_v58 }
 0x710   : > { %3116 = vst [vmem:[%s5503_s15 + $0x38] sm:$0xff] %v3108_v55 }
 0x711 PF: > { %s23_s21 = sadd.s32 1, %s3606_s21  }
 0x712   : > { %p20_p4 = scmp.ge.s32.totalorder %s23_s21, 4  }
 0x714   :  { %22 = sbr.rel (!%p20_p4) target bundleno = 1 (0x1), region = 122 }

</bundles_post_ra>
